<compile_context>
chip_gen: v5e
topology: v5e:2x2
jax: 0.10.0
libtpu: 0.0.40
codegen_flags: <defaults>
</compile_context>

<pallas_src>
import functools

import jax
import jax.numpy as jnp
from jax.experimental import pallas as pl
from jax.experimental.pallas import tpu as pltpu

STEPS = 4
HIDDEN = 32
NUM_CLASSES = 10


# ----------------------------------------------------------------------------
# Diffusion schedule (guided-diffusion style, linear betas), plain JAX glue.
# ----------------------------------------------------------------------------
def make_diffusion_schedule(num_timesteps):
    betas = jnp.linspace(1e-4, 2e-2, num_timesteps, dtype=jnp.float32)
    alphas = 1.0 - betas
    ac = jnp.cumprod(alphas)
    ac_prev = jnp.concatenate([jnp.ones((1,), jnp.float32), ac[:-1]])
    return dict(
        sqrt_alphas_cumprod=jnp.sqrt(ac),
        sqrt_recip_alphas_cumprod=jnp.sqrt(1.0 / ac),
        sqrt_recipm1_alphas_cumprod=jnp.sqrt(1.0 / ac - 1.0),
        posterior_mean_coef1=betas * jnp.sqrt(ac_prev) / (1.0 - ac),
        posterior_mean_coef2=(1.0 - ac_prev) * jnp.sqrt(alphas) / (1.0 - ac),
    )


def init_params(key, c, hidden, feat_dim, num_classes):
    ks = jax.random.split(key, 4)
    s = 0.1
    return dict(
        w1=jax.random.normal(ks[0], (c, hidden), jnp.float32) * s,
        b1=jnp.zeros((1, hidden), jnp.float32),
        w2=jax.random.normal(ks[1], (hidden, c), jnp.float32) * s,
        b2=jnp.zeros((1, c), jnp.float32),
        wt=jax.random.normal(ks[2], (hidden, hidden), jnp.float32) * s,
        bt=jnp.zeros((hidden,), jnp.float32),
        wc=jax.random.normal(ks[3], (feat_dim, num_classes), jnp.float32) * s,
        bc=jnp.zeros((1, num_classes), jnp.float32),
    )


def timestep_embedding(t, dim):
    half = dim // 2
    freqs = jnp.exp(-jnp.log(10000.0) * jnp.arange(half, dtype=jnp.float32) / half)
    args = jnp.float32(t) * freqs
    return jnp.concatenate([jnp.cos(args), jnp.sin(args)])


def make_step_tables(params, sched, steps, hidden):
    """Precompute per-step scalar coefficients and (b1 + time-emb) biases once."""
    timesteps = list(range(steps))[::-1]
    bias_rows, coef_rows = [], []
    for idx, t in enumerate(timesteps):
        emb = timestep_embedding(float(t), hidden)
        emb = emb @ params["wt"] + params["bt"]
        emb = emb * jax.nn.sigmoid(emb)                 # SiLU
        bias_rows.append(params["b1"][0] + emb)          # (HIDDEN,)
        qscale = (sched["sqrt_alphas_cumprod"][t] if idx == 0
                  else jnp.asarray(1.0, jnp.float32))
        coef_rows.append(jnp.stack([
            qscale,
            sched["sqrt_recip_alphas_cumprod"][t],
            sched["sqrt_recipm1_alphas_cumprod"][t],
            sched["posterior_mean_coef1"][t],
            sched["posterior_mean_coef2"][t],
        ]))
    coef_table = jnp.stack(coef_rows, axis=0).astype(jnp.float32)            # (STEPS, 5)
    bias_table = jnp.stack(bias_rows, axis=0)[:, :, None].astype(jnp.float32)  # (STEPS, HIDDEN, 1)
    return coef_table, bias_table


# ----------------------------------------------------------------------------
# Fused Pallas kernel: all diffusion steps + classifier head.
# ----------------------------------------------------------------------------
def fused_kernel(coef_ref, x_ref, bias_ref, w1t_ref, w2t_ref, b2t_ref,
                 wc_ref, bc_ref, out_ref, *, steps, c, hw, batch):
    # Small operands loaded once; resident across all steps.
    w1t = w1t_ref[...]            # (HIDDEN, C)
    w2t = w2t_ref[...]            # (C, HIDDEN)
    b2t = b2t_ref[...]            # (C, 1)
    bias_all = bias_ref[...]      # (STEPS, HIDDEN, 1)

    # Normalize to [-1, 1]; fold in q_sample scale (first step only, noise == 0).
    x = (x_ref[...] * 2.0 - 1.0) * coef_ref[0, 0]       # (C, N), N = B*H*W on lanes

    for idx in range(steps):      # STEPS is a compile-time constant -> unrolled
        sqrt_recip_ac = coef_ref[idx, 1]
        sqrt_recipm1_ac = coef_ref[idx, 2]
        post_c1 = coef_ref[idx, 3]
        post_c2 = coef_ref[idx, 4]
        bias = bias_all[idx]                             # (HIDDEN, 1) = b1 + temb(t)

        # eps-net: channel MLP in lane-dense layout (channels/hidden on sublanes,
        # pixels on lanes).  K = C (=4) contraction as unrolled VPU MACs.
        hdn = w1t[:, 0:1] * x[0:1, :]
        for ci in range(1, c):
            hdn = hdn + w1t[:, ci:ci + 1] * x[ci:ci + 1, :]
        hdn = hdn + bias
        hdn = hdn * jax.nn.sigmoid(hdn)                  # SiLU
        eps = jnp.dot(w2t, hdn, preferred_element_type=jnp.float32) + b2t  # (C, N)

        # p_mean_variance with clip_denoised=True: predict x0, clip, posterior mean.
        x0 = jnp.clip(sqrt_recip_ac * x - sqrt_recipm1_ac * eps, -1.0, 1.0)
        x = post_c1 * x0 + post_c2 * x
        # stochastic=False -> exp(0.5*log_variance)*noise term is exactly zero.

    # Back to [0, 1], then classifier head: flatten in NCHW order + linear.
    x = x * 0.5 + 0.5
    bc = bc_ref[...]                                     # (1, Kp)
    accs = [bc for _ in range(batch)]
    for ci in range(c):
        wc_c = wc_ref[pl.ds(ci * hw, hw), :]             # (HW, Kp), loaded once per channel
        for bi in range(batch):
            xb_c = x[ci:ci + 1, bi * hw:(bi + 1) * hw]   # (1, HW)
            accs[bi] = accs[bi] + jnp.dot(xb_c, wc_c,
                                          preferred_element_type=jnp.float32)
    out_ref[...] = jnp.concatenate(accs, axis=0)         # (B, Kp), lane-dense store


# ----------------------------------------------------------------------------
# JointClassifierDDPM.forward equivalent (stochastic=False).
# ----------------------------------------------------------------------------
@functools.partial(jax.jit, static_argnames=("steps",))
def joint_classifier_ddpm_forward(x_nchw, params, sched, steps):
    b, c, h, w = x_nchw.shape
    hw = h * w
    n = b * hw
    hidden = params["w1"].shape[1]
    ncls = params["wc"].shape[1]
    kp = max(128, ((ncls + 127) // 128) * 128)           # pad classes to lane width

    # Host prep (once, before the single launch); NCHW -> (C, B*H*W) lane-dense.
    x_t = jnp.transpose(x_nchw, (1, 0, 2, 3)).reshape(c, n).astype(jnp.float32)
    coef_table, bias_table = make_step_tables(params, sched, steps, hidden)
    w1t = params["w1"].T                                  # (HIDDEN, C)
    w2t = params["w2"].T                                  # (C, HIDDEN)
    b2t = params["b2"].reshape(c, 1)                      # (C, 1)
    wc_p = jnp.pad(params["wc"], ((0, 0), (0, kp - ncls)))  # (C*H*W, Kp)
    bc_p = jnp.pad(params["bc"], ((0, 0), (0, kp - ncls)))  # (1, Kp)

    kern = functools.partial(fused_kernel, steps=steps, c=c, hw=hw, batch=b)
    grid_spec = pltpu.PrefetchScalarGridSpec(
        num_scalar_prefetch=0,
        grid=(1,),
        in_specs=[
            pl.BlockSpec(memory_space=pltpu.MemorySpace.SMEM),       # coefs (STEPS, 5)
            pl.BlockSpec((c, n), lambda i: (0, 0)),                  # x^T
            pl.BlockSpec((steps, hidden, 1), lambda i: (0, 0, 0)),   # per-step biases
            pl.BlockSpec((hidden, c), lambda i: (0, 0)),             # w1^T
            pl.BlockSpec((c, hidden), lambda i: (0, 0)),             # w2^T
            pl.BlockSpec((c, 1), lambda i: (0, 0)),                  # b2^T
            pl.BlockSpec((c * hw, kp), lambda i: (0, 0)),            # wc (padded)
            pl.BlockSpec((1, kp), lambda i: (0, 0)),                 # bc (padded)
        ],
        out_specs=pl.BlockSpec((b, kp), lambda i: (0, 0)),
    )
    logits_p = pl.pallas_call(
        kern,
        out_shape=jax.ShapeDtypeStruct((b, kp), jnp.float32),
        grid_spec=grid_spec,
        compiler_params=pltpu.CompilerParams(
            dimension_semantics=("arbitrary",)),
    )(coef_table, x_t, bias_table, w1t, w2t, b2t, wc_p, bc_p)
    return logits_p[:, :ncls]


if __name__ == "__main__":
    key = jax.random.PRNGKey(0)
    kx, kparam = jax.random.split(key)

    B, C, H, W = 2, 4, 16, 16
    x = jax.random.uniform(kx, (B, C, H, W), dtype=jnp.float32)  # images in [0, 1]

    sched = make_diffusion_schedule(STEPS)
    params = init_params(kparam, C, HIDDEN, C * H * W, NUM_CLASSES)

    logits = joint_classifier_ddpm_forward(x, params, sched, STEPS)
    logits = jax.block_until_ready(logits)

    assert logits.shape == (B, NUM_CLASSES)
    assert bool(jnp.all(jnp.isfinite(logits)))
    print("KERNEL_OK")
</pallas_src>

<mosaic_0001>
module attributes {stable_mosaic.version = 11 : i64} {
  func.func @fused_kernel(%arg0: i32, %arg1: memref<4x5xf32, #tpu.memory_space<smem>>, %arg2: memref<4x512xf32, #tpu.memory_space<vmem>>, %arg3: memref<4x32x1xf32, #tpu.memory_space<vmem>>, %arg4: memref<32x4xf32, #tpu.memory_space<vmem>>, %arg5: memref<4x32xf32, #tpu.memory_space<vmem>>, %arg6: memref<4x1xf32, #tpu.memory_space<vmem>>, %arg7: memref<1024x128xf32, #tpu.memory_space<vmem>>, %arg8: memref<1x128xf32, #tpu.memory_space<vmem>>, %arg9: memref<2x128xf32, #tpu.memory_space<vmem>>) attributes {dimension_semantics = [#tpu.dimension_semantics<arbitrary>], iteration_bounds = array<i64: 1>, scalar_prefetch = 0 : i64, scratch_operands = 0 : i64, tpu.core_type = #tpu.core_type<tc>, window_params = [{transform_indices = @transform_0, window_bounds = array<i64: 4, 5>}, {pipeline_mode = #tpu.pipeline_mode<synchronous>, transform_indices = @transform_1, window_bounds = array<i64: 4, 512>}, {pipeline_mode = #tpu.pipeline_mode<synchronous>, transform_indices = @transform_2, window_bounds = array<i64: 4, 32, 1>}, {pipeline_mode = #tpu.pipeline_mode<synchronous>, transform_indices = @transform_3, window_bounds = array<i64: 32, 4>}, {pipeline_mode = #tpu.pipeline_mode<synchronous>, transform_indices = @transform_4, window_bounds = array<i64: 4, 32>}, {pipeline_mode = #tpu.pipeline_mode<synchronous>, transform_indices = @transform_5, window_bounds = array<i64: 4, 1>}, {pipeline_mode = #tpu.pipeline_mode<synchronous>, transform_indices = @transform_6, window_bounds = array<i64: 1024, 128>}, {pipeline_mode = #tpu.pipeline_mode<synchronous>, transform_indices = @transform_7, window_bounds = array<i64: 1, 128>}, {pipeline_mode = #tpu.pipeline_mode<synchronous>, transform_indices = @transform_8, window_bounds = array<i64: 2, 128>}]} {
    %c0 = arith.constant 0 : index
    %c0_0 = arith.constant 0 : index
    %0 = vector.load %arg4[%c0, %c0_0] : memref<32x4xf32, #tpu.memory_space<vmem>>, vector<32x4xf32>
    %c0_1 = arith.constant 0 : index
    %c0_2 = arith.constant 0 : index
    %1 = vector.load %arg5[%c0_1, %c0_2] : memref<4x32xf32, #tpu.memory_space<vmem>>, vector<4x32xf32>
    %c0_3 = arith.constant 0 : index
    %c0_4 = arith.constant 0 : index
    %2 = vector.load %arg6[%c0_3, %c0_4] : memref<4x1xf32, #tpu.memory_space<vmem>>, vector<4x1xf32>
    %c0_5 = arith.constant 0 : index
    %c0_6 = arith.constant 0 : index
    %c0_7 = arith.constant 0 : index
    %3 = vector.load %arg3[%c0_5, %c0_6, %c0_7] : memref<4x32x1xf32, #tpu.memory_space<vmem>>, vector<4x32x1xf32>
    %c0_8 = arith.constant 0 : index
    %c0_9 = arith.constant 0 : index
    %4 = vector.load %arg2[%c0_8, %c0_9] : memref<4x512xf32, #tpu.memory_space<vmem>>, vector<4x512xf32>
    %cst = arith.constant 2.000000e+00 : f32
    %5 = vector.broadcast %cst : f32 to vector<4x512xf32>
    %6 = arith.mulf %4, %5 : vector<4x512xf32>
    %cst_10 = arith.constant 1.000000e+00 : f32
    %7 = vector.broadcast %cst_10 : f32 to vector<4x512xf32>
    %8 = arith.subf %6, %7 : vector<4x512xf32>
    %c0_11 = arith.constant 0 : index
    %c0_12 = arith.constant 0 : index
    %9 = memref.load %arg1[%c0_11, %c0_12] : memref<4x5xf32, #tpu.memory_space<smem>>
    %10 = vector.broadcast %9 : f32 to vector<4x512xf32>
    %11 = arith.mulf %8, %10 : vector<4x512xf32>
    %c0_13 = arith.constant 0 : index
    %c1 = arith.constant 1 : index
    %12 = memref.load %arg1[%c0_13, %c1] : memref<4x5xf32, #tpu.memory_space<smem>>
    %c0_14 = arith.constant 0 : index
    %c2 = arith.constant 2 : index
    %13 = memref.load %arg1[%c0_14, %c2] : memref<4x5xf32, #tpu.memory_space<smem>>
    %c0_15 = arith.constant 0 : index
    %c3 = arith.constant 3 : index
    %14 = memref.load %arg1[%c0_15, %c3] : memref<4x5xf32, #tpu.memory_space<smem>>
    %c0_16 = arith.constant 0 : index
    %c4 = arith.constant 4 : index
    %15 = memref.load %arg1[%c0_16, %c4] : memref<4x5xf32, #tpu.memory_space<smem>>
    %16 = vector.extract_strided_slice %3 {offsets = [0, 0, 0], sizes = [1, 32, 1], strides = [1, 1, 1]} : vector<4x32x1xf32> to vector<1x32x1xf32>
    %17 = vector.shape_cast %16 : vector<1x32x1xf32> to vector<32x1xf32>
    %18 = vector.extract_strided_slice %0 {offsets = [0, 0], sizes = [32, 1], strides = [1, 1]} : vector<32x4xf32> to vector<32x1xf32>
    %19 = vector.extract_strided_slice %11 {offsets = [0, 0], sizes = [1, 512], strides = [1, 1]} : vector<4x512xf32> to vector<1x512xf32>
    %20 = vector.broadcast %18 : vector<32x1xf32> to vector<32x512xf32>
    %21 = vector.broadcast %19 : vector<1x512xf32> to vector<32x512xf32>
    %22 = arith.mulf %20, %21 : vector<32x512xf32>
    %23 = vector.extract_strided_slice %0 {offsets = [0, 1], sizes = [32, 1], strides = [1, 1]} : vector<32x4xf32> to vector<32x1xf32>
    %24 = vector.extract_strided_slice %11 {offsets = [1, 0], sizes = [1, 512], strides = [1, 1]} : vector<4x512xf32> to vector<1x512xf32>
    %25 = vector.broadcast %23 : vector<32x1xf32> to vector<32x512xf32>
    %26 = vector.broadcast %24 : vector<1x512xf32> to vector<32x512xf32>
    %27 = arith.mulf %25, %26 : vector<32x512xf32>
    %28 = arith.addf %22, %27 : vector<32x512xf32>
    %29 = vector.extract_strided_slice %0 {offsets = [0, 2], sizes = [32, 1], strides = [1, 1]} : vector<32x4xf32> to vector<32x1xf32>
    %30 = vector.extract_strided_slice %11 {offsets = [2, 0], sizes = [1, 512], strides = [1, 1]} : vector<4x512xf32> to vector<1x512xf32>
    %31 = vector.broadcast %29 : vector<32x1xf32> to vector<32x512xf32>
    %32 = vector.broadcast %30 : vector<1x512xf32> to vector<32x512xf32>
    %33 = arith.mulf %31, %32 : vector<32x512xf32>
    %34 = arith.addf %28, %33 : vector<32x512xf32>
    %35 = vector.extract_strided_slice %0 {offsets = [0, 3], sizes = [32, 1], strides = [1, 1]} : vector<32x4xf32> to vector<32x1xf32>
    %36 = vector.extract_strided_slice %11 {offsets = [3, 0], sizes = [1, 512], strides = [1, 1]} : vector<4x512xf32> to vector<1x512xf32>
    %37 = vector.broadcast %35 : vector<32x1xf32> to vector<32x512xf32>
    %38 = vector.broadcast %36 : vector<1x512xf32> to vector<32x512xf32>
    %39 = arith.mulf %37, %38 : vector<32x512xf32>
    %40 = arith.addf %34, %39 : vector<32x512xf32>
    %41 = vector.broadcast %17 : vector<32x1xf32> to vector<32x512xf32>
    %42 = arith.addf %40, %41 : vector<32x512xf32>
    %43 = arith.negf %42 : vector<32x512xf32>
    %44 = math.exp %43 : vector<32x512xf32>
    %cst_17 = arith.constant 1.000000e+00 : f32
    %45 = vector.broadcast %cst_17 : f32 to vector<32x512xf32>
    %46 = arith.addf %45, %44 : vector<32x512xf32>
    %47 = arith.divf %45, %46 : vector<32x512xf32>
    %48 = arith.mulf %42, %47 : vector<32x512xf32>
    %cst_18 = arith.constant dense<0.000000e+00> : vector<4x512xf32>
    %49 = tpu.matmul %1, %48, %cst_18 {dimension_numbers = #tpu.dot_dimension_numbers<[1], [0], [0], [1], [0, 0, 1, 1], [], []>} : vector<4x32xf32>, vector<32x512xf32>, vector<4x512xf32> -> vector<4x512xf32>
    %50 = vector.broadcast %2 : vector<4x1xf32> to vector<4x512xf32>
    %51 = arith.addf %49, %50 : vector<4x512xf32>
    %52 = vector.broadcast %12 : f32 to vector<4x512xf32>
    %53 = arith.mulf %52, %11 : vector<4x512xf32>
    %54 = vector.broadcast %13 : f32 to vector<4x512xf32>
    %55 = arith.mulf %54, %51 : vector<4x512xf32>
    %56 = arith.subf %53, %55 : vector<4x512xf32>
    %cst_19 = arith.constant -1.000000e+00 : f32
    %cst_20 = arith.constant 1.000000e+00 : f32
    %57 = vector.broadcast %cst_19 : f32 to vector<4x512xf32>
    %58 = arith.maximumf %57, %56 : vector<4x512xf32>
    %59 = vector.broadcast %cst_20 : f32 to vector<4x512xf32>
    %60 = arith.minimumf %59, %58 : vector<4x512xf32>
    %61 = vector.broadcast %14 : f32 to vector<4x512xf32>
    %62 = arith.mulf %61, %60 : vector<4x512xf32>
    %63 = vector.broadcast %15 : f32 to vector<4x512xf32>
    %64 = arith.mulf %63, %11 : vector<4x512xf32>
    %65 = arith.addf %62, %64 : vector<4x512xf32>
    %c1_21 = arith.constant 1 : index
    %c1_22 = arith.constant 1 : index
    %66 = memref.load %arg1[%c1_21, %c1_22] : memref<4x5xf32, #tpu.memory_space<smem>>
    %c1_23 = arith.constant 1 : index
    %c2_24 = arith.constant 2 : index
    %67 = memref.load %arg1[%c1_23, %c2_24] : memref<4x5xf32, #tpu.memory_space<smem>>
    %c1_25 = arith.constant 1 : index
    %c3_26 = arith.constant 3 : index
    %68 = memref.load %arg1[%c1_25, %c3_26] : memref<4x5xf32, #tpu.memory_space<smem>>
    %c1_27 = arith.constant 1 : index
    %c4_28 = arith.constant 4 : index
    %69 = memref.load %arg1[%c1_27, %c4_28] : memref<4x5xf32, #tpu.memory_space<smem>>
    %70 = vector.extract_strided_slice %3 {offsets = [1, 0, 0], sizes = [1, 32, 1], strides = [1, 1, 1]} : vector<4x32x1xf32> to vector<1x32x1xf32>
    %71 = vector.shape_cast %70 : vector<1x32x1xf32> to vector<32x1xf32>
    %72 = vector.extract_strided_slice %0 {offsets = [0, 0], sizes = [32, 1], strides = [1, 1]} : vector<32x4xf32> to vector<32x1xf32>
    %73 = vector.extract_strided_slice %65 {offsets = [0, 0], sizes = [1, 512], strides = [1, 1]} : vector<4x512xf32> to vector<1x512xf32>
    %74 = vector.broadcast %72 : vector<32x1xf32> to vector<32x512xf32>
    %75 = vector.broadcast %73 : vector<1x512xf32> to vector<32x512xf32>
    %76 = arith.mulf %74, %75 : vector<32x512xf32>
    %77 = vector.extract_strided_slice %0 {offsets = [0, 1], sizes = [32, 1], strides = [1, 1]} : vector<32x4xf32> to vector<32x1xf32>
    %78 = vector.extract_strided_slice %65 {offsets = [1, 0], sizes = [1, 512], strides = [1, 1]} : vector<4x512xf32> to vector<1x512xf32>
    %79 = vector.broadcast %77 : vector<32x1xf32> to vector<32x512xf32>
    %80 = vector.broadcast %78 : vector<1x512xf32> to vector<32x512xf32>
    %81 = arith.mulf %79, %80 : vector<32x512xf32>
    %82 = arith.addf %76, %81 : vector<32x512xf32>
    %83 = vector.extract_strided_slice %0 {offsets = [0, 2], sizes = [32, 1], strides = [1, 1]} : vector<32x4xf32> to vector<32x1xf32>
    %84 = vector.extract_strided_slice %65 {offsets = [2, 0], sizes = [1, 512], strides = [1, 1]} : vector<4x512xf32> to vector<1x512xf32>
    %85 = vector.broadcast %83 : vector<32x1xf32> to vector<32x512xf32>
    %86 = vector.broadcast %84 : vector<1x512xf32> to vector<32x512xf32>
    %87 = arith.mulf %85, %86 : vector<32x512xf32>
    %88 = arith.addf %82, %87 : vector<32x512xf32>
    %89 = vector.extract_strided_slice %0 {offsets = [0, 3], sizes = [32, 1], strides = [1, 1]} : vector<32x4xf32> to vector<32x1xf32>
    %90 = vector.extract_strided_slice %65 {offsets = [3, 0], sizes = [1, 512], strides = [1, 1]} : vector<4x512xf32> to vector<1x512xf32>
    %91 = vector.broadcast %89 : vector<32x1xf32> to vector<32x512xf32>
    %92 = vector.broadcast %90 : vector<1x512xf32> to vector<32x512xf32>
    %93 = arith.mulf %91, %92 : vector<32x512xf32>
    %94 = arith.addf %88, %93 : vector<32x512xf32>
    %95 = vector.broadcast %71 : vector<32x1xf32> to vector<32x512xf32>
    %96 = arith.addf %94, %95 : vector<32x512xf32>
    %97 = arith.negf %96 : vector<32x512xf32>
    %98 = math.exp %97 : vector<32x512xf32>
    %cst_29 = arith.constant 1.000000e+00 : f32
    %99 = vector.broadcast %cst_29 : f32 to vector<32x512xf32>
    %100 = arith.addf %99, %98 : vector<32x512xf32>
    %101 = arith.divf %99, %100 : vector<32x512xf32>
    %102 = arith.mulf %96, %101 : vector<32x512xf32>
    %cst_30 = arith.constant dense<0.000000e+00> : vector<4x512xf32>
    %103 = tpu.matmul %1, %102, %cst_30 {dimension_numbers = #tpu.dot_dimension_numbers<[1], [0], [0], [1], [0, 0, 1, 1], [], []>} : vector<4x32xf32>, vector<32x512xf32>, vector<4x512xf32> -> vector<4x512xf32>
    %104 = vector.broadcast %2 : vector<4x1xf32> to vector<4x512xf32>
    %105 = arith.addf %103, %104 : vector<4x512xf32>
    %106 = vector.broadcast %66 : f32 to vector<4x512xf32>
    %107 = arith.mulf %106, %65 : vector<4x512xf32>
    %108 = vector.broadcast %67 : f32 to vector<4x512xf32>
    %109 = arith.mulf %108, %105 : vector<4x512xf32>
    %110 = arith.subf %107, %109 : vector<4x512xf32>
    %cst_31 = arith.constant -1.000000e+00 : f32
    %cst_32 = arith.constant 1.000000e+00 : f32
    %111 = vector.broadcast %cst_31 : f32 to vector<4x512xf32>
    %112 = arith.maximumf %111, %110 : vector<4x512xf32>
    %113 = vector.broadcast %cst_32 : f32 to vector<4x512xf32>
    %114 = arith.minimumf %113, %112 : vector<4x512xf32>
    %115 = vector.broadcast %68 : f32 to vector<4x512xf32>
    %116 = arith.mulf %115, %114 : vector<4x512xf32>
    %117 = vector.broadcast %69 : f32 to vector<4x512xf32>
    %118 = arith.mulf %117, %65 : vector<4x512xf32>
    %119 = arith.addf %116, %118 : vector<4x512xf32>
    %c2_33 = arith.constant 2 : index
    %c1_34 = arith.constant 1 : index
    %120 = memref.load %arg1[%c2_33, %c1_34] : memref<4x5xf32, #tpu.memory_space<smem>>
    %c2_35 = arith.constant 2 : index
    %c2_36 = arith.constant 2 : index
    %121 = memref.load %arg1[%c2_35, %c2_36] : memref<4x5xf32, #tpu.memory_space<smem>>
    %c2_37 = arith.constant 2 : index
    %c3_38 = arith.constant 3 : index
    %122 = memref.load %arg1[%c2_37, %c3_38] : memref<4x5xf32, #tpu.memory_space<smem>>
    %c2_39 = arith.constant 2 : index
    %c4_40 = arith.constant 4 : index
    %123 = memref.load %arg1[%c2_39, %c4_40] : memref<4x5xf32, #tpu.memory_space<smem>>
    %124 = vector.extract_strided_slice %3 {offsets = [2, 0, 0], sizes = [1, 32, 1], strides = [1, 1, 1]} : vector<4x32x1xf32> to vector<1x32x1xf32>
    %125 = vector.shape_cast %124 : vector<1x32x1xf32> to vector<32x1xf32>
    %126 = vector.extract_strided_slice %0 {offsets = [0, 0], sizes = [32, 1], strides = [1, 1]} : vector<32x4xf32> to vector<32x1xf32>
    %127 = vector.extract_strided_slice %119 {offsets = [0, 0], sizes = [1, 512], strides = [1, 1]} : vector<4x512xf32> to vector<1x512xf32>
    %128 = vector.broadcast %126 : vector<32x1xf32> to vector<32x512xf32>
    %129 = vector.broadcast %127 : vector<1x512xf32> to vector<32x512xf32>
    %130 = arith.mulf %128, %129 : vector<32x512xf32>
    %131 = vector.extract_strided_slice %0 {offsets = [0, 1], sizes = [32, 1], strides = [1, 1]} : vector<32x4xf32> to vector<32x1xf32>
    %132 = vector.extract_strided_slice %119 {offsets = [1, 0], sizes = [1, 512], strides = [1, 1]} : vector<4x512xf32> to vector<1x512xf32>
    %133 = vector.broadcast %131 : vector<32x1xf32> to vector<32x512xf32>
    %134 = vector.broadcast %132 : vector<1x512xf32> to vector<32x512xf32>
    %135 = arith.mulf %133, %134 : vector<32x512xf32>
    %136 = arith.addf %130, %135 : vector<32x512xf32>
    %137 = vector.extract_strided_slice %0 {offsets = [0, 2], sizes = [32, 1], strides = [1, 1]} : vector<32x4xf32> to vector<32x1xf32>
    %138 = vector.extract_strided_slice %119 {offsets = [2, 0], sizes = [1, 512], strides = [1, 1]} : vector<4x512xf32> to vector<1x512xf32>
    %139 = vector.broadcast %137 : vector<32x1xf32> to vector<32x512xf32>
    %140 = vector.broadcast %138 : vector<1x512xf32> to vector<32x512xf32>
    %141 = arith.mulf %139, %140 : vector<32x512xf32>
    %142 = arith.addf %136, %141 : vector<32x512xf32>
    %143 = vector.extract_strided_slice %0 {offsets = [0, 3], sizes = [32, 1], strides = [1, 1]} : vector<32x4xf32> to vector<32x1xf32>
    %144 = vector.extract_strided_slice %119 {offsets = [3, 0], sizes = [1, 512], strides = [1, 1]} : vector<4x512xf32> to vector<1x512xf32>
    %145 = vector.broadcast %143 : vector<32x1xf32> to vector<32x512xf32>
    %146 = vector.broadcast %144 : vector<1x512xf32> to vector<32x512xf32>
    %147 = arith.mulf %145, %146 : vector<32x512xf32>
    %148 = arith.addf %142, %147 : vector<32x512xf32>
    %149 = vector.broadcast %125 : vector<32x1xf32> to vector<32x512xf32>
    %150 = arith.addf %148, %149 : vector<32x512xf32>
    %151 = arith.negf %150 : vector<32x512xf32>
    %152 = math.exp %151 : vector<32x512xf32>
    %cst_41 = arith.constant 1.000000e+00 : f32
    %153 = vector.broadcast %cst_41 : f32 to vector<32x512xf32>
    %154 = arith.addf %153, %152 : vector<32x512xf32>
    %155 = arith.divf %153, %154 : vector<32x512xf32>
    %156 = arith.mulf %150, %155 : vector<32x512xf32>
    %cst_42 = arith.constant dense<0.000000e+00> : vector<4x512xf32>
    %157 = tpu.matmul %1, %156, %cst_42 {dimension_numbers = #tpu.dot_dimension_numbers<[1], [0], [0], [1], [0, 0, 1, 1], [], []>} : vector<4x32xf32>, vector<32x512xf32>, vector<4x512xf32> -> vector<4x512xf32>
    %158 = vector.broadcast %2 : vector<4x1xf32> to vector<4x512xf32>
    %159 = arith.addf %157, %158 : vector<4x512xf32>
    %160 = vector.broadcast %120 : f32 to vector<4x512xf32>
    %161 = arith.mulf %160, %119 : vector<4x512xf32>
    %162 = vector.broadcast %121 : f32 to vector<4x512xf32>
    %163 = arith.mulf %162, %159 : vector<4x512xf32>
    %164 = arith.subf %161, %163 : vector<4x512xf32>
    %cst_43 = arith.constant -1.000000e+00 : f32
    %cst_44 = arith.constant 1.000000e+00 : f32
    %165 = vector.broadcast %cst_43 : f32 to vector<4x512xf32>
    %166 = arith.maximumf %165, %164 : vector<4x512xf32>
    %167 = vector.broadcast %cst_44 : f32 to vector<4x512xf32>
    %168 = arith.minimumf %167, %166 : vector<4x512xf32>
    %169 = vector.broadcast %122 : f32 to vector<4x512xf32>
    %170 = arith.mulf %169, %168 : vector<4x512xf32>
    %171 = vector.broadcast %123 : f32 to vector<4x512xf32>
    %172 = arith.mulf %171, %119 : vector<4x512xf32>
    %173 = arith.addf %170, %172 : vector<4x512xf32>
    %c3_45 = arith.constant 3 : index
    %c1_46 = arith.constant 1 : index
    %174 = memref.load %arg1[%c3_45, %c1_46] : memref<4x5xf32, #tpu.memory_space<smem>>
    %c3_47 = arith.constant 3 : index
    %c2_48 = arith.constant 2 : index
    %175 = memref.load %arg1[%c3_47, %c2_48] : memref<4x5xf32, #tpu.memory_space<smem>>
    %c3_49 = arith.constant 3 : index
    %c3_50 = arith.constant 3 : index
    %176 = memref.load %arg1[%c3_49, %c3_50] : memref<4x5xf32, #tpu.memory_space<smem>>
    %c3_51 = arith.constant 3 : index
    %c4_52 = arith.constant 4 : index
    %177 = memref.load %arg1[%c3_51, %c4_52] : memref<4x5xf32, #tpu.memory_space<smem>>
    %178 = vector.extract_strided_slice %3 {offsets = [3, 0, 0], sizes = [1, 32, 1], strides = [1, 1, 1]} : vector<4x32x1xf32> to vector<1x32x1xf32>
    %179 = vector.shape_cast %178 : vector<1x32x1xf32> to vector<32x1xf32>
    %180 = vector.extract_strided_slice %0 {offsets = [0, 0], sizes = [32, 1], strides = [1, 1]} : vector<32x4xf32> to vector<32x1xf32>
    %181 = vector.extract_strided_slice %173 {offsets = [0, 0], sizes = [1, 512], strides = [1, 1]} : vector<4x512xf32> to vector<1x512xf32>
    %182 = vector.broadcast %180 : vector<32x1xf32> to vector<32x512xf32>
    %183 = vector.broadcast %181 : vector<1x512xf32> to vector<32x512xf32>
    %184 = arith.mulf %182, %183 : vector<32x512xf32>
    %185 = vector.extract_strided_slice %0 {offsets = [0, 1], sizes = [32, 1], strides = [1, 1]} : vector<32x4xf32> to vector<32x1xf32>
    %186 = vector.extract_strided_slice %173 {offsets = [1, 0], sizes = [1, 512], strides = [1, 1]} : vector<4x512xf32> to vector<1x512xf32>
    %187 = vector.broadcast %185 : vector<32x1xf32> to vector<32x512xf32>
    %188 = vector.broadcast %186 : vector<1x512xf32> to vector<32x512xf32>
    %189 = arith.mulf %187, %188 : vector<32x512xf32>
    %190 = arith.addf %184, %189 : vector<32x512xf32>
    %191 = vector.extract_strided_slice %0 {offsets = [0, 2], sizes = [32, 1], strides = [1, 1]} : vector<32x4xf32> to vector<32x1xf32>
    %192 = vector.extract_strided_slice %173 {offsets = [2, 0], sizes = [1, 512], strides = [1, 1]} : vector<4x512xf32> to vector<1x512xf32>
    %193 = vector.broadcast %191 : vector<32x1xf32> to vector<32x512xf32>
    %194 = vector.broadcast %192 : vector<1x512xf32> to vector<32x512xf32>
    %195 = arith.mulf %193, %194 : vector<32x512xf32>
    %196 = arith.addf %190, %195 : vector<32x512xf32>
    %197 = vector.extract_strided_slice %0 {offsets = [0, 3], sizes = [32, 1], strides = [1, 1]} : vector<32x4xf32> to vector<32x1xf32>
    %198 = vector.extract_strided_slice %173 {offsets = [3, 0], sizes = [1, 512], strides = [1, 1]} : vector<4x512xf32> to vector<1x512xf32>
    %199 = vector.broadcast %197 : vector<32x1xf32> to vector<32x512xf32>
    %200 = vector.broadcast %198 : vector<1x512xf32> to vector<32x512xf32>
    %201 = arith.mulf %199, %200 : vector<32x512xf32>
    %202 = arith.addf %196, %201 : vector<32x512xf32>
    %203 = vector.broadcast %179 : vector<32x1xf32> to vector<32x512xf32>
    %204 = arith.addf %202, %203 : vector<32x512xf32>
    %205 = arith.negf %204 : vector<32x512xf32>
    %206 = math.exp %205 : vector<32x512xf32>
    %cst_53 = arith.constant 1.000000e+00 : f32
    %207 = vector.broadcast %cst_53 : f32 to vector<32x512xf32>
    %208 = arith.addf %207, %206 : vector<32x512xf32>
    %209 = arith.divf %207, %208 : vector<32x512xf32>
    %210 = arith.mulf %204, %209 : vector<32x512xf32>
    %cst_54 = arith.constant dense<0.000000e+00> : vector<4x512xf32>
    %211 = tpu.matmul %1, %210, %cst_54 {dimension_numbers = #tpu.dot_dimension_numbers<[1], [0], [0], [1], [0, 0, 1, 1], [], []>} : vector<4x32xf32>, vector<32x512xf32>, vector<4x512xf32> -> vector<4x512xf32>
    %212 = vector.broadcast %2 : vector<4x1xf32> to vector<4x512xf32>
    %213 = arith.addf %211, %212 : vector<4x512xf32>
    %214 = vector.broadcast %174 : f32 to vector<4x512xf32>
    %215 = arith.mulf %214, %173 : vector<4x512xf32>
    %216 = vector.broadcast %175 : f32 to vector<4x512xf32>
    %217 = arith.mulf %216, %213 : vector<4x512xf32>
    %218 = arith.subf %215, %217 : vector<4x512xf32>
    %cst_55 = arith.constant -1.000000e+00 : f32
    %cst_56 = arith.constant 1.000000e+00 : f32
    %219 = vector.broadcast %cst_55 : f32 to vector<4x512xf32>
    %220 = arith.maximumf %219, %218 : vector<4x512xf32>
    %221 = vector.broadcast %cst_56 : f32 to vector<4x512xf32>
    %222 = arith.minimumf %221, %220 : vector<4x512xf32>
    %223 = vector.broadcast %176 : f32 to vector<4x512xf32>
    %224 = arith.mulf %223, %222 : vector<4x512xf32>
    %225 = vector.broadcast %177 : f32 to vector<4x512xf32>
    %226 = arith.mulf %225, %173 : vector<4x512xf32>
    %227 = arith.addf %224, %226 : vector<4x512xf32>
    %cst_57 = arith.constant 5.000000e-01 : f32
    %228 = vector.broadcast %cst_57 : f32 to vector<4x512xf32>
    %229 = arith.mulf %227, %228 : vector<4x512xf32>
    %cst_58 = arith.constant 5.000000e-01 : f32
    %230 = vector.broadcast %cst_58 : f32 to vector<4x512xf32>
    %231 = arith.addf %229, %230 : vector<4x512xf32>
    %c0_59 = arith.constant 0 : index
    %c0_60 = arith.constant 0 : index
    %232 = vector.load %arg8[%c0_59, %c0_60] : memref<1x128xf32, #tpu.memory_space<vmem>>, vector<1x128xf32>
    %c0_61 = arith.constant 0 : index
    %c0_62 = arith.constant 0 : index
    %233 = vector.load %arg7[%c0_61, %c0_62] : memref<1024x128xf32, #tpu.memory_space<vmem>>, vector<256x128xf32>
    %234 = vector.extract_strided_slice %231 {offsets = [0, 0], sizes = [1, 256], strides = [1, 1]} : vector<4x512xf32> to vector<1x256xf32>
    %cst_63 = arith.constant dense<0.000000e+00> : vector<1x128xf32>
    %235 = tpu.matmul %234, %233, %cst_63 {dimension_numbers = #tpu.dot_dimension_numbers<[1], [0], [0], [1], [0, 0, 1, 1], [], []>} : vector<1x256xf32>, vector<256x128xf32>, vector<1x128xf32> -> vector<1x128xf32>
    %236 = arith.addf %232, %235 : vector<1x128xf32>
    %237 = vector.extract_strided_slice %231 {offsets = [0, 256], sizes = [1, 256], strides = [1, 1]} : vector<4x512xf32> to vector<1x256xf32>
    %cst_64 = arith.constant dense<0.000000e+00> : vector<1x128xf32>
    %238 = tpu.matmul %237, %233, %cst_64 {dimension_numbers = #tpu.dot_dimension_numbers<[1], [0], [0], [1], [0, 0, 1, 1], [], []>} : vector<1x256xf32>, vector<256x128xf32>, vector<1x128xf32> -> vector<1x128xf32>
    %239 = arith.addf %232, %238 : vector<1x128xf32>
    %c256 = arith.constant 256 : index
    %c0_65 = arith.constant 0 : index
    %240 = vector.load %arg7[%c256, %c0_65] : memref<1024x128xf32, #tpu.memory_space<vmem>>, vector<256x128xf32>
    %241 = vector.extract_strided_slice %231 {offsets = [1, 0], sizes = [1, 256], strides = [1, 1]} : vector<4x512xf32> to vector<1x256xf32>
    %cst_66 = arith.constant dense<0.000000e+00> : vector<1x128xf32>
    %242 = tpu.matmul %241, %240, %cst_66 {dimension_numbers = #tpu.dot_dimension_numbers<[1], [0], [0], [1], [0, 0, 1, 1], [], []>} : vector<1x256xf32>, vector<256x128xf32>, vector<1x128xf32> -> vector<1x128xf32>
    %243 = arith.addf %236, %242 : vector<1x128xf32>
    %244 = vector.extract_strided_slice %231 {offsets = [1, 256], sizes = [1, 256], strides = [1, 1]} : vector<4x512xf32> to vector<1x256xf32>
    %cst_67 = arith.constant dense<0.000000e+00> : vector<1x128xf32>
    %245 = tpu.matmul %244, %240, %cst_67 {dimension_numbers = #tpu.dot_dimension_numbers<[1], [0], [0], [1], [0, 0, 1, 1], [], []>} : vector<1x256xf32>, vector<256x128xf32>, vector<1x128xf32> -> vector<1x128xf32>
    %246 = arith.addf %239, %245 : vector<1x128xf32>
    %c512 = arith.constant 512 : index
    %c0_68 = arith.constant 0 : index
    %247 = vector.load %arg7[%c512, %c0_68] : memref<1024x128xf32, #tpu.memory_space<vmem>>, vector<256x128xf32>
    %248 = vector.extract_strided_slice %231 {offsets = [2, 0], sizes = [1, 256], strides = [1, 1]} : vector<4x512xf32> to vector<1x256xf32>
    %cst_69 = arith.constant dense<0.000000e+00> : vector<1x128xf32>
    %249 = tpu.matmul %248, %247, %cst_69 {dimension_numbers = #tpu.dot_dimension_numbers<[1], [0], [0], [1], [0, 0, 1, 1], [], []>} : vector<1x256xf32>, vector<256x128xf32>, vector<1x128xf32> -> vector<1x128xf32>
    %250 = arith.addf %243, %249 : vector<1x128xf32>
    %251 = vector.extract_strided_slice %231 {offsets = [2, 256], sizes = [1, 256], strides = [1, 1]} : vector<4x512xf32> to vector<1x256xf32>
    %cst_70 = arith.constant dense<0.000000e+00> : vector<1x128xf32>
    %252 = tpu.matmul %251, %247, %cst_70 {dimension_numbers = #tpu.dot_dimension_numbers<[1], [0], [0], [1], [0, 0, 1, 1], [], []>} : vector<1x256xf32>, vector<256x128xf32>, vector<1x128xf32> -> vector<1x128xf32>
    %253 = arith.addf %246, %252 : vector<1x128xf32>
    %c768 = arith.constant 768 : index
    %c0_71 = arith.constant 0 : index
    %254 = vector.load %arg7[%c768, %c0_71] : memref<1024x128xf32, #tpu.memory_space<vmem>>, vector<256x128xf32>
    %255 = vector.extract_strided_slice %231 {offsets = [3, 0], sizes = [1, 256], strides = [1, 1]} : vector<4x512xf32> to vector<1x256xf32>
    %cst_72 = arith.constant dense<0.000000e+00> : vector<1x128xf32>
    %256 = tpu.matmul %255, %254, %cst_72 {dimension_numbers = #tpu.dot_dimension_numbers<[1], [0], [0], [1], [0, 0, 1, 1], [], []>} : vector<1x256xf32>, vector<256x128xf32>, vector<1x128xf32> -> vector<1x128xf32>
    %257 = arith.addf %250, %256 : vector<1x128xf32>
    %258 = vector.extract_strided_slice %231 {offsets = [3, 256], sizes = [1, 256], strides = [1, 1]} : vector<4x512xf32> to vector<1x256xf32>
    %cst_73 = arith.constant dense<0.000000e+00> : vector<1x128xf32>
    %259 = tpu.matmul %258, %254, %cst_73 {dimension_numbers = #tpu.dot_dimension_numbers<[1], [0], [0], [1], [0, 0, 1, 1], [], []>} : vector<1x256xf32>, vector<256x128xf32>, vector<1x128xf32> -> vector<1x128xf32>
    %260 = arith.addf %253, %259 : vector<1x128xf32>
    %261 = tpu.concatenate %257, %260 in 0 : vector<1x128xf32>, vector<1x128xf32> -> vector<2x128xf32>
    %c0_74 = arith.constant 0 : index
    %c0_75 = arith.constant 0 : index
    %262 = vector.load %arg9[%c0_74, %c0_75] : memref<2x128xf32, #tpu.memory_space<vmem>>, vector<2x128xf32>
    tpu.vector_store %arg9[%c0_74, %c0_75], %261 {strides = array<i32>} : memref<2x128xf32, #tpu.memory_space<vmem>>, vector<2x128xf32>,
    return
  }
  func.func @transform_0(%arg0: i32) -> (i32, i32) {
    %c0_i32 = arith.constant 0 : i32
    %c0_i32_0 = arith.constant 0 : i32
    %c0_i32_1 = arith.constant 0 : i32
    return %c0_i32, %c0_i32_0 : i32, i32
  }
  func.func @transform_1(%arg0: i32) -> (i32, i32) {
    %c0_i32 = arith.constant 0 : i32
    %c0_i32_0 = arith.constant 0 : i32
    %c0_i32_1 = arith.constant 0 : i32
    return %c0_i32, %c0_i32_0 : i32, i32
  }
  func.func @transform_2(%arg0: i32) -> (i32, i32, i32) {
    %c0_i32 = arith.constant 0 : i32
    %c0_i32_0 = arith.constant 0 : i32
    %c0_i32_1 = arith.constant 0 : i32
    %c0_i32_2 = arith.constant 0 : i32
    return %c0_i32, %c0_i32_0, %c0_i32_1 : i32, i32, i32
  }
  func.func @transform_3(%arg0: i32) -> (i32, i32) {
    %c0_i32 = arith.constant 0 : i32
    %c0_i32_0 = arith.constant 0 : i32
    %c0_i32_1 = arith.constant 0 : i32
    return %c0_i32, %c0_i32_0 : i32, i32
  }
  func.func @transform_4(%arg0: i32) -> (i32, i32) {
    %c0_i32 = arith.constant 0 : i32
    %c0_i32_0 = arith.constant 0 : i32
    %c0_i32_1 = arith.constant 0 : i32
    return %c0_i32, %c0_i32_0 : i32, i32
  }
  func.func @transform_5(%arg0: i32) -> (i32, i32) {
    %c0_i32 = arith.constant 0 : i32
    %c0_i32_0 = arith.constant 0 : i32
    %c0_i32_1 = arith.constant 0 : i32
    return %c0_i32, %c0_i32_0 : i32, i32
  }
  func.func @transform_6(%arg0: i32) -> (i32, i32) {
    %c0_i32 = arith.constant 0 : i32
    %c0_i32_0 = arith.constant 0 : i32
    %c0_i32_1 = arith.constant 0 : i32
    return %c0_i32, %c0_i32_0 : i32, i32
  }
  func.func @transform_7(%arg0: i32) -> (i32, i32) {
    %c0_i32 = arith.constant 0 : i32
    %c0_i32_0 = arith.constant 0 : i32
    %c0_i32_1 = arith.constant 0 : i32
    return %c0_i32, %c0_i32_0 : i32, i32
  }
  func.func @transform_8(%arg0: i32) -> (i32, i32) {
    %c0_i32 = arith.constant 0 : i32
    %c0_i32_0 = arith.constant 0 : i32
    %c0_i32_1 = arith.constant 0 : i32
    return %c0_i32, %c0_i32_0 : i32, i32
  }
}

</mosaic_0001>

<bundles_post_ra>
// kernel: joint_classifier_ddpm_forward.1
= control target key start
LH: loop header
LB: loop body
LE: loop exit
PB: predicated region body
PF: predicated region fallthrough
CT: control target
= control target key end

     0   :  { %13 = vsyncpa [#allocation4], 0  ;;  %s6568_s0 = inlined_call_operand.vmem [shape: f32[4,5], index: 0, kind: input, shape index: {}]   ;;  %s6569_s1 = inlined_call_operand.vmem [shape: f32[4,512], index: 1, kind: input, shape index: {}]   ;;  %s6570_s2 = inlined_call_operand.vmem [shape: f32[4,32,1], index: 2, kind: input, shape index: {}]   ;;  %s6571_s3 = inlined_call_operand.vmem [shape: f32[32,4], index: 3, kind: input, shape index: {}]   ;;  %s6572_s4 = inlined_call_operand.vmem [shape: f32[4,32], index: 4, kind: input, shape index: {}]   ;;  %s6573_s5 = inlined_call_operand.vmem [shape: f32[4,1], index: 5, kind: input, shape index: {}]   ;;  %s6574_s6 = inlined_call_operand.vmem [shape: f32[1024,128], index: 6, kind: input, shape index: {}]   ;;  %s6575_s7 = inlined_call_operand.vmem [shape: f32[1,128], index: 7, kind: input, shape index: {}]   ;;  %s6576_s8 = inlined_call_operand.hbm [shape: f32[2,128], index: 8, kind: output, shape index: {}]  }
   0x1   :  { %14 = vsyncpa [#allocation3], 0  ;;  %s20_s29 = sshll.u32 %s6568_s0, 4  ;;  %s3635_s30 = smov [#allocation2]   ;;  %s21_s29 = int_to_ptr.vmem [resolvable:$true] %s20_s29 }
   0x2   :  { %23 = dma.vmem_to_smem %s21_s29, 64, %s3635_s30, [#allocation4]  }
   0x3   :  { %3631 = dma.done.wait [#allocation4], 64  }
   0x4   :  { %3632 = vsyncadd [#allocation4], 4294967232 }
   0x5   :  { %42 = sfence }
   0x6   :  { %v46_v0 = vld [vmem:[%s6571_s3 + $0x18] sm:$0xff]  ;;  %v45_v1 = vld [vmem:[%s6571_s3 + $0x10] sm:$0xff]  ;;  %v3636_v2 = vmov 2   ;;  %v3637_v3 = vmov 0   ;;  %v44_v4 = vld [vmem:[%s6571_s3 + $0x8] sm:$0xff]  ;;  %v3638_v5 = vmov 1  }
   0x7   :  { %3323 = vset.pattern.permute.xlu2 %v3636_v2  ;;  %3321 = vset.pattern.permute.xlu1 %v3637_v3  ;;  %v3639_v6 = vmov 3   ;;  %v43_v7 = vld [vmem:[%s6571_s3] sm:$0xff]  ;;  %v50_v8 = vld [vmem:[%s6570_s2 + $0x8] sm:$0xff]  ;;  %v52_v10 = vld [vmem:[%s6570_s2 + $0x18] sm:$0xff]  ;;  %s71_s26 = sld [smem:[#allocation2]]  ;;  %s3197_s15 = sshll.u32 %s6576_s8, 4  ;;  %s3198_s15 = int_to_ptr.hbm [resolvable:$true] %s3197_s15 }
   0x8   :  { %3319 = vset.pattern.permute.xlu0 %v3637_v3  ;;  %202 = vperm.xlu2 %3323, %v46_v0   ;;  %v54_v9 = vld [vmem:[%s6570_s2 + $0x28] sm:$0xff]  ;;  %v59_v11 = vld [vmem:[%s6570_s2 + $0x50] sm:$0xff]  ;;  %v64_v13 = vld [vmem:[%s6570_s2 + $0x78] sm:$0xff]  ;;  %s3210_s29 = sld [smem:[#allocation2 + $0x2]] }
   0x9   :  { %96 = vperm.xlu0 %3319, %v46_v0   ;;  %91 = vperm.xlu1 %3321, %v45_v1   ;;  %v51_v12 = vld [vmem:[%s6570_s2 + $0x10] sm:$0xff]  ;;  %v49_v14 = vld [vmem:[%s6570_s2] sm:$0xff]  ;;  %v56_v17 = vld [vmem:[%s6570_s2 + $0x38] sm:$0xff]  ;;  %s3209_s30 = sld [smem:[#allocation2 + $0x1]] }
   0xa   :  { %v48_v15 = vld [vmem:[%s6573_s5] sm:$0xf]  ;;  %v55_v18 = vld [vmem:[%s6570_s2 + $0x30] sm:$0xff]  ;;  %v60_v20 = vld [vmem:[%s6570_s2 + $0x58] sm:$0xff]  ;;  %s4274_s9 = sld [smem:[#allocation2 + $0x4]] }
   0xb   :  { %v61_v16 = vld [vmem:[%s6570_s2 + $0x60] sm:$0xff]  ;;  %v58_v21 = vld [vmem:[%s6570_s2 + $0x48] sm:$0xff]  ;;  %v63_v23 = vld [vmem:[%s6570_s2 + $0x70] sm:$0xff]  ;;  %s4281_s10 = sld [smem:[#allocation2 + $0x3]] }
   0xc   :  { %v53_v19 = vld [vmem:[%s6570_s2 + $0x20] sm:$0xff]  ;;  %v62_v25 = vld [vmem:[%s6570_s2 + $0x68] sm:$0xff]  ;;  %s3236_s0 = sld [smem:[#allocation2 + $0x82]] }
   0xd   :  { %v57_v22 = vld [vmem:[%s6570_s2 + $0x40] sm:$0xff]  ;;  %v66_v28 = vld [vmem:[%s6569_s1 + $0x8] sm:$0xff]  ;;  %v72_v32 = vstv %s71_s26  ;;  %s4783_s13 = sld [smem:[#allocation2 + $0x81]] }
   0xe   :  { %v65_v27 = vld [vmem:[%s6569_s1] sm:$0xff]  ;;  %v68_v30 = vmul.f32 2.0, %v66_v28  ;;  %s4789_s5 = sld [smem:[#allocation2 + $0x83]] }
   0xf   :  { %v67_v29 = vmul.f32 2.0, %v65_v27  ;;  %s4793_s14 = sld [smem:[#allocation2 + $0x84]] }
  0x10   :  { %3324 = vset.pattern.permute.xlu2 %v3637_v3  ;;  %v3208_v34 = vadd.f32 -1.0, %v68_v30  ;;  %s3262_s17 = sld [smem:[#allocation2 + $0x102]] }
  0x11   :  { %3320 = vset.pattern.permute.xlu0 %v3638_v5  ;;  %3322 = vset.pattern.permute.xlu1 %v3638_v5  ;;  %v3207_v31 = vadd.f32 -1.0, %v67_v29  ;;  %s5263_s18 = sld [smem:[#allocation2 + $0x101]] }
  0x12   :  { %142 = vperm.xlu0 %3320, %v46_v0   ;;  %138 = vperm.xlu1 %3322, %v45_v1   ;;  %v3766_v36 = vmul.f32 %v3208_v34, %v72_v32  ;;  %s5269_s19 = sld [smem:[#allocation2 + $0x103]] }
  0x13   :  { %86 = vperm.xlu2 %3324, %v44_v4   ;;  %v3764_v35 = vmul.f32 %v3207_v31, %v72_v32  ;;  %s5273_s3 = sld [smem:[#allocation2 + $0x104]] }
  0x14   :  { %v147_v43 = vperm.slane %v3766_v36, 1  ;;  %v148_v44 = vperm.slane %v3766_v36, 5  ;;  %v103_v47 = vperm.slane %v3766_v36, 0  ;;  %v104_v48 = vperm.slane %v3766_v36, 4  ;;  %s6059_s21 = sld [smem:[#allocation2 + $0x181]] }
  0x15   :  { %v101_v39 = vperm.slane %v3764_v35, 0  ;;  %v102_v40 = vperm.slane %v3764_v35, 4  ;;  %v145_v41 = vperm.slane %v3764_v35, 1  ;;  %v146_v42 = vperm.slane %v3764_v35, 5  ;;  %s6075_s1 = sld [smem:[#allocation2 + $0x184]] }
  0x16   :  { %v205_v45 = vperm.slane %v3764_v35, 2  ;;  %v206_v46 = vperm.slane %v3764_v35, 6  ;;  %v207_v50 = vperm.slane %v3766_v36, 2  ;;  %v208_v51 = vperm.slane %v3766_v36, 6 }
  0x17   :  { %v3786_v52 = vperm.slane %v101_v39, 0  ;;  %v3788_v53 = vperm.slane %v102_v40, 0  ;;  %v3790_v54 = vperm.slane %v145_v41, 1  ;;  %v3792_v55 = vperm.slane %v146_v42, 1 }
  0x18   :  { %v3794_v56 = vperm.slane %v147_v43, 1  ;;  %v3796_v57 = vperm.slane %v148_v44, 1  ;;  %v3798_v58 = vperm.slane %v205_v45, 2  ;;  %v3800_v59 = vperm.slane %v206_v46, 2 }
  0x19   :  { %v3802_v60 = vperm.slane %v103_v47, 0  ;;  %v3804_v61 = vperm.slane %v104_v48, 0  ;;  %v265_v62 = vperm.slane %v3764_v35, 3  ;;  %v266_v63 = vperm.slane %v3764_v35, 7 }
  0x1a   :  { %3326 = vset.pattern.permute.xlu0 %v3639_v6  ;;  %134 = vperm.xlu1 %3322, %v44_v4  }
  0x1b   :  { %3325 = vset.pattern.permute.xlu2 %v3636_v2  ;;  %262 = vperm.xlu0 %3326, %v46_v0   ;;  %v3808_v0 = vperm.slane %v207_v50, 2 }
  0x1c   :  { %198 = vperm.xlu2 %3325, %v45_v1  }
  0x22   :  { %3327 = vset.pattern.permute.xlu1 %v3637_v3 }
  0x23   :  { %3331 = vset.pattern.permute.xlu0 %v3636_v2  ;;  %81 = vperm.xlu1 %3327, %v43_v7  }
  0x24   :  { %3328 = vset.pattern.permute.xlu2 %v3638_v5  ;;  %190 = vperm.xlu0 %3331, %v43_v7  }
  0x25   :  { %130 = vperm.xlu2 %3328, %v43_v7  }
  0x2b   :  { %3329 = vset.pattern.permute.xlu1 %v3636_v2 }
  0x2c   :  { %3334 = vset.pattern.permute.xlu0 %v3637_v3  ;;  %194 = vperm.xlu1 %3329, %v44_v4  }
  0x2d   :  { %3330 = vset.pattern.permute.xlu2 %v3639_v6  ;;  %316 = vperm.xlu0 %3334, %v50_v8  }
  0x2e   :  { %258 = vperm.xlu2 %3330, %v45_v1   ;;  %v3810_v1 = vperm.slane %v208_v51, 2 }
  0x34   :  { %3332 = vset.pattern.permute.xlu1 %v3639_v6 }
  0x35   :  { %960 = vperm.xlu0 %3334, %v54_v9   ;;  %254 = vperm.xlu1 %3332, %v44_v4  }
  0x36   :  { %3333 = vset.pattern.permute.xlu2 %v3637_v3 }
  0x37   :  { %326 = vperm.xlu2 %3333, %v52_v10  }
  0x3d   :  { %1599 = vperm.xlu0 %3334, %v59_v11   ;;  %250 = vperm.xlu1 %3332, %v43_v7  }
  0x3f   :  { %321 = vperm.xlu2 %3333, %v51_v12   ;;  %v267_v12 = vperm.slane %v3766_v36, 3 }
  0x41   :  { %v3852_v29 = vperm.slane %v267_v12, 3 }
  0x45   :  { %2238 = vperm.xlu0 %3334, %v64_v13   ;;  %3335 = vset.pattern.permute.xlu1 %v3637_v3  ;;  %v268_v13 = vperm.slane %v3766_v36, 7 }
  0x46   :  { %311 = vperm.xlu1 %3335, %v49_v14  }
  0x47   :  { %667 = vperm.xlu2 %3333, %v48_v15   ;;  %v3854_v30 = vperm.slane %v268_v13, 3 }
  0x4d   :  { %2223 = vperm.xlu0 %3334, %v61_v16  }
  0x4e   :  { %970 = vperm.xlu1 %3335, %v56_v17  }
  0x4f   :  { %965 = vperm.xlu2 %3333, %v55_v18  }
  0x56   :  { %955 = vperm.xlu1 %3335, %v53_v19   ;;  %v3844_v19 = vperm.slane %v265_v62, 3 }
  0x57   :  { %1604 = vperm.xlu2 %3333, %v60_v20   ;;  %v3846_v20 = vperm.slane %v266_v63, 3 }
  0x5e   :  { %1594 = vperm.xlu1 %3335, %v58_v21  }
  0x5f   :  { %1589 = vperm.xlu2 %3333, %v57_v22  }
  0x62   :  { %v3749_v24 = vpop.permute.xlu2 %202 }
  0x63   :  { %6615 = vst [vmem:[#allocation8_spill] sm:$0xff] %v3749_v24  ;;  %v229_v14 = vmul.f32 %v3798_v58, %v3749_v24  ;;  %v230_v15 = vmul.f32 %v3800_v59, %v3749_v24  ;;  %v231_v16 = vmul.f32 %v3808_v0, %v3749_v24  ;;  %v232_v17 = vmul.f32 %v3810_v1, %v3749_v24 }
  0x66   :  { %2233 = vperm.xlu1 %3335, %v63_v23  }
  0x67   :  { %2228 = vperm.xlu2 %3333, %v62_v25  }
  0x6d   :  { %v3754_v26 = vpop.permute.xlu2 %86 }
  0x6e   :  { %6616 = vst [vmem:[#allocation9_spill] sm:$0xff] %v3754_v26 }
  0x76   :  { %v3762_v33 = vpop.permute.xlu2 %198 }
  0x77   :  { %6617 = vst [vmem:[#allocation10_spill] sm:$0xff] %v3762_v33  ;;  %v225_v34 = vmul.f32 %v3798_v58, %v3762_v33  ;;  %v226_v39 = vmul.f32 %v3800_v59, %v3762_v33 }
  0x7b   :  { %v3768_v37 = vpop.permute.xlu1 %91  ;;  %v3770_v38 = vpop.permute.xlu0 %96 }
  0x7c   :  { %6618 = vst [vmem:[#allocation11_spill] sm:$0xff] %v3768_v37  ;;  %v125_v4 = vmul.f32 %v3786_v52, %v3770_v38  ;;  %v126_v5 = vmul.f32 %v3788_v53, %v3770_v38  ;;  %v127_v6 = vmul.f32 %v3802_v60, %v3770_v38  ;;  %v128_v7 = vmul.f32 %v3804_v61, %v3770_v38 }
  0x7d   :  { %6619 = vst [vmem:[#allocation12_spill] sm:$0xff] %v3770_v38  ;;  %v121_v31 = vmul.f32 %v3786_v52, %v3768_v37  ;;  %v122_v32 = vmul.f32 %v3788_v53, %v3768_v37  ;;  %v123_v45 = vmul.f32 %v3802_v60, %v3768_v37  ;;  %v124_v46 = vmul.f32 %v3804_v61, %v3768_v37 }
  0x7f   :  { %v3782_v49 = vpop.permute.xlu2 %130 }
  0x80   :  { %6620 = vst [vmem:[#allocation13_spill] sm:$0xff] %v3782_v49 }
  0x84   :  { %v3812_v2 = vpop.permute.xlu0 %142  ;;  %v3814_v3 = vpop.permute.xlu1 %138 }
  0x85   :  { %6621 = vst [vmem:[#allocation14_spill] sm:$0xff] %v3812_v2  ;;  %v169_v8 = vmul.f32 %v3790_v54, %v3812_v2  ;;  %v170_v9 = vmul.f32 %v3792_v55, %v3812_v2  ;;  %v171_v10 = vmul.f32 %v3794_v56, %v3812_v2  ;;  %v172_v11 = vmul.f32 %v3796_v57, %v3812_v2 }
  0x86   :  { %6622 = vst [vmem:[#allocation15_spill] sm:$0xff] %v3814_v3  ;;  %v165_v21 = vmul.f32 %v3790_v54, %v3814_v3  ;;  %v166_v22 = vmul.f32 %v3792_v55, %v3814_v3  ;;  %v167_v40 = vmul.f32 %v3794_v56, %v3814_v3  ;;  %v168_v41 = vmul.f32 %v3796_v57, %v3814_v3 }
  0x87   :  { %v185_v23 = vadd.f32 %v169_v8, %v125_v4  ;;  %v186_v25 = vadd.f32 %v170_v9, %v126_v5  ;;  %v187_v27 = vadd.f32 %v171_v10, %v127_v6  ;;  %v188_v28 = vadd.f32 %v172_v11, %v128_v7 }
  0x88   :  { %v3842_v18 = vpop.permute.xlu2 %258  ;;  %v181_v43 = vadd.f32 %v165_v21, %v121_v31  ;;  %v182_v44 = vadd.f32 %v166_v22, %v122_v32  ;;  %v183_v7 = vadd.f32 %v167_v40, %v123_v45  ;;  %v227_v8 = vmul.f32 %v3808_v0, %v3762_v33 }
  0x89   :  { %6623 = vst [vmem:[#allocation16_spill] sm:$0xff] %v3842_v18  ;;  %v245_v48 = vadd.f32 %v229_v14, %v185_v23  ;;  %v246_v50 = vadd.f32 %v230_v15, %v186_v25  ;;  %v247_v51 = vadd.f32 %v231_v16, %v187_v27  ;;  %v248_v62 = vadd.f32 %v232_v17, %v188_v28 }
  0x8a   :  { %v184_v9 = vadd.f32 %v168_v41, %v124_v46  ;;  %v228_v10 = vmul.f32 %v3810_v1, %v3762_v33  ;;  %v241_v16 = vadd.f32 %v225_v34, %v181_v43  ;;  %v285_v17 = vmul.f32 %v3844_v19, %v3842_v18 }
  0x8b   :  { %v242_v21 = vadd.f32 %v226_v39, %v182_v44  ;;  %v286_v28 = vmul.f32 %v3846_v20, %v3842_v18  ;;  %v243_v31 = vadd.f32 %v227_v8, %v183_v7  ;;  %v287_v32 = vmul.f32 %v3852_v29, %v3842_v18 }
  0x8c   :  { %v3868_v42 = vpop.permute.xlu1 %134  ;;  %v244_v34 = vadd.f32 %v228_v10, %v184_v9  ;;  %v288_v43 = vmul.f32 %v3854_v30, %v3842_v18  ;;  %v117_v45 = vmul.f32 %v3786_v52, %v3754_v26  ;;  %v118_v46 = vmul.f32 %v3788_v53, %v3754_v26 }
  0x8d   :  { %6624 = vst [vmem:[#allocation17_spill] sm:$0xff] %v3868_v42  ;;  %v3874_v47 = vpop.permute.xlu0 %262  ;;  %v161_v7 = vmul.f32 %v3790_v54, %v3868_v42  ;;  %v162_v8 = vmul.f32 %v3792_v55, %v3868_v42  ;;  %v163_v10 = vmul.f32 %v3794_v56, %v3868_v42 }
  0x8e   :  { %6625 = vst [vmem:[#allocation18_spill] sm:$0xff] %v3874_v47  ;;  %v289_v63 = vmul.f32 %v3844_v19, %v3874_v47  ;;  %v290_v4 = vmul.f32 %v3846_v20, %v3874_v47  ;;  %v291_v5 = vmul.f32 %v3852_v29, %v3874_v47  ;;  %v292_v6 = vmul.f32 %v3854_v30, %v3874_v47 }
  0x90   :  { %v305_v11 = vadd.f32 %v289_v63, %v245_v48  ;;  %v306_v12 = vadd.f32 %v290_v4, %v246_v50  ;;  %v307_v13 = vadd.f32 %v291_v5, %v247_v51  ;;  %v308_v14 = vadd.f32 %v292_v6, %v248_v62 }
  0x91   :  { %v327_v15 = vpop.permute.xlu2 %326  ;;  %v301_v50 = vadd.f32 %v285_v17, %v241_v16  ;;  %v119_v51 = vmul.f32 %v3802_v60, %v3754_v26  ;;  %v120_v62 = vmul.f32 %v3804_v61, %v3754_v26  ;;  %v302_v63 = vadd.f32 %v286_v28, %v242_v21 }
  0x92   :  { %v3890_v22 = vadd.f32 %v327_v15, %v305_v11  ;;  %v3892_v23 = vadd.f32 %v327_v15, %v306_v12  ;;  %v3894_v25 = vadd.f32 %v327_v15, %v307_v13  ;;  %v3896_v27 = vadd.f32 %v327_v15, %v308_v14 }
  0x93   :  { %v303_v4 = vadd.f32 %v287_v32, %v243_v31  ;;  %v160_v5 = vmul.f32 %v3796_v57, %v3782_v49  ;;  %v304_v6 = vadd.f32 %v288_v43, %v244_v34  ;;  %v157_v11 = vmul.f32 %v3790_v54, %v3782_v49 }
  0x94   :  { %v3225_v40 = vmul.f32 -1.442695, %v3890_v22  ;;  %v3226_v39 = vmul.f32 -1.442695, %v3892_v23  ;;  %v3227_v41 = vmul.f32 -1.442695, %v3894_v25  ;;  %v158_v17 = vmul.f32 %v3792_v55, %v3782_v49 }
  0x95   :  { %v3228_v44 = vmul.f32 -1.442695, %v3896_v27  ;;  %v3912_v48 = vpop.permute.xlu1 %81  ;;  %v3949_v34 = vadd.f32 %v161_v7, %v117_v45  ;;  %v164_v55 = vmul.f32 %v3796_v57, %v3868_v42 }
  0x96   :  { %6626 = vst [vmem:[#allocation19_spill] sm:$0xff] %v3912_v48  ;;  %3336 = vpow2.f32 %v3225_v40  ;;  %v116_v12 = vmul.f32 %v3804_v61, %v3912_v48  ;;  %v3930_v13 = vpop.permute.xlu0 %190  ;;  %v113_v16 = vmul.f32 %v3786_v52, %v3912_v48  ;;  %v114_v21 = vmul.f32 %v3788_v53, %v3912_v48 }
  0x97   :  { %3338 = vpow2.f32 %v3226_v39  ;;  %6627 = vst [vmem:[#allocation20_spill] sm:$0xff] %v3930_v13  ;;  %v115_v54 = vmul.f32 %v3802_v60, %v3912_v48  ;;  %v159_v61 = vmul.f32 %v3794_v56, %v3782_v49  ;;  %v3951_v52 = vadd.f32 %v162_v8, %v118_v46 }
  0x98   :  { %3340 = vpow2.f32 %v3227_v41  ;;  %v3946_v28 = vadd.f32 %v160_v5, %v116_v12  ;;  %v3957_v39 = vadd.f32 %v163_v10, %v119_v51  ;;  %v217_v56 = vmul.f32 %v3798_v58, %v3930_v13 }
  0x99   :  { %v322_v9 = vpop.permute.xlu2 %321  ;;  %3342 = vpow2.f32 %v3228_v44  ;;  %v218_v60 = vmul.f32 %v3800_v59, %v3930_v13  ;;  %v173_v45 = vadd.f32 %v157_v11, %v113_v16  ;;  %v174_v57 = vadd.f32 %v158_v17, %v114_v21 }
  0x9a   :  { %v3932_v14 = vadd.f32 %v322_v9, %v301_v50  ;;  %v3934_v15 = vadd.f32 %v322_v9, %v302_v63  ;;  %v175_v50 = vadd.f32 %v159_v61, %v115_v54  ;;  %v219_v51 = vmul.f32 %v3808_v0, %v3930_v13 }
  0x9b   :  { %v3972_v5 = vadd.f32 %v322_v9, %v303_v4  ;;  %v3974_v7 = vadd.f32 %v322_v9, %v304_v6  ;;  %v3976_v8 = vadd.f32 %v164_v55, %v120_v62  ;;  %v3985_v16 = vmul.f32 %v3810_v1, %v3930_v13 }
  0x9c   :  { %v3337_v31 = vpop.eup %3336  ;;  %v3221_v32 = vmul.f32 -1.442695, %v3932_v14  ;;  %v3222_v44 = vmul.f32 -1.442695, %v3934_v15  ;;  %v3989_v4 = vadd.f32 %v217_v56, %v173_v45  ;;  %v3993_v6 = vadd.f32 %v218_v60, %v174_v57 }
  0x9d   :  { %v3339_v40 = vpop.eup %3338  ;;  %v3955_v53 = vadd.f32 1.0, %v3337_v31  ;;  %v3995_v9 = vadd.f32 %v219_v51, %v175_v50  ;;  %v3223_v31 = vmul.f32 -1.442695, %v3972_v5 }
  0x9e   :  { %v3341_v41 = vpop.eup %3340  ;;  %v3963_v43 = vadd.f32 1.0, %v3339_v40  ;;  %3344 = vpow2.f32 %v3221_v32  ;;  %v3969_v63 = vpop.permute.xlu1 %194  ;;  %v3224_v32 = vmul.f32 -1.442695, %v3974_v7 }
  0x9f   :  { %v3343_v46 = vpop.eup %3342  ;;  %3346 = vrcp.f32 %v3955_v53  ;;  %v600_v10 = vand.u32 2147483648, %v3955_v53  ;;  %v3979_v11 = vadd.f32 1.0, %v3341_v41  ;;  %v598_v17 = vand.u32 2147483647, %v3955_v53 }
  0xa0   :  { %3348 = vrcp.f32 %v3963_v43  ;;  %v3981_v12 = vadd.f32 1.0, %v3343_v46  ;;  %v615_v21 = vand.u32 2147483648, %v3963_v43  ;;  %v613_v62 = vand.u32 2147483647, %v3963_v43 }
  0xa1   :  { %3350 = vpow2.f32 %v3222_v44  ;;  %v630_v61 = vand.u32 2147483648, %v3979_v11  ;;  %vm594_vm0 = vweird.f32 %v3955_v53  ;;  %v601_v40 = vor.u32 1.1754944e-38, %v600_v10 }
  0xa2   :  { %3352 = vrcp.f32 %v3979_v11  ;;  %vm609_vm1 = vweird.f32 %v3963_v43  ;;  %vm4006_vm2 = vcmp.eq.f32.partialorder %v598_v17, 8.507059e+37  ;;  %v616_v45 = vor.u32 1.1754944e-38, %v615_v21 }
  0xa3   :  { %3354 = vrcp.f32 %v3981_v12  ;;  %v628_v46 = vand.u32 2147483647, %v3979_v11  ;;  %v645_v57 = vand.u32 2147483648, %v3981_v12  ;;  %vm4013_vm3 = vcmp.eq.f32.partialorder %v613_v62, 8.507059e+37 }
  0xa4   :  { %v3345_v54 = vpop.eup %3344  ;;  %v643_v10 = vand.u32 2147483647, %v3981_v12  ;;  %v221_v17 = vmul.f32 %v3798_v58, %v3969_v63  ;;  %vm624_vm4 = vweird.f32 %v3979_v11  ;;  %v631_v21 = vor.u32 1.1754944e-38, %v630_v61 }
  0xa5   :  { %v3347_v55 = vpop.eup %3346  ;;  %v4003_v56 = vadd.f32 1.0, %v3345_v54  ;;  %vm639_vm6 = vweird.f32 %v3981_v12  ;;  %vm4028_vm7 = vcmp.eq.f32.partialorder %v628_v46, 8.507059e+37  ;;  %v646_v61 = vor.u32 1.1754944e-38, %v645_v57 }
  0xa6   :  { %v3349_v60 = vpop.eup %3348  ;;  %v590_v41 = vmul.f32 %v3347_v55, %v3955_v53  ;;  %vm595_vm5 = vweird.f32 %v3347_v55  ;;  %vm4034_vm9 = vcmp.eq.f32.partialorder %v643_v10, 8.507059e+37  ;;  %v237_v46 = vadd.f32 %v221_v17, %v3949_v34 }
  0xa7   :  { %v605_v50 = vmul.f32 %v3349_v60, %v3963_v43  ;;  %3356 = vrcp.f32 %v4003_v56  ;;  %v3351_v54 = vpop.eup %3350  ;;  %v4025_v26 = vpop.permute.xlu1 %254  ;;  %vm610_vm8 = vweird.f32 %v3349_v60  ;;  %vm534_vm10 = vweird.f32 %v4003_v56  ;;  %vm596_vm11 = vmor %vm594_vm0, %vm595_vm5 }
  0xa8   :  { %v591_v13 = vsub.f32 1.0, %v590_v41  ;;  %3358 = vpow2.f32 %v3223_v31  ;;  %v3353_v49 = vpop.eup %3352  ;;  %v4023_v62 = vadd.f32 1.0, %v3351_v54  ;;  %v538_v31 = vand.u32 2147483647, %v4003_v56  ;;  %vm611_vm13 = vmor %vm609_vm1, %vm610_vm8 }
  0xa9   :  { %v606_v48 = vsub.f32 1.0, %v605_v50  ;;  %3360 = vpow2.f32 %v3224_v32  ;;  %v3355_v42 = vpop.eup %3354  ;;  %v620_v58 = vmul.f32 %v3353_v49, %v3979_v11  ;;  %v540_v32 = vand.u32 2147483648, %v4003_v56 }
  0xaa   :  { %v592_v18 = vmul.f32 %v3347_v55, %v591_v13  ;;  %v635_v50 = vmul.f32 %v3355_v42, %v3981_v12  ;;  %3362 = vrcp.f32 %v4023_v62  ;;  %vm625_vm12 = vweird.f32 %v3353_v49 }
  0xab   :  { %v607_v33 = vmul.f32 %v3349_v60, %v606_v48  ;;  %v621_v3 = vsub.f32 1.0, %v620_v58  ;;  %v281_v37 = vmul.f32 %v3844_v19, %v4025_v26  ;;  %vm640_vm14 = vweird.f32 %v3355_v42  ;;  %vm626_vm0 = vmor %vm624_vm4, %vm625_vm12 }
  0xac   :  { %v593_v13 = vadd.f32 %v3347_v55, %v592_v18  ;;  %v636_v10 = vsub.f32 1.0, %v635_v50  ;;  %vm4051_vm15 = vcmp.eq.f32.partialorder %v538_v31, 8.507059e+37  ;;  %vm641_vm1 = vmor %vm639_vm6, %vm640_vm14  ;;  %v541_v12 = vor.u32 1.1754944e-38, %v540_v32 }
  0xad   :  { %v3357_v57 = vpop.eup %3356  ;;  %v608_v48 = vadd.f32 %v3349_v60, %v607_v33  ;;  %v622_v58 = vmul.f32 %v3353_v49, %v621_v3  ;;  %vm549_vm4 = vweird.f32 %v4023_v62  ;;  %v222_v17 = vmul.f32 %v3800_v59, %v3969_v63 }
  0xae   :  { %v3359_v47 = vpop.eup %3358  ;;  %v597_v18 = vsel %vm596_vm11, %v3347_v55, %v593_v13  ;;  %v530_v34 = vmul.f32 %v3357_v57, %v4003_v56  ;;  %v637_v24 = vmul.f32 %v3355_v42, %v636_v10  ;;  %v553_v55 = vand.u32 2147483647, %v4023_v62 }
  0xaf   :  { %v3361_v33 = vpop.eup %3360  ;;  %v602_v53 = vsel %vm4006_vm2, %v601_v40, %v597_v18  ;;  %v612_v50 = vsel %vm611_vm13, %v3349_v60, %v608_v48  ;;  %v623_v43 = vadd.f32 %v3353_v49, %v622_v58  ;;  %v555_v40 = vand.u32 2147483648, %v4023_v62 }
  0xb0   :  { %v661_v13 = vmul.f32 %v602_v53, %v3890_v22  ;;  %v617_v3 = vsel %vm4013_vm3, %v616_v45, %v612_v50  ;;  %v531_v2 = vsub.f32 1.0, %v530_v34  ;;  %v638_v38 = vadd.f32 %v3355_v42, %v637_v24  ;;  %v3363_v44 = vpop.eup %3362 }
  0xb1   :  { %v662_v31 = vmul.f32 %v617_v3, %v3892_v23  ;;  %v4066_v60 = vadd.f32 1.0, %v3359_v47  ;;  %v627_v48 = vsel %vm626_vm0, %v3353_v49, %v623_v43  ;;  %vm535_vm2 = vweird.f32 %v3357_v57 }
  0xb2   :  { %686 = vmatpush.msra.mxu0 %v661_v13  ;;  %v532_v22 = vmul.f32 %v3357_v57, %v531_v2  ;;  %v4071_v45 = vadd.f32 1.0, %v3361_v33  ;;  %v632_v23 = vsel %vm4028_vm7, %v631_v21, %v627_v48  ;;  %v642_v24 = vsel %vm641_vm1, %v3355_v42, %v638_v38  ;;  %vm536_vm3 = vmor %vm534_vm10, %vm535_vm2  ;;  %v4084_v38 = vpop.permute.xlu1 %250 }
  0xb3   :  { %706 = vmatpush.msra.mxu1 %v662_v31  ;;  %v545_v11 = vmul.f32 %v3363_v44, %v4023_v62  ;;  %v297_v47 = vadd.f32 %v281_v37, %v237_v46  ;;  %v663_v51 = vmul.f32 %v632_v23, %v3894_v25  ;;  %v647_v49 = vsel %vm4034_vm9, %v646_v61, %v642_v24 }
  0xb4   :  { %v533_v10 = vadd.f32 %v3357_v57, %v532_v22  ;;  %3364 = vrcp.f32 %v4066_v60  ;;  %v664_v2 = vmul.f32 %v647_v49, %v3896_v27  ;;  %6638 = vst [vmem:[#allocation21_spill] sm:$0xff] %v4084_v38  ;;  %vm4086_vm5 = vcmp.eq.f32.partialorder %v553_v55, 8.507059e+37  ;;  %v317_v27 = vpop.permute.xlu0 %316 }
  0xb5   :  { %v546_v41 = vsub.f32 1.0, %v545_v11  ;;  %726 = vmatpush.msra.mxu2 %v663_v51  ;;  %v570_v25 = vand.u32 2147483648, %v4066_v60  ;;  %3366 = vrcp.f32 %v4071_v45  ;;  %vm550_vm6 = vweird.f32 %v3363_v44 }
  0xb6   :  { %v537_v37 = vsel %vm536_vm3, %v3357_v57, %v533_v10  ;;  %746 = vmatpush.msra.mxu3 %v664_v2  ;;  %v568_v61 = vand.u32 2147483647, %v4066_v60  ;;  %v556_v32 = vor.u32 1.1754944e-38, %v555_v40  ;;  %v585_v46 = vand.u32 2147483648, %v4071_v45  ;;  %vm551_vm8 = vmor %vm549_vm4, %vm550_vm6 }
  0xb7   :  { %v542_v56 = vsel %vm4051_vm15, %v541_v12, %v537_v37  ;;  %v547_v21 = vmul.f32 %v3363_v44, %v546_v41  ;;  %v4097_v57 = vadd.f32 %v317_v27, %v297_v47  ;;  %vm564_vm7 = vweird.f32 %v4066_v60 }
  0xb8   :  { %v657_v54 = vmul.f32 %v542_v56, %v3932_v14  ;;  %v571_v58 = vor.u32 1.1754944e-38, %v570_v25  ;;  %v583_v34 = vand.u32 2147483647, %v4071_v45  ;;  %v282_v53 = vmul.f32 %v3846_v20, %v4025_v26 }
  0xb9   :  { %v548_v18 = vadd.f32 %v3363_v44, %v547_v21  ;;  %v3217_v14 = vmul.f32 -1.442695, %v4097_v57  ;;  %v223_v50 = vmul.f32 %v3808_v0, %v3969_v63  ;;  %v283_v55 = vmul.f32 %v3852_v29, %v4025_v26 }
  0xba   :  { %v3365_v33 = vpop.eup %3364  ;;  %687 = vmatpush.msra.mxu0 %v657_v54  ;;  %vm4113_vm9 = vcmp.eq.f32.partialorder %v568_v61, 8.507059e+37  ;;  %vm579_vm10 = vweird.f32 %v4071_v45  ;;  %v586_v62 = vor.u32 1.1754944e-38, %v585_v46  ;;  %v238_v43 = vadd.f32 %v222_v17, %v3951_v52 }
  0xbb   :  { %v552_v13 = vsel %vm551_vm8, %v3363_v44, %v548_v18  ;;  %v560_v3 = vmul.f32 %v3365_v33, %v4066_v60  ;;  %v3367_v31 = vpop.eup %3366  ;;  %3368 = vpow2.f32 %v3217_v14  ;;  %v239_v0 = vadd.f32 %v223_v50, %v3957_v39 }
  0xbc   :  { %v557_v40 = vsel %vm4086_vm5, %v556_v32, %v552_v13  ;;  %v224_v44 = vmul.f32 %v3810_v1, %v3969_v63  ;;  %vm565_vm11 = vweird.f32 %v3365_v33  ;;  %v575_v23 = vmul.f32 %v3367_v31, %v4071_v45 }
  0xbd   :  { %v658_v48 = vmul.f32 %v557_v40, %v3934_v15  ;;  %v561_v22 = vsub.f32 1.0, %v560_v3  ;;  %v298_v24 = vadd.f32 %v282_v53, %v238_v43  ;;  %v299_v11 = vadd.f32 %v283_v55, %v239_v0  ;;  %v312_v15 = vpop.permute.xlu1 %311  ;;  %vm566_vm13 = vmor %vm564_vm7, %vm565_vm11 }
  0xbe   :  { %v240_v52 = vadd.f32 %v224_v44, %v3976_v8  ;;  %v284_v47 = vmul.f32 %v3854_v30, %v4025_v26  ;;  %v576_v49 = vsub.f32 1.0, %v575_v23  ;;  %v277_v39 = vmul.f32 %v3844_v19, %v4084_v38 }
  0xbf   :  { %707 = vmatpush.msra.mxu1 %v658_v48  ;;  %v562_v51 = vmul.f32 %v3365_v33, %v561_v22  ;;  %v278_v1 = vmul.f32 %v3846_v20, %v4084_v38  ;;  %vm580_vm12 = vweird.f32 %v3367_v31  ;;  %v4133_v10 = vadd.f32 %v317_v27, %v298_v24 }
  0xc0   :  { %v4135_v2 = vadd.f32 %v317_v27, %v299_v11  ;;  %v300_v12 = vadd.f32 %v284_v47, %v240_v52  ;;  %v577_v41 = vmul.f32 %v3367_v31, %v576_v49  ;;  %v293_v37 = vadd.f32 %v277_v39, %v3989_v4  ;;  %vm581_vm14 = vmor %vm579_vm10, %vm580_vm12 }
  0xc1   :  { %v563_v8 = vadd.f32 %v3365_v33, %v562_v51  ;;  %v279_v42 = vmul.f32 %v3852_v29, %v4084_v38  ;;  %v3369_v25 = vpop.eup %3368  ;;  %v3218_v19 = vmul.f32 -1.442695, %v4133_v10  ;;  %v294_v21 = vadd.f32 %v278_v1, %v3993_v6 }
  0xc2   :  { %v3219_v20 = vmul.f32 -1.442695, %v4135_v2  ;;  %v4145_v56 = vadd.f32 %v317_v27, %v300_v12  ;;  %v578_v54 = vadd.f32 %v3367_v31, %v577_v41  ;;  %v397_v32 = vadd.f32 1.0, %v3369_v25 }
  0xc3   :  { %v567_v61 = vsel %vm566_vm13, %v3365_v33, %v563_v8  ;;  %v4148_v4 = vadd.f32 %v312_v15, %v293_v37  ;;  %3370 = vpow2.f32 %v3218_v19  ;;  %v4156_v46 = vadd.f32 %v312_v15, %v294_v21 }
  0xc4   :  { %v572_v29 = vsel %vm4113_vm9, %v571_v58, %v567_v61  ;;  %v3220_v60 = vmul.f32 -1.442695, %v4145_v56  ;;  %v582_v6 = vsel %vm581_vm14, %v3367_v31, %v578_v54  ;;  %vm584_vm15 = vcmp.eq.f32.partialorder %v583_v34, 8.507059e+37 }
  0xc5   :  { %v659_v27 = vmul.f32 %v572_v29, %v3972_v5  ;;  %3372 = vrcp.f32 %v397_v32  ;;  %v587_v18 = vsel %vm584_vm15, %v586_v62, %v582_v6  ;;  %v295_v17 = vadd.f32 %v279_v42, %v3995_v9 }
  0xc6   :  { %3374 = vpow2.f32 %v3219_v20  ;;  %v660_v58 = vmul.f32 %v587_v18, %v3974_v7  ;;  %v3213_v45 = vmul.f32 -1.442695, %v4148_v4  ;;  %v3214_v33 = vmul.f32 -1.442695, %v4156_v46 }
  0xc7   :  { %727 = vmatpush.msra.mxu2 %v659_v27  ;;  %3376 = vpow2.f32 %v3220_v60  ;;  %v4163_v14 = vadd.f32 %v312_v15, %v295_v17  ;;  %v236_v5 = vadd.f32 %v3985_v16, %v3946_v28  ;;  %v280_v34 = vmul.f32 %v3854_v30, %v4084_v38 }
  0xc8   :  { %747 = vmatpush.msra.mxu3 %v660_v58  ;;  %3378 = vpow2.f32 %v3213_v45  ;;  %v478_v62 = vand.u32 2147483647, %v397_v32  ;;  %v480_v16 = vand.u32 2147483648, %v397_v32  ;;  %vm474_vm1 = vweird.f32 %v397_v32 }
  0xc9   :  { %v3371_v53 = vpop.eup %3370  ;;  %3380 = vpow2.f32 %v3214_v33  ;;  %v3215_v9 = vmul.f32 -1.442695, %v4163_v14  ;;  %v296_v7 = vadd.f32 %v280_v34, %v236_v5 }
  0xca   :  { %v4170_v55 = vadd.f32 1.0, %v3371_v53  ;;  %vm479_vm2 = vcmp.eq.f32.partialorder %v478_v62, 8.507059e+37  ;;  %v481_v11 = vor.u32 1.1754944e-38, %v480_v16 }
  0xcb   :  { %v3373_v50 = vpop.eup %3372  ;;  %3382 = vpow2.f32 %v3215_v9  ;;  %v4177_v40 = vadd.f32 %v312_v15, %v296_v7 }
  0xcc   :  { %v3375_v13 = vpop.eup %3374  ;;  %v470_v3 = vmul.f32 %v3373_v50, %v397_v32  ;;  %3384 = vrcp.f32 %v4170_v55  ;;  %vm475_vm0 = vweird.f32 %v3373_v50  ;;  %v493_v48 = vand.u32 2147483647, %v4170_v55 }
  0xcd   :  { %v3377_v59 = vpop.eup %3376  ;;  %v4173_v30 = vadd.f32 1.0, %v3375_v13  ;;  %v495_v22 = vand.u32 2147483648, %v4170_v55  ;;  %vm476_vm3 = vmor %vm474_vm1, %vm475_vm0  ;;  %vm489_vm4 = vweird.f32 %v4170_v55  ;;  %v3216_v39 = vmul.f32 -1.442695, %v4177_v40 }
  0xce   :  { %v471_v28 = vsub.f32 1.0, %v470_v3  ;;  %v4175_v43 = vadd.f32 1.0, %v3377_v59  ;;  %v3379_v31 = vpop.eup %3378  ;;  %vm4192_vm5 = vcmp.eq.f32.partialorder %v493_v48, 8.507059e+37  ;;  %v754_v3 = vstv %s3209_s30 }
  0xcf   :  { %v3381_v0 = vpop.eup %3380  ;;  %3386 = vrcp.f32 %v4173_v30  ;;  %v4183_v52 = vadd.f32 1.0, %v3379_v31  ;;  %v508_v51 = vand.u32 2147483647, %v4173_v30  ;;  %v496_v8 = vor.u32 1.1754944e-38, %v495_v22 }
  0xd0   :  { %v472_v44 = vmul.f32 %v3373_v50, %v471_v28  ;;  %3388 = vrcp.f32 %v4175_v43  ;;  %v4188_v49 = vadd.f32 1.0, %v3381_v0  ;;  %v510_v41 = vand.u32 2147483648, %v4173_v30 }
  0xd1   :  { %v3383_v23 = vpop.eup %3382  ;;  %v523_v42 = vand.u32 2147483647, %v4175_v43  ;;  %3390 = vrcp.f32 %v4183_v52  ;;  %v525_v61 = vand.u32 2147483648, %v4175_v43  ;;  %vm504_vm6 = vweird.f32 %v4173_v30 }
  0xd2   :  { %v473_v24 = vadd.f32 %v3373_v50, %v472_v44  ;;  %v3385_v47 = vpop.eup %3384  ;;  %v4199_v25 = vadd.f32 1.0, %v3383_v23  ;;  %3392 = vrcp.f32 %v4188_v49  ;;  %vm4206_vm7 = vcmp.eq.f32.partialorder %v508_v51, 8.507059e+37 }
  0xd3   :  { %v485_v15 = vmul.f32 %v3385_v47, %v4170_v55  ;;  %vm519_vm8 = vweird.f32 %v4175_v43  ;;  %vm490_vm9 = vweird.f32 %v3385_v47  ;;  %v418_v27 = vand.u32 2147483647, %v4183_v52 }
  0xd4   :  { %v477_v1 = vsel %vm476_vm3, %v3373_v50, %v473_v24  ;;  %v511_v18 = vor.u32 1.1754944e-38, %v510_v41  ;;  %vm4213_vm10 = vcmp.eq.f32.partialorder %v523_v42, 8.507059e+37  ;;  %3394 = vrcp.f32 %v4199_v25  ;;  %vm491_vm12 = vmor %vm489_vm4, %vm490_vm9 }
  0xd5   :  { %v482_v37 = vsel %vm479_vm2, %v481_v11, %v477_v1  ;;  %v3387_v19 = vpop.eup %3386  ;;  %v486_v21 = vsub.f32 1.0, %v485_v15  ;;  %v526_v33 = vor.u32 1.1754944e-38, %v525_v61  ;;  %vm414_vm11 = vweird.f32 %v4183_v52 }
  0xd6   :  { %v653_v20 = vmul.f32 %v482_v37, %v4097_v57  ;;  %v3389_v54 = vpop.eup %3388  ;;  %v500_v32 = vmul.f32 %v3387_v19, %v4173_v30  ;;  %vm505_vm13 = vweird.f32 %v3387_v19  ;;  %v420_v53 = vand.u32 2147483648, %v4183_v52 }
  0xd7   :  { %v487_v60 = vmul.f32 %v3385_v47, %v486_v21  ;;  %v515_v57 = vmul.f32 %v3389_v54, %v4175_v43  ;;  %v3391_v5 = vpop.eup %3390  ;;  %vm429_vm14 = vweird.f32 %v4188_v49  ;;  %vm520_vm15 = vweird.f32 %v3389_v54  ;;  %vm506_vm1 = vmor %vm504_vm6, %vm505_vm13 }
  0xd8   :  { %688 = vmatpush.msra.mxu0 %v653_v20  ;;  %v501_v6 = vsub.f32 1.0, %v500_v32  ;;  %v3393_v9 = vpop.eup %3392  ;;  %v410_v13 = vmul.f32 %v3391_v5, %v4183_v52  ;;  %vm4224_vm0 = vcmp.eq.f32.partialorder %v418_v27, 8.507059e+37  ;;  %v433_v28 = vand.u32 2147483647, %v4188_v49  ;;  %vm521_vm2 = vmor %vm519_vm8, %vm520_vm15 }
  0xd9   :  { %v488_v58 = vadd.f32 %v3385_v47, %v487_v60  ;;  %v516_v45 = vsub.f32 1.0, %v515_v57  ;;  %v425_v62 = vmul.f32 %v3393_v9, %v4188_v49  ;;  %v435_v44 = vand.u32 2147483648, %v4188_v49  ;;  %v4259_v49 = vld [vmem:[%s6572_s4] sm:$0xf] }
  0xda   :  { %v502_v34 = vmul.f32 %v3387_v19, %v501_v6  ;;  %v411_v0 = vsub.f32 1.0, %v410_v13  ;;  %v3395_v48 = vpop.eup %3394  ;;  %vm415_vm3 = vweird.f32 %v3391_v5  ;;  %3396 = vpow2.f32 %v3216_v39 }
  0xdb   :  { %v492_v7 = vsel %vm491_vm12, %v3385_v47, %v488_v58  ;;  %v517_v50 = vmul.f32 %v3389_v54, %v516_v45  ;;  %v426_v23 = vsub.f32 1.0, %v425_v62  ;;  %v440_v30 = vmul.f32 %v3395_v48, %v4199_v25 }
  0xdc   :  { %v497_v55 = vsel %vm4192_vm5, %v496_v8, %v492_v7  ;;  %v503_v59 = vadd.f32 %v3387_v19, %v502_v34  ;;  %v412_v11 = vmul.f32 %v3391_v5, %v411_v0  ;;  %vm430_vm4 = vweird.f32 %v3393_v9  ;;  %vm416_vm5 = vmor %vm414_vm11, %vm415_vm3 }
  0xdd   :  { %v654_v16 = vmul.f32 %v497_v55, %v4133_v10  ;;  %v518_v31 = vadd.f32 %v3389_v54, %v517_v50  ;;  %v427_v1 = vmul.f32 %v3393_v9, %v426_v23  ;;  %v421_v12 = vor.u32 1.1754944e-38, %v420_v53 }
  0xde   :  { %v507_v22 = vsel %vm506_vm1, %v3387_v19, %v503_v59  ;;  %v413_v15 = vadd.f32 %v3391_v5, %v412_v11  ;;  %v441_v39 = vsub.f32 1.0, %v440_v30  ;;  %vm444_vm6 = vweird.f32 %v4199_v25 }
  0xdf   :  { %708 = vmatpush.msra.mxu1 %v654_v16  ;;  %v512_v24 = vsel %vm4206_vm7, %v511_v18, %v507_v22  ;;  %v522_v10 = vsel %vm521_vm2, %v3389_v54, %v518_v31  ;;  %v428_v8 = vadd.f32 %v3393_v9, %v427_v1  ;;  %v450_v41 = vand.u32 2147483648, %v4199_v25  ;;  %vm431_vm7 = vmor %vm429_vm14, %vm430_vm4 }
  0xe0   :  { %v655_v47 = vmul.f32 %v512_v24, %v4135_v2  ;;  %v527_v51 = vsel %vm4213_vm10, %v526_v33, %v522_v10  ;;  %v448_v2 = vand.u32 2147483647, %v4199_v25  ;;  %v417_v37 = vsel %vm416_vm5, %v3391_v5, %v413_v15  ;;  %v3397_v19 = vpop.eup %3396 }
  0xe1   :  { %v656_v43 = vmul.f32 %v527_v51, %v4145_v56  ;;  %v436_v56 = vor.u32 1.1754944e-38, %v435_v44  ;;  %v442_v42 = vmul.f32 %v3395_v48, %v441_v39  ;;  %vm445_vm8 = vweird.f32 %v3395_v48 }
  0xe2   :  { %728 = vmatpush.msra.mxu2 %v655_v47  ;;  %v422_v52 = vsel %vm4224_vm0, %v421_v12, %v417_v37  ;;  %v432_v20 = vsel %vm431_vm7, %v3393_v9, %v428_v8  ;;  %vm434_vm9 = vcmp.eq.f32.partialorder %v433_v28, 8.507059e+37  ;;  %vm6612_vm10 = vcmask 261120   ;;  %vm446_vm11 = vmor %vm444_vm6, %vm445_vm8  ;;  %v4276_v9 = vpop.permute.xlu2 %667 }
  0xe3   :  { %748 = vmatpush.msra.mxu3 %v656_v43  ;;  %v649_v21 = vmul.f32 %v422_v52, %v4148_v4  ;;  %v437_v61 = vsel %vm434_vm9, %v436_v56, %v432_v20  ;;  %v443_v54 = vadd.f32 %v3395_v48, %v442_v42  ;;  %v396_v32 = vadd.f32 1.0, %v3397_v19  ;;  %6651 = vst [vmem:[#allocation22_spill] sm:$0xff] %v4276_v9 }
  0xe4   :  { %v650_v29 = vmul.f32 %v437_v61, %v4156_v46  ;;  %v451_v60 = vor.u32 1.1754944e-38, %v450_v41  ;;  %vm449_vm12 = vcmp.eq.f32.partialorder %v448_v2, 8.507059e+37  ;;  %v4278_v7 = vstv %s3210_s29 }
  0xe5   :  { %689 = vmatpush.msra.mxu0 %v649_v21  ;;  %v447_v57 = vsel %vm446_vm11, %v3395_v48, %v443_v54  ;;  %3398 = vrcp.f32 %v396_v32  ;;  %v465_v18 = vand.u32 2147483648, %v396_v32  ;;  %v463_v58 = vand.u32 2147483647, %v396_v32  ;;  %v6653_v21 = vld [vmem:[#allocation12_spill] sm:$0xff]  ;;  %v6654_v54 = vld [vmem:[#allocation14_spill] sm:$0xff] }
  0xe6   :  { %709 = vmatpush.msra.mxu1 %v650_v29  ;;  %v452_v4 = vsel %vm449_vm12, %v451_v60, %v447_v57  ;;  %3229 = vmatmul.msk.f32.vlgmr.msra.gmra.mxu0 %vm6612_vm10, %v4259_v49  ;;  %vm459_vm14 = vweird.f32 %v396_v32  ;;  %v755_v59 = vmul.f32 %v754_v3, %v3764_v35  ;;  %vm6611_vm1 = vcmask 1043456   ;;  %v6655_v29 = vld [vmem:[#allocation8_spill] sm:$0xff]  ;;  %v6656_v57 = vld [vmem:[#allocation18_spill] sm:$0xff] }
  0xe7   :  { %v651_v27 = vmul.f32 %v452_v4, %v4163_v14  ;;  %3230 = vmatmul.msk.f32.vlgmr.msra.gmra.mxu1 %vm6612_vm10, %v4259_v49  ;;  %v466_v33 = vor.u32 1.1754944e-38, %v465_v18  ;;  %vm464_vm0 = vcmp.eq.f32.partialorder %v463_v58, 8.507059e+37  ;;  %v782_v31 = vstv %s4274_s9 }
  0xe8   :  { %v779_v44 = vstv %s4281_s10  ;;  %v783_v23 = vmul.f32 %v782_v31, %v3764_v35  ;;  %v4302_v47 = vmul.f32 %v754_v3, %v3766_v36  ;;  %s6084_s10 = sld [smem:[#allocation2 + $0x183]] }
  0xe9   :  { %729 = vmatpush.msra.mxu2 %v651_v27 }
  0xea   :  { %3231 = vmatmul.msk.f32.vlgmr.msra.gmra.mxu2 %vm6612_vm10, %v4259_v49 }
  0xeb   :  { %v3399_v46 = vpop.eup %3398 }
  0xec   :  { %v455_v25 = vmul.f32 %v3399_v46, %v396_v32  ;;  %vm460_vm13 = vweird.f32 %v3399_v46 }
  0xed   :  { %vm461_vm15 = vmor %vm459_vm14, %vm460_vm13 }
  0xee   :  { %v456_v6 = vsub.f32 1.0, %v455_v25 }
  0xf0   :  { %v457_v17 = vmul.f32 %v3399_v46, %v456_v6 }
  0xf2   :  { %v458_v45 = vadd.f32 %v3399_v46, %v457_v17  ;;  %v6657_v17 = vld [vmem:[#allocation11_spill] sm:$0xff] }
  0xf4   :  { %v462_v5 = vsel %vm461_vm15, %v3399_v46, %v458_v45  ;;  %v6658_v45 = vld [vmem:[#allocation15_spill] sm:$0xff] }
  0xf5   :  { %v467_v14 = vsel %vm464_vm0, %v466_v33, %v462_v5  ;;  %v6659_v5 = vld [vmem:[#allocation10_spill] sm:$0xff] }
  0xf6   :  { %v652_v34 = vmul.f32 %v467_v14, %v4177_v40 }
  0xf8   :  { %749 = vmatpush.msra.mxu3 %v652_v34 }
  0xf9   :  { %3232 = vmatmul.msk.f32.vlgmr.msra.gmra.mxu3 %vm6612_vm10, %v4259_v49 }
 0x163   :  { %v691_v53 = vpop.f32.mrf.mxu0 }
 0x164   :  { %v711_v50 = vpop.f32.mrf.mxu1  ;;  %v692_v13 = vadd.f32 %v691_v53, %v4276_v9  ;;  %v6660_v53 = vld [vmem:[#allocation16_spill] sm:$0xff] }
 0x165   :  { %v712_v40 = vadd.f32 %v711_v50, %v4276_v9 }
 0x166   :  { %v758_v62 = vmul.f32 %v4278_v7, %v692_v13 }
 0x167   :  { %v759_v55 = vmul.f32 %v4278_v7, %v712_v40 }
 0x169   :  { %v766_v28 = vrot.slane %v759_v55, 4 }
 0x16b   :  { %v769_v16 = vsel %vm6611_vm1, %v758_v62, %v766_v28 }
 0x16c   :  { %v773_v0 = vsub.f32 %v755_v59, %v769_v16 }
 0x16d   :  { %v731_v48 = vpop.f32.mrf.mxu2 }
 0x16e   :  { %v3233_v22 = vclamps-f32 %v773_v0, 1.0  ;;  %v732_v24 = vadd.f32 %v731_v48, %v4276_v9 }
 0x170   :  { %v780_v10 = vmul.f32 %v3233_v22, %v779_v44  ;;  %v4299_v30 = vmul.f32 %v4278_v7, %v732_v24  ;;  %v6661_v22 = vld [vmem:[#allocation9_spill] sm:$0xff] }
 0x172   :  { %v4296_v11 = vadd.f32 %v783_v23, %v780_v10 }
 0x174   :  { %6652 = vst [vmem:[#allocation23_spill] sm:$0xff] %v4296_v11  ;;  %v793_v51 = vperm.slane %v4296_v11, 0  ;;  %v821_v1 = vperm.slane %v4296_v11, 1  ;;  %v865_v43 = vperm.slane %v4296_v11, 2  ;;  %v909_v35 = vperm.slane %v4296_v11, 3 }
 0x175   :  { %v794_v15 = vperm.slane %v4296_v11, 4  ;;  %v822_v12 = vperm.slane %v4296_v11, 5  ;;  %v866_v39 = vperm.slane %v4296_v11, 6  ;;  %v910_v8 = vperm.slane %v4296_v11, 7 }
 0x176   :  { %v4312_v2 = vperm.slane %v793_v51, 0  ;;  %v4314_v41 = vperm.slane %v821_v1, 1  ;;  %v4316_v37 = vperm.slane %v865_v43, 2  ;;  %v4318_v56 = vperm.slane %v909_v35, 3  ;;  %v6662_v51 = vld [vmem:[#allocation17_spill] sm:$0xff]  ;;  %v4367_v35 = vpop.permute.xlu1 %970 }
 0x177   :  { %v4320_v42 = vperm.slane %v794_v15, 0  ;;  %v4322_v19 = vperm.slane %v822_v12, 1  ;;  %v4324_v52 = vperm.slane %v866_v39, 2  ;;  %v4326_v20 = vperm.slane %v910_v8, 3 }
 0x178   :  { %v817_v61 = vmul.f32 %v4312_v2, %v6653_v21  ;;  %v845_v32 = vmul.f32 %v4314_v41, %v6654_v54  ;;  %v889_v60 = vmul.f32 %v4316_v37, %v6655_v29  ;;  %v933_v4 = vmul.f32 %v4318_v56, %v6656_v57 }
 0x179   :  { %v818_v27 = vmul.f32 %v4320_v42, %v6653_v21  ;;  %v846_v46 = vmul.f32 %v4322_v19, %v6654_v54  ;;  %v890_v25 = vmul.f32 %v4324_v52, %v6655_v29  ;;  %v934_v6 = vmul.f32 %v4326_v20, %v6656_v57 }
 0x17a   :  { %v861_v18 = vadd.f32 %v845_v32, %v817_v61  ;;  %v813_v58 = vmul.f32 %v4312_v2, %v6657_v17  ;;  %v841_v33 = vmul.f32 %v4314_v41, %v6658_v45  ;;  %v885_v14 = vmul.f32 %v4316_v37, %v6659_v5 }
 0x17b   :  { %v862_v34 = vadd.f32 %v846_v46, %v818_v27  ;;  %v929_v50 = vmul.f32 %v4318_v56, %v6660_v53  ;;  %v814_v13 = vmul.f32 %v4320_v42, %v6657_v17  ;;  %v842_v40 = vmul.f32 %v4322_v19, %v6658_v45  ;;  %v4377_v27 = vpop.permute.xlu2 %965 }
 0x17c   :  { %v751_v3 = vpop.f32.mrf.mxu3  ;;  %v905_v55 = vadd.f32 %v889_v60, %v861_v18  ;;  %v857_v59 = vadd.f32 %v841_v33, %v813_v58  ;;  %v886_v62 = vmul.f32 %v4324_v52, %v6659_v5  ;;  %v930_v28 = vmul.f32 %v4326_v20, %v6660_v53 }
 0x17d   :  { %v752_v16 = vadd.f32 %v751_v3, %v4276_v9  ;;  %v906_v0 = vadd.f32 %v890_v25, %v862_v34  ;;  %v858_v48 = vadd.f32 %v842_v40, %v814_v13  ;;  %v809_v23 = vmul.f32 %v4312_v2, %v6661_v22 }
 0x17e   :  { %v949_v24 = vadd.f32 %v933_v4, %v905_v55  ;;  %v901_v10 = vadd.f32 %v885_v14, %v857_v59  ;;  %v837_v1 = vmul.f32 %v4314_v41, %v6662_v51  ;;  %v881_v43 = vmul.f32 %v4316_v37, %v3969_v63 }
 0x17f   :  { %v761_v15 = vmul.f32 %v4278_v7, %v752_v16  ;;  %v950_v12 = vadd.f32 %v934_v6, %v906_v0  ;;  %v902_v39 = vadd.f32 %v886_v62, %v858_v48  ;;  %v925_v8 = vmul.f32 %v4318_v56, %v4025_v26  ;;  %v4398_v62 = vpop.permute.xlu0 %960 }
 0x180   :  { %v4373_v61 = vadd.f32 %v4367_v35, %v949_v24  ;;  %v945_v32 = vadd.f32 %v929_v50, %v901_v10  ;;  %v853_v60 = vadd.f32 %v837_v1, %v809_v23  ;;  %v810_v4 = vmul.f32 %v4320_v42, %v6661_v22  ;;  %v6664_v10 = vld [vmem:[#allocation13_spill] sm:$0xff] }
 0x181   :  { %v767_v46 = vrot.slane %v761_v15, 4  ;;  %v4380_v25 = vadd.f32 %v4367_v35, %v950_v12  ;;  %v946_v7 = vadd.f32 %v930_v28, %v902_v39  ;;  %v838_v6 = vmul.f32 %v4322_v19, %v6662_v51 }
 0x182   :  { %v3251_v18 = vmul.f32 -1.442695, %v4373_v61  ;;  %v4386_v58 = vadd.f32 %v4377_v27, %v945_v32  ;;  %v897_v33 = vadd.f32 %v881_v43, %v853_v60  ;;  %v882_v14 = vmul.f32 %v4324_v52, %v3969_v63  ;;  %v6665_v60 = vld [vmem:[#allocation20_spill] sm:$0xff] }
 0x183   :  { %v770_v34 = vsel %vm6611_vm1, %v4299_v30, %v767_v46  ;;  %v3252_v50 = vmul.f32 -1.442695, %v4380_v25  ;;  %v4394_v13 = vadd.f32 %v4377_v27, %v946_v7  ;;  %v854_v40 = vadd.f32 %v838_v6, %v810_v4 }
 0x184   :  { %v774_v3 = vsub.f32 %v4302_v47, %v770_v34  ;;  %3400 = vpow2.f32 %v3251_v18  ;;  %v3247_v55 = vmul.f32 -1.442695, %v4386_v58  ;;  %v941_v59 = vadd.f32 %v925_v8, %v897_v33  ;;  %v6663_v47 = vld [vmem:[#allocation19_spill] sm:$0xff] }
 0x185   :  { %3402 = vpow2.f32 %v3252_v50  ;;  %v3248_v28 = vmul.f32 -1.442695, %v4394_v13  ;;  %v898_v30 = vadd.f32 %v882_v14, %v854_v40  ;;  %v926_v16 = vmul.f32 %v4326_v20, %v4025_v26 }
 0x186   :  { %v3234_v0 = vclamps-f32 %v774_v3, 1.0  ;;  %3404 = vpow2.f32 %v3247_v55  ;;  %v4404_v48 = vadd.f32 %v4398_v62, %v941_v59  ;;  %v805_v23 = vmul.f32 %v4312_v2, %v6663_v47 }
 0x187   :  { %3406 = vpow2.f32 %v3248_v28  ;;  %v942_v24 = vadd.f32 %v926_v16, %v898_v30  ;;  %v833_v1 = vmul.f32 %v4314_v41, %v6664_v10  ;;  %v784_v12 = vmul.f32 %v782_v31, %v3766_v36 }
 0x188   :  { %v3243_v43 = vmul.f32 -1.442695, %v4404_v48  ;;  %v781_v15 = vmul.f32 %v3234_v0, %v779_v44  ;;  %v877_v2 = vmul.f32 %v4316_v37, %v6665_v60  ;;  %v806_v41 = vmul.f32 %v4320_v42, %v6663_v47 }
 0x189   :  { %v4417_v39 = vadd.f32 %v4398_v62, %v942_v24  ;;  %v849_v8 = vadd.f32 %v833_v1, %v805_v23  ;;  %v834_v44 = vmul.f32 %v4322_v19, %v6664_v10  ;;  %v921_v37 = vmul.f32 %v4318_v56, %v4084_v38  ;;  %v4456_v23 = vpop.permute.xlu1 %955 }
 0x18a   :  { %v3401_v32 = vpop.eup %3400  ;;  %3408 = vpow2.f32 %v3243_v43  ;;  %v4430_v33 = vadd.f32 %v784_v12, %v781_v15  ;;  %v878_v42 = vmul.f32 %v4324_v52, %v6665_v60  ;;  %v4444_v50 = vmul.f32 %v4326_v20, %v4084_v38 }
 0x18b   :  { %v3403_v4 = vpop.eup %3402  ;;  %v4421_v46 = vadd.f32 1.0, %v3401_v32  ;;  %v3244_v31 = vmul.f32 -1.442695, %v4417_v39  ;;  %v893_v6 = vadd.f32 %v877_v2, %v849_v8  ;;  %v850_v34 = vadd.f32 %v834_v44, %v806_v41 }
 0x18c   :  { %v3405_v7 = vpop.eup %3404  ;;  %v4427_v36 = vadd.f32 1.0, %v3403_v4  ;;  %v795_v28 = vperm.slane %v4430_v33, 0 }
 0x18d   :  { %v3407_v18 = vpop.eup %3406  ;;  %3410 = vrcp.f32 %v4421_v46  ;;  %v4438_v19 = vadd.f32 1.0, %v3405_v7  ;;  %v1242_v3 = vand.u32 2147483647, %v4421_v46  ;;  %v1244_v55 = vand.u32 2147483648, %v4421_v46 }
 0x18e   :  { %3412 = vrcp.f32 %v4427_v36  ;;  %v4440_v14 = vadd.f32 1.0, %v3407_v18  ;;  %v937_v59 = vadd.f32 %v921_v37, %v893_v6  ;;  %v1257_v56 = vand.u32 2147483647, %v4427_v36 }
 0x18f   :  { %3414 = vpow2.f32 %v3244_v31  ;;  %v1259_v52 = vand.u32 2147483648, %v4427_v36  ;;  %v1184_v30 = vand.u32 2147483648, %v4438_v19  ;;  %vm1238_vm2 = vweird.f32 %v4421_v46 }
 0x190   :  { %v3409_v40 = vpop.eup %3408  ;;  %3416 = vrcp.f32 %v4438_v19  ;;  %v1199_v20 = vand.u32 2147483648, %v4440_v14  ;;  %vm1253_vm3 = vweird.f32 %v4427_v36  ;;  %vm4464_vm4 = vcmp.eq.f32.partialorder %v1242_v3, 8.507059e+37 }
 0x191   :  { %3418 = vrcp.f32 %v4440_v14  ;;  %v4460_v24 = vadd.f32 1.0, %v3409_v40  ;;  %v1245_v8 = vor.u32 1.1754944e-38, %v1244_v55  ;;  %v1182_v32 = vand.u32 2147483647, %v4438_v19 }
 0x192   :  { %v4470_v2 = vadd.f32 %v4456_v23, %v937_v59  ;;  %vm4473_vm5 = vcmp.eq.f32.partialorder %v1257_v56, 8.507059e+37  ;;  %v1260_v44 = vor.u32 1.1754944e-38, %v1259_v52  ;;  %v1197_v7 = vand.u32 2147483647, %v4440_v14 }
 0x193   :  { %v3411_v0 = vpop.eup %3410  ;;  %3420 = vrcp.f32 %v4460_v24  ;;  %vm1178_vm7 = vweird.f32 %v4438_v19  ;;  %v1185_v18 = vor.u32 1.1754944e-38, %v1184_v30  ;;  %v4480_v37 = vor.u32 1.1754944e-38, %v1199_v20 }
 0x194   :  { %v3413_v43 = vpop.eup %3412  ;;  %v1234_v15 = vmul.f32 %v3411_v0, %v4421_v46  ;;  %vm1239_vm6 = vweird.f32 %v3411_v0  ;;  %vm1193_vm9 = vweird.f32 %v4440_v14  ;;  %v1124_v55 = vand.u32 2147483648, %v4460_v24 }
 0x195   :  { %v1249_v4 = vmul.f32 %v3413_v43, %v4427_v36  ;;  %v3415_v31 = vpop.eup %3414  ;;  %vm1254_vm8 = vweird.f32 %v3413_v43  ;;  %vm4487_vm11 = vcmp.eq.f32.partialorder %v1182_v32, 8.507059e+37  ;;  %v1122_v30 = vand.u32 2147483647, %v4460_v24  ;;  %vm1240_vm15 = vmor %vm1238_vm2, %vm1239_vm6 }
 0x196   :  { %v1235_v6 = vsub.f32 1.0, %v1234_v15  ;;  %v3417_v40 = vpop.eup %3416  ;;  %v4484_v59 = vadd.f32 1.0, %v3415_v31  ;;  %v3239_v20 = vmul.f32 -1.442695, %v4470_v2  ;;  %vm4494_vm12 = vcmp.eq.f32.partialorder %v1197_v7, 8.507059e+37  ;;  %vm1255_vm1 = vmor %vm1253_vm3, %vm1254_vm8 }
 0x197   :  { %v1250_v3 = vsub.f32 1.0, %v1249_v4  ;;  %v3419_v56 = vpop.eup %3418  ;;  %v1174_v1 = vmul.f32 %v3417_v40, %v4438_v19  ;;  %v894_v31 = vadd.f32 %v878_v42, %v850_v34  ;;  %v4498_v9 = vperm.slane %v795_v28, 0 }
 0x198   :  { %v1236_v52 = vmul.f32 %v3411_v0, %v1235_v6  ;;  %v1189_v16 = vmul.f32 %v3419_v56, %v4440_v14  ;;  %vm1179_vm13 = vweird.f32 %v3417_v40  ;;  %vm1118_vm14 = vweird.f32 %v4460_v24 }
 0x199   :  { %v1251_v4 = vmul.f32 %v3413_v43, %v1250_v3  ;;  %v1175_v38 = vsub.f32 1.0, %v1174_v1  ;;  %3422 = vrcp.f32 %v4484_v59  ;;  %v3421_v32 = vpop.eup %3420  ;;  %vm1194_vm0 = vweird.f32 %v3419_v56  ;;  %vm1180_vm2 = vmor %vm1178_vm7, %vm1179_vm13 }
 0x19a   :  { %v1237_v6 = vadd.f32 %v3411_v0, %v1236_v52  ;;  %v1190_v7 = vsub.f32 1.0, %v1189_v16  ;;  %v1125_v60 = vor.u32 1.1754944e-38, %v1124_v55  ;;  %v1114_v34 = vmul.f32 %v3421_v32, %v4460_v24 }
 0x19b   :  { %v1252_v3 = vadd.f32 %v3413_v43, %v1251_v4  ;;  %v1176_v42 = vmul.f32 %v3417_v40, %v1175_v38  ;;  %vm4509_vm10 = vcmp.eq.f32.partialorder %v1122_v30, 8.507059e+37  ;;  %v1137_v1 = vand.u32 2147483647, %v4484_v59 }
 0x19c   :  { %v1241_v10 = vsel %vm1240_vm15, %v3411_v0, %v1237_v6  ;;  %v1191_v52 = vmul.f32 %v3419_v56, %v1190_v7  ;;  %v1139_v0 = vand.u32 2147483648, %v4484_v59  ;;  %v1115_v4 = vsub.f32 1.0, %v1114_v34 }
 0x19d   :  { %v1246_v46 = vsel %vm4464_vm4, %v1245_v8, %v1241_v10  ;;  %v1256_v16 = vsel %vm1255_vm1, %v3413_v43, %v1252_v3  ;;  %v1177_v36 = vadd.f32 %v3417_v40, %v1176_v42  ;;  %vm1119_vm3 = vweird.f32 %v3421_v32  ;;  %vm1195_vm4 = vmor %vm1193_vm9, %vm1194_vm0 }
 0x19e   :  { %v1305_v55 = vmul.f32 %v1246_v46, %v4373_v61  ;;  %v1261_v38 = vsel %vm4473_vm5, %v1260_v44, %v1256_v16  ;;  %v1192_v6 = vadd.f32 %v3419_v56, %v1191_v52  ;;  %vm1133_vm1 = vweird.f32 %v4484_v59  ;;  %vm1120_vm6 = vmor %vm1118_vm14, %vm1119_vm3 }
 0x19f   :  { %v1306_v30 = vmul.f32 %v1261_v38, %v4380_v25  ;;  %3424 = vpow2.f32 %v3239_v20  ;;  %v3423_v10 = vpop.eup %3422  ;;  %v1181_v43 = vsel %vm1180_vm2, %v3417_v40, %v1177_v36  ;;  %v1116_v61 = vmul.f32 %v3421_v32, %v1115_v4 }
 0x1a0   :  { %1321 = vmatpush.msrb.mxu0 %v1305_v55  ;;  %v938_v12 = vadd.f32 %v4444_v50, %v894_v31  ;;  %v819_v25 = vmul.f32 %v4498_v9, %v6653_v21  ;;  %v1186_v19 = vsel %vm4487_vm11, %v1185_v18, %v1181_v43  ;;  %v1196_v8 = vsel %vm1195_vm4, %v3419_v56, %v1192_v6 }
 0x1a1   :  { %1341 = vmatpush.msrb.mxu1 %v1306_v30  ;;  %v1129_v41 = vmul.f32 %v3423_v10, %v4484_v59  ;;  %vm1134_vm5 = vweird.f32 %v3423_v10  ;;  %v1301_v44 = vmul.f32 %v1186_v19, %v4386_v58  ;;  %v1201_v14 = vsel %vm4494_vm12, %v4480_v37, %v1196_v8 }
 0x1a2   :  { %v1117_v40 = vadd.f32 %v3421_v32, %v1116_v61  ;;  %v4539_v50 = vadd.f32 %v4456_v23, %v938_v12  ;;  %v1302_v20 = vmul.f32 %v1201_v14, %v4394_v13  ;;  %v6676_v56 = vperm.slane %v4430_v33, 1 }
 0x1a3   :  { %v1130_v18 = vsub.f32 1.0, %v1129_v41  ;;  %v6677_v58 = vperm.slane %v4430_v33, 2  ;;  %1322 = vmatpush.msrb.mxu0 %v1301_v44  ;;  %v911_v3 = vperm.slane %v4430_v33, 3  ;;  %v796_v13 = vperm.slane %v4430_v33, 4 }
 0x1a4   :  { %v4547_v15 = vperm.slane %v6676_v56, 1  ;;  %v1121_v11 = vsel %vm1120_vm6, %v3421_v32, %v1117_v40  ;;  %v3240_v37 = vmul.f32 -1.442695, %v4539_v50  ;;  %1342 = vmatpush.msrb.mxu1 %v1302_v20  ;;  %vm1138_vm7 = vcmp.eq.f32.partialorder %v1137_v1, 8.507059e+37 }
 0x1a5   :  { %v4551_v31 = vperm.slane %v6677_v58, 2  ;;  %v3425_v7 = vpop.eup %3424  ;;  %v1126_v24 = vsel %vm4509_vm10, %v1125_v60, %v1121_v11  ;;  %v1131_v42 = vmul.f32 %v3423_v10, %v1130_v18  ;;  %v4565_v52 = vperm.slane %v911_v3, 3  ;;  %vm1135_vm10 = vmor %vm1133_vm1, %vm1134_vm5 }
 0x1a6   :  { %v847_v34 = vmul.f32 %v4547_v15, %v6654_v54  ;;  %v1297_v32 = vmul.f32 %v1126_v24, %v4404_v48  ;;  %v4563_v16 = vadd.f32 1.0, %v3425_v7  ;;  %3426 = vpow2.f32 %v3240_v37 }
 0x1a7   :  { %v891_v46 = vmul.f32 %v4551_v31, %v6655_v29  ;;  %v1132_v55 = vadd.f32 %v3423_v10, %v1131_v42  ;;  %v4567_v36 = vperm.slane %v796_v13, 0  ;;  %v824_v60 = vperm.slane %v4430_v33, 5 }
 0x1a8   :  { %v863_v38 = vadd.f32 %v847_v34, %v819_v25  ;;  %1323 = vmatpush.msrb.mxu0 %v1297_v32  ;;  %v1140_v28 = vor.u32 1.1754944e-38, %v1139_v0  ;;  %3428 = vrcp.f32 %v4563_v16  ;;  %v1062_v4 = vand.u32 2147483647, %v4563_v16 }
 0x1a9   :  { %v1136_v48 = vsel %vm1135_vm10, %v3423_v10, %v1132_v55  ;;  %v935_v6 = vmul.f32 %v4565_v52, %v6656_v57  ;;  %v1064_v61 = vand.u32 2147483648, %v4563_v16  ;;  %v820_v12 = vmul.f32 %v4567_v36, %v6653_v21 }
 0x1aa   :  { %v907_v30 = vadd.f32 %v891_v46, %v863_v38  ;;  %v1141_v43 = vsel %vm1138_vm7, %v1140_v28, %v1136_v48  ;;  %v4580_v25 = vperm.slane %v824_v60, 1  ;;  %v868_v0 = vperm.slane %v4430_v33, 6 }
 0x1ab   :  { %v1298_v59 = vmul.f32 %v1141_v43, %v4417_v39  ;;  %v912_v10 = vperm.slane %v4430_v33, 7  ;;  %v815_v41 = vmul.f32 %v4498_v9, %v6657_v17  ;;  %v843_v44 = vmul.f32 %v4547_v15, %v6658_v45 }
 0x1ac   :  { %v951_v1 = vadd.f32 %v935_v6, %v907_v30  ;;  %v3427_v19 = vpop.eup %3426  ;;  %v848_v8 = vmul.f32 %v4580_v25, %v6654_v54  ;;  %vm1058_vm8 = vweird.f32 %v4563_v16  ;;  %v4597_v40 = vperm.slane %v868_v0, 2 }
 0x1ad   :  { %1343 = vmatpush.msrb.mxu1 %v1298_v59  ;;  %v4592_v14 = vadd.f32 1.0, %v3427_v19  ;;  %v1065_v18 = vor.u32 1.1754944e-38, %v1064_v61  ;;  %v4599_v58 = vperm.slane %v912_v10, 3  ;;  %v859_v11 = vadd.f32 %v843_v44, %v815_v41 }
 0x1ae   :  { %v4595_v39 = vadd.f32 %v4367_v35, %v951_v1  ;;  %v3429_v20 = vpop.eup %3428  ;;  %v864_v56 = vadd.f32 %v848_v8, %v820_v12  ;;  %vm4602_vm9 = vcmp.eq.f32.partialorder %v1062_v4, 8.507059e+37  ;;  %v887_v13 = vmul.f32 %v4551_v31, %v6659_v5 }
 0x1af   :  { %v1054_v37 = vmul.f32 %v3429_v20, %v4563_v16  ;;  %3430 = vrcp.f32 %v4592_v14  ;;  %v816_v7 = vmul.f32 %v4567_v36, %v6657_v17  ;;  %vm1059_vm11 = vweird.f32 %v3429_v20 }
 0x1b0   :  { %v3253_v24 = vmul.f32 -1.442695, %v4595_v39  ;;  %v892_v42 = vmul.f32 %v4597_v40, %v6655_v29  ;;  %v931_v34 = vmul.f32 %v4565_v52, %v6660_v53  ;;  %v1077_v32 = vand.u32 2147483647, %v4592_v14  ;;  %vm1060_vm12 = vmor %vm1058_vm8, %vm1059_vm11 }
 0x1b1   :  { %v1055_v46 = vsub.f32 1.0, %v1054_v37  ;;  %v903_v55 = vadd.f32 %v887_v13, %v859_v11  ;;  %v844_v38 = vmul.f32 %v4580_v25, %v6658_v45  ;;  %v1079_v60 = vand.u32 2147483648, %v4592_v14 }
 0x1b2   :  { %3432 = vpow2.f32 %v3253_v24  ;;  %v908_v28 = vadd.f32 %v892_v42, %v864_v56  ;;  %v936_v48 = vmul.f32 %v4599_v58, %v6656_v57  ;;  %v888_v43 = vmul.f32 %v4597_v40, %v6659_v5 }
 0x1b3   :  { %v1056_v4 = vmul.f32 %v3429_v20, %v1055_v46  ;;  %v947_v30 = vadd.f32 %v931_v34, %v903_v55  ;;  %v860_v6 = vadd.f32 %v844_v38, %v816_v7  ;;  %v932_v12 = vmul.f32 %v4599_v58, %v6660_v53 }
 0x1b4   :  { %v952_v61 = vadd.f32 %v936_v48, %v908_v28  ;;  %v811_v59 = vmul.f32 %v4498_v9, %v6661_v22  ;;  %v839_v1 = vmul.f32 %v4547_v15, %v6662_v51  ;;  %v883_v41 = vmul.f32 %v4551_v31, %v3969_v63 }
 0x1b5   :  { %v3431_v0 = vpop.eup %3430  ;;  %v1057_v10 = vadd.f32 %v3429_v20, %v1056_v4  ;;  %v4631_v19 = vadd.f32 %v4377_v27, %v947_v30  ;;  %v904_v8 = vadd.f32 %v888_v43, %v860_v6  ;;  %v927_v24 = vmul.f32 %v4565_v52, %v4025_v26 }
 0x1b6   :  { %v1069_v44 = vmul.f32 %v3431_v0, %v4592_v14  ;;  %vm1074_vm13 = vweird.f32 %v3431_v0  ;;  %v4640_v56 = vadd.f32 %v4367_v35, %v952_v61  ;;  %v855_v11 = vadd.f32 %v839_v1, %v811_v59 }
 0x1b7   :  { %v1061_v37 = vsel %vm1060_vm12, %v3429_v20, %v1057_v10  ;;  %v3249_v13 = vmul.f32 -1.442695, %v4631_v19  ;;  %v948_v7 = vadd.f32 %v932_v12, %v904_v8  ;;  %v812_v4 = vmul.f32 %v4567_v36, %v6661_v22 }
 0x1b8   :  { %v3433_v42 = vpop.eup %3432  ;;  %v1066_v34 = vsel %vm4602_vm9, %v1065_v18, %v1061_v37  ;;  %v1070_v16 = vsub.f32 1.0, %v1069_v44  ;;  %v3254_v46 = vmul.f32 -1.442695, %v4640_v56  ;;  %v899_v55 = vadd.f32 %v883_v41, %v855_v11  ;;  %v6681_v41 = vld [vmem:[#allocation13_spill] sm:$0xff] }
 0x1b9   :  { %v1293_v38 = vmul.f32 %v1066_v34, %v4470_v2  ;;  %v4649_v35 = vadd.f32 1.0, %v3433_v42  ;;  %3434 = vpow2.f32 %v3249_v13  ;;  %v4652_v20 = vadd.f32 %v4377_v27, %v948_v7 }
 0x1ba   :  { %v1071_v28 = vmul.f32 %v3431_v0, %v1070_v16  ;;  %3436 = vpow2.f32 %v3254_v46  ;;  %v943_v48 = vadd.f32 %v927_v24, %v899_v55  ;;  %vm1073_vm14 = vweird.f32 %v4592_v14 }
 0x1bb   :  { %1324 = vmatpush.msrb.mxu0 %v1293_v38  ;;  %3438 = vrcp.f32 %v4649_v35  ;;  %vm6680_vm15 = vcmask 261120   ;;  %v3250_v2 = vmul.f32 -1.442695, %v4652_v20  ;;  %v840_v3 = vmul.f32 %v4580_v25, %v6662_v51  ;;  %vm1075_vm0 = vmor %vm1073_vm14, %vm1074_vm13 }
 0x1bc   :  { %v1072_v18 = vadd.f32 %v3431_v0, %v1071_v28  ;;  %3255 = vmatmul.msk.f32.vlgmr.msrb.gmra.mxu0 %vm6680_vm15, %v4259_v49  ;;  %v4662_v27 = vadd.f32 %v4398_v62, %v943_v48  ;;  %vm1078_vm2 = vcmp.eq.f32.partialorder %v1077_v32, 8.507059e+37  ;;  %v1080_v30 = vor.u32 1.1754944e-38, %v1079_v60  ;;  %vm6682_vm1 = vmmov %vm6680_vm15 }
 0x1bd   :  { %v1272_v14 = vand.u32 2147483647, %v4649_v35  ;;  %v884_v6 = vmul.f32 %v4597_v40, %v3969_v63  ;;  %3440 = vpow2.f32 %v3250_v2  ;;  %v856_v12 = vadd.f32 %v840_v3, %v812_v4 }
 0x1be   :  { %v1076_v43 = vsel %vm1075_vm0, %v3431_v0, %v1072_v18  ;;  %v3245_v61 = vmul.f32 -1.442695, %v4662_v27  ;;  %v1274_v10 = vand.u32 2147483648, %v4649_v35  ;;  %v807_v8 = vmul.f32 %v4498_v9, %v6663_v47 }
 0x1bf   :  { %v3435_v59 = vpop.eup %3434  ;;  %v1081_v1 = vsel %vm1078_vm2, %v1080_v30, %v1076_v43  ;;  %v835_v32 = vmul.f32 %v4547_v15, %v6681_v41  ;;  %v900_v0 = vadd.f32 %v884_v6, %v856_v12  ;;  %v928_v9 = vmul.f32 %v4599_v58, %v4025_v26  ;;  %v6686_v30 = vld [vmem:[#allocation21_spill] sm:$0xff] }
 0x1c0   :  { %v3437_v60 = vpop.eup %3436  ;;  %v1294_v44 = vmul.f32 %v1081_v1, %v4539_v50  ;;  %v4677_v11 = vadd.f32 1.0, %v3435_v59  ;;  %3442 = vpow2.f32 %v3245_v61  ;;  %vm1268_vm3 = vweird.f32 %v4649_v35  ;;  %v6683_v50 = vld [vmem:[#allocation20_spill] sm:$0xff] }
 0x1c1   :  { %v3439_v37 = vpop.eup %3438  ;;  %v4679_v13 = vadd.f32 1.0, %v3437_v60  ;;  %v851_v7 = vadd.f32 %v835_v32, %v807_v8  ;;  %v879_v15 = vmul.f32 %v4551_v31, %v6683_v50  ;;  %vm4691_vm4 = vcmp.eq.f32.partialorder %v1272_v14, 8.507059e+37 }
 0x1c2   :  { %1344 = vmatpush.msrb.mxu1 %v1294_v44  ;;  %v1264_v24 = vmul.f32 %v3439_v37, %v4649_v35  ;;  %3444 = vrcp.f32 %v4677_v11  ;;  %v1275_v46 = vor.u32 1.1754944e-38, %v1274_v10  ;;  %v944_v55 = vadd.f32 %v928_v9, %v900_v0 }
 0x1c3   :  { %3446 = vrcp.f32 %v4679_v13  ;;  %3256 = vmatmul.msk.f32.vlgmr.msrb.gmra.mxu1 %vm6682_vm1, %v4259_v49  ;;  %v3441_v42 = vpop.eup %3440  ;;  %vm1269_vm5 = vweird.f32 %v3439_v37  ;;  %v1289_v38 = vand.u32 2147483648, %v4679_v13  ;;  %v895_v48 = vadd.f32 %v879_v15, %v851_v7 }
 0x1c4   :  { %v1265_v34 = vsub.f32 1.0, %v1264_v24  ;;  %v4696_v28 = vadd.f32 1.0, %v3441_v42  ;;  %v1287_v49 = vand.u32 2147483647, %v4679_v13  ;;  %v1212_v31 = vand.u32 2147483647, %v4677_v11  ;;  %vm1270_vm10 = vmor %vm1268_vm3, %vm1269_vm5 }
 0x1c5   :  { %v4701_v2 = vadd.f32 %v4398_v62, %v944_v55  ;;  %v1214_v3 = vand.u32 2147483648, %v4677_v11  ;;  %v923_v14 = vmul.f32 %v4565_v52, %v6686_v30  ;;  %v808_v6 = vmul.f32 %v4567_v36, %v6663_v47 }
 0x1c6   :  { %v3443_v4 = vpop.eup %3442  ;;  %v1266_v18 = vmul.f32 %v3439_v37, %v1265_v34  ;;  %3448 = vrcp.f32 %v4696_v28  ;;  %vm1208_vm6 = vweird.f32 %v4677_v11  ;;  %vm1283_vm7 = vweird.f32 %v4679_v13 }
 0x1c7   :  { %v4710_v12 = vadd.f32 1.0, %v3443_v4  ;;  %v3246_v59 = vmul.f32 -1.442695, %v4701_v2  ;;  %v1290_v1 = vor.u32 1.1754944e-38, %v1289_v38  ;;  %v939_v10 = vadd.f32 %v923_v14, %v895_v48 }
 0x1c8   :  { %v3445_v43 = vpop.eup %3444  ;;  %v1267_v61 = vadd.f32 %v3439_v37, %v1266_v18  ;;  %vm4719_vm8 = vcmp.eq.f32.partialorder %v1287_v49, 8.507059e+37  ;;  %vm4723_vm9 = vcmp.eq.f32.partialorder %v1212_v31, 8.507059e+37  ;;  %v1215_v0 = vor.u32 1.1754944e-38, %v1214_v3 }
 0x1c9   :  { %v3447_v62 = vpop.eup %3446  ;;  %v1204_v52 = vmul.f32 %v3445_v43, %v4677_v11  ;;  %3450 = vrcp.f32 %v4710_v12  ;;  %v1229_v7 = vand.u32 2147483648, %v4696_v28  ;;  %vm1223_vm11 = vweird.f32 %v4696_v28 }
 0x1ca   :  { %v1271_v36 = vsel %vm1270_vm10, %v3439_v37, %v1267_v61  ;;  %v1279_v8 = vmul.f32 %v3447_v62, %v4679_v13  ;;  %3452 = vpow2.f32 %v3246_v59  ;;  %vm1209_vm12 = vweird.f32 %v3445_v43 }
 0x1cb   :  { %v1276_v35 = vsel %vm4691_vm4, %v1275_v46, %v1271_v36  ;;  %v1205_v44 = vsub.f32 1.0, %v1204_v52  ;;  %v4734_v42 = vadd.f32 %v4456_v23, %v939_v10  ;;  %v836_v34 = vmul.f32 %v4580_v25, %v6681_v41  ;;  %vm1210_vm14 = vmor %vm1208_vm6, %vm1209_vm12 }
 0x1cc   :  { %v1307_v37 = vmul.f32 %v1276_v35, %v4595_v39  ;;  %v1280_v24 = vsub.f32 1.0, %v1279_v8  ;;  %v3449_v9 = vpop.eup %3448  ;;  %vm1284_vm13 = vweird.f32 %v3447_v62  ;;  %v1227_v39 = vand.u32 2147483647, %v4696_v28 }
 0x1cd   :  { %v1206_v15 = vmul.f32 %v3445_v43, %v1205_v44  ;;  %v1219_v46 = vmul.f32 %v3449_v9, %v4696_v28  ;;  %v1230_v38 = vor.u32 1.1754944e-38, %v1229_v7  ;;  %v3241_v48 = vmul.f32 -1.442695, %v4734_v42  ;;  %vm1285_vm0 = vmor %vm1283_vm7, %vm1284_vm13 }
 0x1ce   :  { %1361 = vmatpush.msrb.mxu2 %v1307_v37  ;;  %v1281_v16 = vmul.f32 %v3447_v62, %v1280_v24  ;;  %v852_v4 = vadd.f32 %v836_v34, %v808_v6  ;;  %vm1224_vm15 = vweird.f32 %v3449_v9  ;;  %v880_v25 = vmul.f32 %v4597_v40, %v6683_v50 }
 0x1cf   :  { %v1207_v55 = vadd.f32 %v3445_v43, %v1206_v15  ;;  %v3451_v18 = vpop.eup %3450  ;;  %v1220_v31 = vsub.f32 1.0, %v1219_v46  ;;  %3454 = vpow2.f32 %v3241_v48  ;;  %v924_v6 = vmul.f32 %v4599_v58, %v6686_v30  ;;  %vm1225_vm2 = vmor %vm1223_vm11, %vm1224_vm15 }
 0x1d0   :  { %v1282_v49 = vadd.f32 %v3447_v62, %v1281_v16  ;;  %v1144_v14 = vmul.f32 %v3451_v18, %v4710_v12  ;;  %v3453_v61 = vpop.eup %3452  ;;  %v896_v10 = vadd.f32 %v880_v25, %v852_v4  ;;  %v1154_v44 = vand.u32 2147483648, %v4710_v12 }
 0x1d1   :  { %v1211_v3 = vsel %vm1210_vm14, %v3445_v43, %v1207_v55  ;;  %v1221_v52 = vmul.f32 %v3449_v9, %v1220_v31  ;;  %v1044_v43 = vadd.f32 1.0, %v3453_v61  ;;  %vm1149_vm3 = vweird.f32 %v3451_v18 }
 0x1d2   :  { %v1286_v59 = vsel %vm1285_vm0, %v3447_v62, %v1282_v49  ;;  %v1216_v11 = vsel %vm4723_vm9, %v1215_v0, %v1211_v3  ;;  %v1145_v36 = vsub.f32 1.0, %v1144_v14  ;;  %v940_v58 = vadd.f32 %v924_v6, %v896_v10 }
 0x1d3   :  { %v1291_v40 = vsel %vm4719_vm8, %v1290_v1, %v1286_v59  ;;  %v1303_v13 = vmul.f32 %v1216_v11, %v4631_v19  ;;  %v1222_v35 = vadd.f32 %v3449_v9, %v1221_v52  ;;  %v1152_v32 = vand.u32 2147483647, %v4710_v12 }
 0x1d4   :  { %v1308_v8 = vmul.f32 %v1291_v40, %v4640_v56  ;;  %v1146_v62 = vmul.f32 %v3451_v18, %v1145_v36  ;;  %3456 = vrcp.f32 %v1044_v43  ;;  %vm1228_vm1 = vcmp.eq.f32.partialorder %v1227_v39, 8.507059e+37 }
 0x1d5   :  { %1362 = vmatpush.msrb.mxu2 %v1303_v13  ;;  %v1226_v19 = vsel %vm1225_vm2, %v3449_v9, %v1222_v35  ;;  %v4762_v1 = vadd.f32 %v4456_v23, %v940_v58  ;;  %v3455_v56 = vpop.eup %3454  ;;  %vm1148_vm4 = vweird.f32 %v4710_v12  ;;  %v1155_v28 = vor.u32 1.1754944e-38, %v1154_v44  ;;  %v4773_v35 = vld [vmem:[%s6572_s4] sm:$0xf] }
 0x1d6   :  { %1381 = vmatpush.msrb.mxu3 %v1308_v8  ;;  %v1231_v60 = vsel %vm1228_vm1, %v1230_v38, %v1226_v19  ;;  %v1147_v0 = vadd.f32 %v3451_v18, %v1146_v62  ;;  %vm1150_vm5 = vmor %vm1148_vm4, %vm1149_vm3  ;;  %v1039_v37 = vadd.f32 1.0, %v3455_v56  ;;  %vm1153_vm6 = vcmp.eq.f32.partialorder %v1152_v32, 8.507059e+37 }
 0x1d7   :  { %v1304_v7 = vmul.f32 %v1231_v60, %v4652_v20  ;;  %v3242_v24 = vmul.f32 -1.442695, %v4762_v1  ;;  %v1169_v12 = vand.u32 2147483648, %v1044_v43  ;;  %v1167_v55 = vand.u32 2147483647, %v1044_v43  ;;  %v6693_v60 = vld [vmem:[#allocation22_spill] sm:$0xff] }
 0x1d8   :  { %v1151_v15 = vsel %vm1150_vm5, %v3451_v18, %v1147_v0  ;;  %3458 = vrcp.f32 %v1039_v37  ;;  %vm1163_vm7 = vweird.f32 %v1044_v43  ;;  %v1092_v6 = vand.u32 2147483647, %v1039_v37 }
 0x1d9   :  { %1382 = vmatpush.msrb.mxu3 %v1304_v7  ;;  %v1156_v9 = vsel %vm1153_vm6, %v1155_v28, %v1151_v15  ;;  %3460 = vpow2.f32 %v3242_v24  ;;  %v1170_v49 = vor.u32 1.1754944e-38, %v1169_v12  ;;  %vm1168_vm9 = vcmp.eq.f32.partialorder %v1167_v55, 8.507059e+37 }
 0x1da   :  { %v3457_v34 = vpop.eup %3456  ;;  %v1299_v23 = vmul.f32 %v1156_v9, %v4662_v27  ;;  %v1094_v27 = vand.u32 2147483648, %v1039_v37  ;;  %vm1088_vm12 = vweird.f32 %v1039_v37  ;;  %vm1093_vm14 = vcmp.eq.f32.partialorder %v1092_v6, 8.507059e+37 }
 0x1db   :  { %v1159_v16 = vmul.f32 %v3457_v34, %v1044_v43  ;;  %vm1164_vm10 = vweird.f32 %v3457_v34  ;;  %vm6691_vm15 = vcmask 261120   ;;  %v4781_v7 = vstv %s3236_s0 }
 0x1dc   :  { %1363 = vmatpush.msrb.mxu2 %v1299_v23  ;;  %vm1165_vm8 = vmor %vm1163_vm7, %vm1164_vm10  ;;  %v1095_v11 = vor.u32 1.1754944e-38, %v1094_v27  ;;  %v1389_v9 = vstv %s4783_s13  ;;  %vm6694_vm5 = vcmask 1043456   ;;  %v6695_v23 = vld [vmem:[#allocation23_spill] sm:$0xff]  ;;  %s3640_s13 = smov [#allocation5]  }
 0x1dd   :  { %v1160_v46 = vsub.f32 1.0, %v1159_v16  ;;  %vm6692_vm4 = vmmov %vm6691_vm15  ;;  %v1390_v16 = vmul.f32 %v1389_v9, %v6695_v23 }
 0x1de   :  { %v3459_v39 = vpop.eup %3458  ;;  %vm6697_vm6 = vmmov %vm6694_vm5 }
 0x1df   :  { %v1161_v20 = vmul.f32 %v3457_v34, %v1160_v46  ;;  %v3461_v38 = vpop.eup %3460  ;;  %v1084_v48 = vmul.f32 %v3459_v39, %v1039_v37  ;;  %vm1089_vm11 = vweird.f32 %v3459_v39 }
 0x1e0   :  { %v1040_v18 = vadd.f32 1.0, %v3461_v38  ;;  %vm1090_vm13 = vmor %vm1088_vm12, %vm1089_vm11 }
 0x1e1   :  { %v1162_v4 = vadd.f32 %v3457_v34, %v1161_v20  ;;  %v1085_v31 = vsub.f32 1.0, %v1084_v48  ;;  %v1416_v20 = vstv %s4793_s14 }
 0x1e2   :  { %3462 = vrcp.f32 %v1040_v18  ;;  %v1109_v8 = vand.u32 2147483648, %v1040_v18  ;;  %v1107_v44 = vand.u32 2147483647, %v1040_v18  ;;  %vm1103_vm2 = vweird.f32 %v1040_v18 }
 0x1e3   :  { %v1166_v25 = vsel %vm1165_vm8, %v3457_v34, %v1162_v4  ;;  %v1086_v14 = vmul.f32 %v3459_v39, %v1085_v31  ;;  %v1417_v38 = vmul.f32 %v1416_v20, %v6695_v23 }
 0x1e4   :  { %v1171_v3 = vsel %vm1168_vm9, %v1170_v49, %v1166_v25  ;;  %v1110_v62 = vor.u32 1.1754944e-38, %v1109_v8  ;;  %vm1108_vm1 = vcmp.eq.f32.partialorder %v1107_v44, 8.507059e+37 }
 0x1e5   :  { %v1300_v61 = vmul.f32 %v1171_v3, %v4701_v2  ;;  %v1087_v59 = vadd.f32 %v3459_v39, %v1086_v14 }
 0x1e7   :  { %1383 = vmatpush.msrb.mxu3 %v1300_v61  ;;  %v1091_v52 = vsel %vm1090_vm13, %v3459_v39, %v1087_v59  ;;  %v1413_v39 = vstv %s4789_s5  ;;  %s3288_s5 = sld [smem:[#allocation2 + $0x182]] }
 0x1e8   :  { %v3463_v10 = vpop.eup %3462  ;;  %v1096_v40 = vsel %vm1093_vm14, %v1095_v11, %v1091_v52 }
 0x1e9   :  { %v1295_v13 = vmul.f32 %v1096_v40, %v4734_v42  ;;  %v1099_v36 = vmul.f32 %v3463_v10, %v1040_v18  ;;  %vm1104_vm0 = vweird.f32 %v3463_v10 }
 0x1ea   :  { %vm1105_vm3 = vmor %vm1103_vm2, %vm1104_vm0 }
 0x1eb   :  { %1364 = vmatpush.msrb.mxu2 %v1295_v13  ;;  %v1100_v43 = vsub.f32 1.0, %v1099_v36  ;;  %v4824_v13 = vpop.permute.xlu2 %1604 }
 0x1ec   :  { %3257 = vmatmul.msk.f32.vlgmr.msrb.gmra.mxu2 %vm6691_vm15, %v4773_v35 }
 0x1ed   :  { %v1101_v2 = vmul.f32 %v3463_v10, %v1100_v43 }
 0x1ef   :  { %v1102_v58 = vadd.f32 %v3463_v10, %v1101_v2 }
 0x1f1   :  { %v1106_v42 = vsel %vm1105_vm3, %v3463_v10, %v1102_v58 }
 0x1f2   :  { %v1111_v32 = vsel %vm1108_vm1, %v1110_v62, %v1106_v42 }
 0x1f3   :  { %v1296_v19 = vmul.f32 %v1111_v32, %v4762_v1 }
 0x1f5   :  { %1384 = vmatpush.msrb.mxu3 %v1296_v19 }
 0x1f6   :  { %3258 = vmatmul.msk.f32.vlgmr.msrb.gmra.mxu3 %vm6692_vm4, %v4773_v35 }
 0x239   :  { %v1326_v28 = vpop.f32.mrf.mxu0 }
 0x23a   :  { %v1327_v24 = vadd.f32 %v1326_v28, %v6693_v60 }
 0x23c   :  { %v1393_v1 = vmul.f32 %v4781_v7, %v1327_v24  ;;  %v1391_v24 = vmul.f32 %v1389_v9, %v4430_v33 }
 0x240   :  { %v1346_v56 = vpop.f32.mrf.mxu1 }
 0x241   :  { %v1347_v0 = vadd.f32 %v1346_v56, %v6693_v60 }
 0x243   :  { %v1394_v37 = vmul.f32 %v4781_v7, %v1347_v0 }
 0x245   :  { %v1401_v15 = vrot.slane %v1394_v37, 4 }
 0x247   :  { %v1403_v34 = vsel %vm6694_vm5, %v1393_v1, %v1401_v15 }
 0x248   :  { %v1407_v46 = vsub.f32 %v1390_v16, %v1403_v34 }
 0x24a   :  { %v3259_v12 = vclamps-f32 %v1407_v46, 1.0 }
 0x24c   :  { %v1414_v55 = vmul.f32 %v3259_v12, %v1413_v39 }
 0x24e   :  { %v4802_v48 = vadd.f32 %v1417_v38, %v1414_v55 }
 0x250   :  { %6696 = vst [vmem:[#allocation12_spill] sm:$0xff] %v4802_v48  ;;  %v1427_v4 = vperm.slane %v4802_v48, 0  ;;  %v1455_v18 = vperm.slane %v4802_v48, 1  ;;  %v1499_v49 = vperm.slane %v4802_v48, 2  ;;  %v1543_v31 = vperm.slane %v4802_v48, 3 }
 0x251   :  { %v1428_v43 = vperm.slane %v4802_v48, 4  ;;  %v1456_v8 = vperm.slane %v4802_v48, 5  ;;  %v1500_v2 = vperm.slane %v4802_v48, 6  ;;  %v1544_v44 = vperm.slane %v4802_v48, 7 }
 0x252   :  { %v4808_v25 = vperm.slane %v1427_v4, 0  ;;  %v4810_v27 = vperm.slane %v1455_v18, 1  ;;  %v4812_v3 = vperm.slane %v1499_v49, 2  ;;  %v4818_v61 = vperm.slane %v1543_v31, 3 }
 0x253   :  { %v4834_v42 = vperm.slane %v1428_v43, 0  ;;  %v4836_v32 = vperm.slane %v1456_v8, 1  ;;  %v4838_v19 = vperm.slane %v1500_v2, 2  ;;  %v4840_v56 = vperm.slane %v1544_v44, 3 }
 0x254   :  { %v1451_v14 = vmul.f32 %v4808_v25, %v6653_v21  ;;  %v1479_v6 = vmul.f32 %v4810_v27, %v6654_v54  ;;  %v1523_v11 = vmul.f32 %v4812_v3, %v6655_v29  ;;  %v1567_v10 = vmul.f32 %v4818_v61, %v6656_v57 }
 0x255   :  { %v1452_v0 = vmul.f32 %v4834_v42, %v6653_v21  ;;  %v1480_v28 = vmul.f32 %v4836_v32, %v6654_v54  ;;  %v1524_v34 = vmul.f32 %v4838_v19, %v6655_v29  ;;  %v1447_v23 = vmul.f32 %v4808_v25, %v6657_v17 }
 0x256   :  { %v1495_v59 = vadd.f32 %v1479_v6, %v1451_v14  ;;  %v1475_v16 = vmul.f32 %v4810_v27, %v6658_v45  ;;  %v1568_v12 = vmul.f32 %v4840_v56, %v6656_v57  ;;  %v1448_v55 = vmul.f32 %v4834_v42, %v6657_v17 }
 0x257   :  { %v1496_v1 = vadd.f32 %v1480_v28, %v1452_v0  ;;  %v1476_v9 = vmul.f32 %v4836_v32, %v6658_v45  ;;  %v1519_v18 = vmul.f32 %v4812_v3, %v6659_v5  ;;  %v1520_v49 = vmul.f32 %v4838_v19, %v6659_v5 }
 0x258   :  { %v1539_v52 = vadd.f32 %v1523_v11, %v1495_v59  ;;  %v1491_v4 = vadd.f32 %v1475_v16, %v1447_v23  ;;  %v1443_v6 = vmul.f32 %v4808_v25, %v6661_v22  ;;  %v1471_v59 = vmul.f32 %v4810_v27, %v6662_v51 }
 0x259   :  { %v1540_v38 = vadd.f32 %v1524_v34, %v1496_v1  ;;  %v1492_v14 = vadd.f32 %v1476_v9, %v1448_v55  ;;  %v1563_v43 = vmul.f32 %v4818_v61, %v6660_v53  ;;  %v1444_v28 = vmul.f32 %v4834_v42, %v6661_v22 }
 0x25a   :  { %v1583_v40 = vadd.f32 %v1567_v10, %v1539_v52  ;;  %v1564_v1 = vmul.f32 %v4840_v56, %v6660_v53  ;;  %v1515_v34 = vmul.f32 %v4812_v3, %v3969_v63  ;;  %v1559_v9 = vmul.f32 %v4818_v61, %v4025_v26 }
 0x25b   :  { %v1584_v10 = vadd.f32 %v1568_v12, %v1540_v38  ;;  %v1536_v44 = vadd.f32 %v1520_v49, %v1492_v14  ;;  %v4903_v14 = vpop.permute.xlu1 %1594 }
 0x25c   :  { %v4827_v36 = vadd.f32 %v4824_v13, %v1583_v40  ;;  %v1535_v40 = vadd.f32 %v1519_v18, %v1491_v4 }
 0x25d   :  { %v1580_v12 = vadd.f32 %v1564_v1, %v1536_v44 }
 0x25e   :  { %v3277_v62 = vmul.f32 -1.442695, %v4827_v36  ;;  %v1579_v0 = vadd.f32 %v1563_v43, %v1535_v40 }
 0x260   :  { %3464 = vpow2.f32 %v3277_v62  ;;  %v4876_v62 = vadd.f32 %v4824_v13, %v1584_v10 }
 0x262   :  { %v3278_v16 = vmul.f32 -1.442695, %v4876_v62 }
 0x266   :  { %v3465_v11 = vpop.eup %3464 }
 0x267   :  { %v4873_v2 = vadd.f32 1.0, %v3465_v11  ;;  %v1467_v11 = vmul.f32 %v4810_v27, %v6681_v41 }
 0x269   :  { %3466 = vrcp.f32 %v4873_v2  ;;  %v1876_v18 = vand.u32 2147483647, %v4873_v2  ;;  %vm1872_vm7 = vweird.f32 %v4873_v2 }
 0x26a   :  { %3468 = vpow2.f32 %v3278_v16  ;;  %v1468_v16 = vmul.f32 %v4836_v32, %v6681_v41 }
 0x26b   :  { %vm1877_vm9 = vcmp.eq.f32.partialorder %v1876_v18, 8.507059e+37 }
 0x26f   :  { %v1366_v58 = vpop.f32.mrf.mxu2 }
 0x270   :  { %v1367_v37 = vadd.f32 %v1366_v58, %v6693_v60  ;;  %v1487_v58 = vadd.f32 %v1471_v59, %v1443_v6  ;;  %v1439_v59 = vmul.f32 %v4808_v25, %v6663_v47  ;;  %v1511_v25 = vmul.f32 %v4812_v3, %v6683_v50 }
 0x272   :  { %v1395_v52 = vmul.f32 %v4781_v7, %v1367_v37  ;;  %v4882_v37 = vpop.permute.xlu0 %1599  ;;  %v1531_v55 = vadd.f32 %v1515_v34, %v1487_v58  ;;  %v1878_v58 = vand.u32 2147483648, %v4873_v2 }
 0x273   :  { %v4899_v49 = vadd.f32 %v4882_v37, %v1580_v12 }
 0x275   :  { %v3274_v10 = vmul.f32 -1.442695, %v4899_v49 }
 0x279   :  { %v1386_v15 = vpop.f32.mrf.mxu3 }
 0x27a   :  { %v1387_v46 = vadd.f32 %v1386_v15, %v6693_v60 }
 0x27c   :  { %v1396_v31 = vmul.f32 %v4781_v7, %v1387_v46  ;;  %v1472_v7 = vmul.f32 %v4836_v32, %v6662_v51  ;;  %v4892_v46 = vadd.f32 %v4882_v37, %v1579_v0  ;;  %v1483_v0 = vadd.f32 %v1467_v11, %v1439_v59 }
 0x27e   :  { %v1402_v8 = vrot.slane %v1396_v31, 4  ;;  %v1488_v38 = vadd.f32 %v1472_v7, %v1444_v28  ;;  %v3273_v4 = vmul.f32 -1.442695, %v4892_v46  ;;  %v1516_v31 = vmul.f32 %v4838_v19, %v3969_v63 }
 0x27f   :  { %v1555_v7 = vmul.f32 %v4818_v61, %v6686_v30  ;;  %v1527_v34 = vadd.f32 %v1511_v25, %v1483_v0 }
 0x280   :  { %v1404_v15 = vsel %vm6697_vm6, %v1395_v52, %v1402_v8  ;;  %3470 = vpow2.f32 %v3273_v4  ;;  %v3467_v52 = vpop.eup %3466  ;;  %v1532_v43 = vadd.f32 %v1516_v31, %v1488_v38  ;;  %v1560_v8 = vmul.f32 %v4840_v56, %v4025_v26  ;;  %v4933_v4 = vpop.permute.xlu2 %1589 }
 0x281   :  { %v1408_v23 = vsub.f32 %v1391_v24, %v1404_v15  ;;  %v1575_v24 = vadd.f32 %v1559_v9, %v1531_v55  ;;  %v1868_v44 = vmul.f32 %v3467_v52, %v4873_v2  ;;  %3472 = vpow2.f32 %v3274_v10  ;;  %v3469_v15 = vpop.eup %3468 }
 0x282   :  { %v1576_v28 = vadd.f32 %v1560_v8, %v1532_v43  ;;  %v4928_v3 = vadd.f32 1.0, %v3469_v15  ;;  %vm1873_vm10 = vweird.f32 %v3467_v52  ;;  %v1571_v61 = vadd.f32 %v1555_v7, %v1527_v34 }
 0x283   :  { %v3260_v6 = vclamps-f32 %v1408_v23, 1.0  ;;  %v4911_v40 = vadd.f32 %v4903_v14, %v1575_v24  ;;  %v1869_v1 = vsub.f32 1.0, %v1868_v44  ;;  %v1440_v23 = vmul.f32 %v4834_v42, %v6663_v47  ;;  %vm1874_vm8 = vmor %vm1872_vm7, %vm1873_vm10 }
 0x284   :  { %v4931_v55 = vadd.f32 %v4903_v14, %v1576_v28  ;;  %v1418_v42 = vmul.f32 %v1416_v20, %v4430_v33  ;;  %v1879_v10 = vor.u32 1.1754944e-38, %v1878_v58  ;;  %v1512_v33 = vmul.f32 %v4838_v19, %v6683_v50 }
 0x285   :  { %v3269_v27 = vmul.f32 -1.442695, %v4911_v40  ;;  %v1415_v12 = vmul.f32 %v3260_v6, %v1413_v39  ;;  %v1870_v38 = vmul.f32 %v3467_v52, %v1869_v1  ;;  %v1484_v39 = vadd.f32 %v1468_v16, %v1440_v23 }
 0x286   :  { %v3471_v9 = vpop.eup %3470  ;;  %v3270_v31 = vmul.f32 -1.442695, %v4931_v55  ;;  %v4944_v6 = vadd.f32 %v4933_v4, %v1571_v61  ;;  %v1891_v2 = vand.u32 2147483647, %v4928_v3  ;;  %v1556_v43 = vmul.f32 %v4840_v56, %v6686_v30 }
 0x287   :  { %3474 = vpow2.f32 %v3269_v27  ;;  %v1871_v32 = vadd.f32 %v3467_v52, %v1870_v38  ;;  %v4940_v24 = vadd.f32 1.0, %v3471_v9  ;;  %v3473_v59 = vpop.eup %3472  ;;  %v4946_v11 = vadd.f32 %v1418_v42, %v1415_v12 }
 0x288   :  { %3476 = vrcp.f32 %v4928_v3  ;;  %v1893_v0 = vand.u32 2147483648, %v4928_v3  ;;  %v4955_v25 = vadd.f32 1.0, %v3473_v59  ;;  %v3265_v19 = vmul.f32 -1.442695, %v4944_v6 }
 0x289   :  { %v1875_v20 = vsel %vm1874_vm8, %v3467_v52, %v1871_v32  ;;  %3478 = vrcp.f32 %v4940_v24  ;;  %v1528_v52 = vadd.f32 %v1512_v33, %v1484_v39  ;;  %vm1887_vm11 = vweird.f32 %v4928_v3 }
 0x28a   :  { %v1880_v44 = vsel %vm1877_vm9, %v1879_v10, %v1875_v20  ;;  %3480 = vpow2.f32 %v3270_v31  ;;  %v1816_v28 = vand.u32 2147483647, %v4940_v24  ;;  %v1818_v56 = vand.u32 2147483648, %v4940_v24 }
 0x28b   :  { %v1939_v18 = vmul.f32 %v1880_v44, %v4827_v36  ;;  %3482 = vrcp.f32 %v4955_v25  ;;  %vm4966_vm12 = vcmp.eq.f32.partialorder %v1891_v2, 8.507059e+37  ;;  %v1833_v36 = vand.u32 2147483648, %v4955_v25 }
 0x28c   :  { %v1894_v1 = vor.u32 1.1754944e-38, %v1893_v0  ;;  %vm1812_vm13 = vweird.f32 %v4940_v24  ;;  %v1429_v23 = vperm.slane %v4946_v11, 0  ;;  %v1831_v9 = vand.u32 2147483647, %v4955_v25 }
 0x28d   :  { %v3475_v8 = vpop.eup %3474  ;;  %1955 = vmatpush.msra.mxu0 %v1939_v18  ;;  %v1572_v38 = vadd.f32 %v1556_v43, %v1528_v52  ;;  %vm4977_vm14 = vcmp.eq.f32.partialorder %v1816_v28, 8.507059e+37  ;;  %v1819_v32 = vor.u32 1.1754944e-38, %v1818_v56  ;;  %vm1827_vm0 = vweird.f32 %v4955_v25 }
 0x28e   :  { %v4958_v58 = vadd.f32 1.0, %v3475_v8  ;;  %v3477_v27 = vpop.eup %3476  ;;  %v1834_v10 = vor.u32 1.1754944e-38, %v1833_v36  ;;  %vm4990_vm1 = vcmp.eq.f32.partialorder %v1831_v9, 8.507059e+37  ;;  %v4995_v52 = vperm.slane %v1429_v23, 0 }
 0x28f   :  { %v1883_v7 = vmul.f32 %v3477_v27, %v4928_v3  ;;  %v3479_v16 = vpop.eup %3478  ;;  %vm1888_vm15 = vweird.f32 %v3477_v27  ;;  %v4987_v8 = vadd.f32 %v4933_v4, %v1572_v38  ;;  %v1457_v36 = vperm.slane %v4946_v11, 1 }
 0x290   :  { %3484 = vrcp.f32 %v4958_v58  ;;  %v1758_v34 = vand.u32 2147483648, %v4958_v58  ;;  %v3481_v61 = vpop.eup %3480  ;;  %v1808_v42 = vmul.f32 %v3479_v16, %v4940_v24  ;;  %v1756_v31 = vand.u32 2147483647, %v4958_v58  ;;  %vm1889_vm4 = vmor %vm1887_vm11, %vm1888_vm15 }
 0x291   :  { %v1884_v12 = vsub.f32 1.0, %v1883_v7  ;;  %3486 = vpow2.f32 %v3265_v19  ;;  %v4983_v33 = vadd.f32 1.0, %v3481_v61  ;;  %v3483_v20 = vpop.eup %3482  ;;  %vm1813_vm2 = vweird.f32 %v3479_v16 }
 0x292   :  { %v1809_v2 = vsub.f32 1.0, %v1808_v42  ;;  %vm1752_vm3 = vweird.f32 %v4958_v58  ;;  %v1759_v43 = vor.u32 1.1754944e-38, %v1758_v34  ;;  %v1823_v18 = vmul.f32 %v3483_v20, %v4955_v25  ;;  %vm1814_vm6 = vmor %vm1812_vm13, %vm1813_vm2 }
 0x293   :  { %v1885_v59 = vmul.f32 %v3477_v27, %v1884_v12  ;;  %3488 = vrcp.f32 %v4983_v33  ;;  %vm5001_vm5 = vcmp.eq.f32.partialorder %v1756_v31, 8.507059e+37  ;;  %v1501_v34 = vperm.slane %v4946_v11, 2 }
 0x294   :  { %v1810_v28 = vmul.f32 %v3479_v16, %v1809_v2  ;;  %v1824_v38 = vsub.f32 1.0, %v1823_v18  ;;  %v1771_v23 = vand.u32 2147483647, %v4983_v33  ;;  %v1773_v61 = vand.u32 2147483648, %v4983_v33 }
 0x295   :  { %v1886_v0 = vadd.f32 %v3477_v27, %v1885_v59  ;;  %vm1828_vm10 = vweird.f32 %v3483_v20  ;;  %vm1767_vm8 = vweird.f32 %v4983_v33 }
 0x296   :  { %v3485_v44 = vpop.eup %3484  ;;  %v1811_v42 = vadd.f32 %v3479_v16, %v1810_v28  ;;  %v1825_v48 = vmul.f32 %v3483_v20, %v1824_v38  ;;  %vm1829_vm9 = vmor %vm1827_vm0, %vm1828_vm10  ;;  %vm5026_vm11 = vcmp.eq.f32.partialorder %v1771_v23, 8.507059e+37  ;;  %v1453_v23 = vmul.f32 %v4995_v52, %v6653_v21 }
 0x297   :  { %v1748_v56 = vmul.f32 %v3485_v44, %v4958_v58  ;;  %v3487_v12 = vpop.eup %3486  ;;  %v1890_v9 = vsel %vm1889_vm4, %v3477_v27, %v1886_v0  ;;  %v1545_v27 = vperm.slane %v4946_v11, 3  ;;  %vm1753_vm7 = vweird.f32 %v3485_v44 }
 0x298   :  { %v1895_v3 = vsel %vm4966_vm12, %v1894_v1, %v1890_v9  ;;  %v5011_v31 = vadd.f32 1.0, %v3487_v12  ;;  %v1815_v0 = vsel %vm1814_vm6, %v3479_v16, %v1811_v42  ;;  %v1826_v28 = vadd.f32 %v3483_v20, %v1825_v48  ;;  %vm1754_vm12 = vmor %vm1752_vm3, %vm1753_vm7 }
 0x299   :  { %v1749_v59 = vsub.f32 1.0, %v1748_v56  ;;  %v1940_v2 = vmul.f32 %v1895_v3, %v4876_v62  ;;  %v3489_v15 = vpop.eup %3488  ;;  %v1820_v1 = vsel %vm4977_vm14, %v1819_v32, %v1815_v0  ;;  %v1774_v62 = vor.u32 1.1754944e-38, %v1773_v61 }
 0x29a   :  { %3490 = vrcp.f32 %v5011_v31  ;;  %v1935_v24 = vmul.f32 %v1820_v1, %v4892_v46  ;;  %v1763_v16 = vmul.f32 %v3489_v15, %v4983_v33  ;;  %v1696_v9 = vand.u32 2147483647, %v5011_v31 }
 0x29b   :  { %v1750_v18 = vmul.f32 %v3485_v44, %v1749_v59  ;;  %1975 = vmatpush.msra.mxu1 %v1940_v2  ;;  %v1830_v39 = vsel %vm1829_vm9, %v3483_v20, %v1826_v28  ;;  %vm1768_vm13 = vweird.f32 %v3489_v15  ;;  %v1698_v48 = vand.u32 2147483648, %v5011_v31 }
 0x29c   :  { %v3266_v46 = vmul.f32 -1.442695, %v4987_v8  ;;  %1956 = vmatpush.msra.mxu0 %v1935_v24  ;;  %v1835_v25 = vsel %vm4990_vm1, %v1834_v10, %v1830_v39  ;;  %v1764_v38 = vsub.f32 1.0, %v1763_v16  ;;  %vm1692_vm14 = vweird.f32 %v5011_v31  ;;  %vm1769_vm0 = vmor %vm1767_vm8, %vm1768_vm13 }
 0x29d   :  { %v1751_v56 = vadd.f32 %v3485_v44, %v1750_v18  ;;  %v1936_v20 = vmul.f32 %v1835_v25, %v4899_v49  ;;  %v5044_v61 = vperm.slane %v1457_v36, 1  ;;  %v5047_v10 = vperm.slane %v1501_v34, 2 }
 0x29e   :  { %3492 = vpow2.f32 %v3266_v46  ;;  %v1765_v19 = vmul.f32 %v3489_v15, %v1764_v38  ;;  %v1458_v34 = vperm.slane %v4946_v11, 5  ;;  %v1502_v18 = vperm.slane %v4946_v11, 6 }
 0x29f   :  { %v1755_v32 = vsel %vm1754_vm12, %v3485_v44, %v1751_v56  ;;  %v5049_v44 = vperm.slane %v1545_v27, 3  ;;  %1976 = vmatpush.msra.mxu1 %v1936_v20  ;;  %v1481_v49 = vmul.f32 %v5044_v61, %v6654_v54  ;;  %v1525_v36 = vmul.f32 %v5047_v10, %v6655_v29 }
 0x2a0   :  { %v1760_v58 = vsel %vm5001_vm5, %v1759_v43, %v1755_v32  ;;  %v3491_v3 = vpop.eup %3490  ;;  %v1430_v43 = vperm.slane %v4946_v11, 4  ;;  %v1766_v7 = vadd.f32 %v3489_v15, %v1765_v19  ;;  %v5066_v28 = vperm.slane %v1458_v34, 1 }
 0x2a1   :  { %v1931_v42 = vmul.f32 %v1760_v58, %v4911_v40  ;;  %v1688_v59 = vmul.f32 %v3491_v3, %v5011_v31  ;;  %vm1693_vm15 = vweird.f32 %v3491_v3  ;;  %v1569_v40 = vmul.f32 %v5049_v44, %v6656_v57 }
 0x2a2   :  { %v1497_v27 = vadd.f32 %v1481_v49, %v1453_v23  ;;  %v5063_v0 = vperm.slane %v1430_v43, 0  ;;  %v1770_v1 = vsel %vm1769_vm0, %v3489_v15, %v1766_v7  ;;  %v1546_v24 = vperm.slane %v4946_v11, 7  ;;  %vm1694_vm2 = vmor %vm1692_vm14, %vm1693_vm15 }
 0x2a3   :  { %1957 = vmatpush.msra.mxu0 %v1931_v42  ;;  %v1689_v2 = vsub.f32 1.0, %v1688_v59  ;;  %v1449_v56 = vmul.f32 %v4995_v52, %v6657_v17  ;;  %v1775_v39 = vsel %vm5026_vm11, %v1774_v62, %v1770_v1  ;;  %v1482_v15 = vmul.f32 %v5066_v28, %v6654_v54 }
 0x2a4   :  { %v3493_v16 = vpop.eup %3492  ;;  %v1541_v46 = vadd.f32 %v1525_v36, %v1497_v27  ;;  %v1454_v25 = vmul.f32 %v5063_v0, %v6653_v21  ;;  %v1932_v32 = vmul.f32 %v1775_v39, %v4931_v55  ;;  %v5080_v23 = vperm.slane %v1502_v18, 2 }
 0x2a5   :  { %v1690_v33 = vmul.f32 %v3491_v3, %v1689_v2  ;;  %v5076_v38 = vadd.f32 1.0, %v3493_v16  ;;  %v5082_v42 = vperm.slane %v1546_v24, 3  ;;  %v1477_v62 = vmul.f32 %v5044_v61, %v6658_v45 }
 0x2a6   :  { %v1585_v58 = vadd.f32 %v1569_v40, %v1541_v46  ;;  %1977 = vmatpush.msra.mxu1 %v1932_v32  ;;  %vm1697_vm3 = vcmp.eq.f32.partialorder %v1696_v9, 8.507059e+37  ;;  %v1699_v55 = vor.u32 1.1754944e-38, %v1698_v48  ;;  %v1498_v59 = vadd.f32 %v1482_v15, %v1454_v25 }
 0x2a7   :  { %v1691_v20 = vadd.f32 %v3491_v3, %v1690_v33  ;;  %3494 = vrcp.f32 %v5076_v38  ;;  %v1526_v49 = vmul.f32 %v5080_v23, %v6655_v29  ;;  %v1711_v7 = vand.u32 2147483647, %v5076_v38 }
 0x2a8   :  { %v5091_v19 = vadd.f32 %v4824_v13, %v1585_v58  ;;  %v1570_v36 = vmul.f32 %v5082_v42, %v6656_v57  ;;  %v1493_v40 = vadd.f32 %v1477_v62, %v1449_v56  ;;  %v1521_v34 = vmul.f32 %v5047_v10, %v6659_v5 }
 0x2a9   :  { %v1695_v12 = vsel %vm1694_vm2, %v3491_v3, %v1691_v20  ;;  %v1542_v48 = vadd.f32 %v1526_v49, %v1498_v59  ;;  %v1713_v3 = vand.u32 2147483648, %v5076_v38  ;;  %v1450_v2 = vmul.f32 %v5063_v0, %v6657_v17 }
 0x2aa   :  { %v1700_v43 = vsel %vm1697_vm3, %v1699_v55, %v1695_v12  ;;  %v3279_v9 = vmul.f32 -1.442695, %v5091_v19  ;;  %v1478_v27 = vmul.f32 %v5066_v28, %v6658_v45  ;;  %vm1707_vm1 = vweird.f32 %v5076_v38 }
 0x2ab   :  { %v1927_v31 = vmul.f32 %v1700_v43, %v4944_v6  ;;  %v1586_v6 = vadd.f32 %v1570_v36, %v1542_v48  ;;  %v1565_v18 = vmul.f32 %v5049_v44, %v6660_v53  ;;  %v1522_v1 = vmul.f32 %v5080_v23, %v6659_v5 }
 0x2ac   :  { %3496 = vpow2.f32 %v3279_v9  ;;  %vm6708_vm4 = vcmask 261120   ;;  %v1537_v56 = vadd.f32 %v1521_v34, %v1493_v40  ;;  %v1494_v16 = vadd.f32 %v1478_v27, %v1450_v2 }
 0x2ad   :  { %1958 = vmatpush.msra.mxu0 %v1927_v31  ;;  %v3495_v24 = vpop.eup %3494  ;;  %v1445_v39 = vmul.f32 %v4995_v52, %v6661_v22  ;;  %v1473_v33 = vmul.f32 %v5044_v61, %v6662_v51  ;;  %v5120_v25 = vadd.f32 %v4824_v13, %v1586_v6  ;;  %v1566_v32 = vmul.f32 %v5082_v42, %v6660_v53  ;;  %vm6709_vm7 = vmmov %vm6708_vm4 }
 0x2ae   :  { %3281 = vmatmul.msk.f32.vlgmr.msra.gmra.mxu0 %vm6708_vm4, %v4773_v35  ;;  %v1703_v46 = vmul.f32 %v3495_v24, %v5076_v38  ;;  %vm1708_vm5 = vweird.f32 %v3495_v24  ;;  %v1581_v15 = vadd.f32 %v1565_v18, %v1537_v56  ;;  %v1538_v20 = vadd.f32 %v1522_v1, %v1494_v16 }
 0x2af   :  { %v1489_v58 = vadd.f32 %v1473_v33, %v1445_v39  ;;  %v1517_v62 = vmul.f32 %v5047_v10, %v3969_v63  ;;  %v3280_v12 = vmul.f32 -1.442695, %v5120_v25  ;;  %v1446_v59 = vmul.f32 %v5063_v0, %v6661_v22  ;;  %vm1709_vm6 = vmor %vm1707_vm1, %vm1708_vm5 }
 0x2b0   :  { %v1704_v55 = vsub.f32 1.0, %v1703_v46  ;;  %v1474_v49 = vmul.f32 %v5066_v28, %v6662_v51  ;;  %v5132_v13 = vadd.f32 %v4882_v37, %v1581_v15  ;;  %v1582_v43 = vadd.f32 %v1566_v32, %v1538_v20 }
 0x2b1   :  { %v1533_v36 = vadd.f32 %v1517_v62, %v1489_v58  ;;  %v1561_v31 = vmul.f32 %v5049_v44, %v4025_v26  ;;  %3498 = vpow2.f32 %v3280_v12  ;;  %v1518_v34 = vmul.f32 %v5080_v23, %v3969_v63 }
 0x2b2   :  { %v3497_v9 = vpop.eup %3496  ;;  %v1705_v48 = vmul.f32 %v3495_v24, %v1704_v55  ;;  %v1490_v40 = vadd.f32 %v1474_v49, %v1446_v59  ;;  %v3275_v27 = vmul.f32 -1.442695, %v5132_v13  ;;  %v5140_v6 = vadd.f32 %v4882_v37, %v1582_v43 }
 0x2b3   :  { %v1685_v2 = vadd.f32 1.0, %v3497_v9  ;;  %v1577_v18 = vadd.f32 %v1561_v31, %v1533_v36  ;;  %v1441_v16 = vmul.f32 %v4995_v52, %v6663_v47  ;;  %v1469_v39 = vmul.f32 %v5044_v61, %v6681_v41 }
 0x2b4   :  { %v1706_v1 = vadd.f32 %v3495_v24, %v1705_v48  ;;  %v1534_v56 = vadd.f32 %v1518_v34, %v1490_v40  ;;  %vm1712_vm10 = vcmp.eq.f32.partialorder %v1711_v7, 8.507059e+37  ;;  %v1714_v33 = vor.u32 1.1754944e-38, %v1713_v3 }
 0x2b5   :  { %3500 = vrcp.f32 %v1685_v2  ;;  %v1562_v37 = vmul.f32 %v5082_v42, %v4025_v26  ;;  %v3276_v32 = vmul.f32 -1.442695, %v5140_v6  ;;  %v5153_v15 = vadd.f32 %v4903_v14, %v1577_v18 }
 0x2b6   :  { %v1710_v46 = vsel %vm1709_vm6, %v3495_v24, %v1706_v1  ;;  %3502 = vpow2.f32 %v3275_v27  ;;  %v1485_v7 = vadd.f32 %v1469_v39, %v1441_v16  ;;  %v1513_v24 = vmul.f32 %v5047_v10, %v6683_v50 }
 0x2b7   :  { %v1715_v52 = vsel %vm1712_vm10, %v1714_v33, %v1710_v46  ;;  %v1578_v20 = vadd.f32 %v1562_v37, %v1534_v56  ;;  %v3499_v61 = vpop.eup %3498  ;;  %3504 = vpow2.f32 %v3276_v32  ;;  %v3271_v38 = vmul.f32 -1.442695, %v5153_v15 }
 0x2b8   :  { %v1928_v58 = vmul.f32 %v1715_v52, %v4987_v8  ;;  %v5157_v3 = vadd.f32 1.0, %v3499_v61  ;;  %v1906_v12 = vand.u32 2147483647, %v1685_v2  ;;  %v1529_v43 = vadd.f32 %v1513_v24, %v1485_v7 }
 0x2b9   :  { %v5160_v62 = vadd.f32 %v4903_v14, %v1578_v20  ;;  %3506 = vpow2.f32 %v3271_v38  ;;  %v1442_v14 = vmul.f32 %v5063_v0, %v6663_v47  ;;  %v1470_v10 = vmul.f32 %v5066_v28, %v6681_v41 }
 0x2ba   :  { %1978 = vmatpush.msra.mxu1 %v1928_v58  ;;  %3508 = vrcp.f32 %v5157_v3  ;;  %v1908_v48 = vand.u32 2147483648, %v1685_v2  ;;  %vm1902_vm8 = vweird.f32 %v1685_v2  ;;  %vm5176_vm9 = vcmp.eq.f32.partialorder %v1906_v12, 8.507059e+37 }
 0x2bb   :  { %v3501_v55 = vpop.eup %3500  ;;  %3282 = vmatmul.msk.f32.vlgmr.msra.gmra.mxu1 %vm6709_vm7, %v4773_v35  ;;  %v3272_v49 = vmul.f32 -1.442695, %v5160_v62  ;;  %v1557_v35 = vmul.f32 %v5049_v44, %v6686_v30  ;;  %v1921_v1 = vand.u32 2147483647, %v5157_v3  ;;  %v1923_v56 = vand.u32 2147483648, %v5157_v3 }
 0x2bc   :  { %v3503_v8 = vpop.eup %3502  ;;  %v1898_v59 = vmul.f32 %v3501_v55, %v1685_v2  ;;  %vm1903_vm11 = vweird.f32 %v3501_v55  ;;  %v1486_v44 = vadd.f32 %v1470_v10, %v1442_v14  ;;  %v1909_v33 = vor.u32 1.1754944e-38, %v1908_v48 }
 0x2bd   :  { %v5168_v36 = vadd.f32 1.0, %v3503_v8  ;;  %v3505_v31 = vpop.eup %3504  ;;  %3510 = vpow2.f32 %v3272_v49  ;;  %v1573_v28 = vadd.f32 %v1557_v35, %v1529_v43  ;;  %vm1904_vm12 = vmor %vm1902_vm8, %vm1903_vm11  ;;  %vm1917_vm13 = vweird.f32 %v5157_v3 }
 0x2be   :  { %v1899_v9 = vsub.f32 1.0, %v1898_v59  ;;  %v5181_v0 = vadd.f32 1.0, %v3505_v31  ;;  %v1514_v32 = vmul.f32 %v5080_v23, %v6683_v50  ;;  %vm5201_vm14 = vcmp.eq.f32.partialorder %v1921_v1, 8.507059e+37 }
 0x2bf   :  { %3512 = vrcp.f32 %v5168_v36  ;;  %v3507_v34 = vpop.eup %3506  ;;  %v1846_v46 = vand.u32 2147483647, %v5168_v36  ;;  %v1848_v58 = vand.u32 2147483648, %v5168_v36  ;;  %v5197_v38 = vadd.f32 %v4933_v4, %v1573_v28 }
 0x2c0   :  { %v1900_v27 = vmul.f32 %v3501_v55, %v1899_v9  ;;  %v3509_v18 = vpop.eup %3508  ;;  %v5185_v16 = vadd.f32 1.0, %v3507_v34  ;;  %3514 = vrcp.f32 %v5181_v0  ;;  %v1924_v12 = vor.u32 1.1754944e-38, %v1923_v56 }
 0x2c1   :  { %v1913_v37 = vmul.f32 %v3509_v18, %v5157_v3  ;;  %v1530_v8 = vadd.f32 %v1514_v32, %v1486_v44  ;;  %vm1918_vm15 = vweird.f32 %v3509_v18  ;;  %vm1842_vm0 = vweird.f32 %v5168_v36 }
 0x2c2   :  { %v1901_v39 = vadd.f32 %v3501_v55, %v1900_v27  ;;  %3516 = vrcp.f32 %v5185_v16  ;;  %vm5208_vm2 = vcmp.eq.f32.partialorder %v1846_v46, 8.507059e+37  ;;  %v1558_v14 = vmul.f32 %v5082_v42, %v6686_v30  ;;  %vm1919_vm3 = vmor %vm1917_vm13, %vm1918_vm15 }
 0x2c3   :  { %v3511_v52 = vpop.eup %3510  ;;  %v1914_v61 = vsub.f32 1.0, %v1913_v37  ;;  %v3267_v48 = vmul.f32 -1.442695, %v5197_v38  ;;  %vm1857_vm1 = vweird.f32 %v5181_v0  ;;  %v1861_v44 = vand.u32 2147483647, %v5181_v0 }
 0x2c4   :  { %v1905_v20 = vsel %vm1904_vm12, %v3501_v55, %v1901_v39  ;;  %v5212_v43 = vadd.f32 1.0, %v3511_v52  ;;  %v1574_v34 = vadd.f32 %v1558_v14, %v1530_v8  ;;  %v1863_v3 = vand.u32 2147483648, %v5181_v0 }
 0x2c5   :  { %v3513_v7 = vpop.eup %3512  ;;  %v1910_v2 = vsel %vm5176_vm9, %v1909_v33, %v1905_v20  ;;  %v1915_v59 = vmul.f32 %v3509_v18, %v1914_v61  ;;  %v1788_v46 = vand.u32 2147483648, %v5185_v16  ;;  %v1786_v61 = vand.u32 2147483647, %v5185_v16 }
 0x2c6   :  { %v1941_v23 = vmul.f32 %v1910_v2, %v5091_v19  ;;  %v1838_v55 = vmul.f32 %v3513_v7, %v5168_v36  ;;  %v3515_v10 = vpop.eup %3514  ;;  %v1849_v19 = vor.u32 1.1754944e-38, %v1848_v58  ;;  %3518 = vrcp.f32 %v5212_v43 }
 0x2c7   :  { %v1916_v31 = vadd.f32 %v3509_v18, %v1915_v59  ;;  %v1853_v40 = vmul.f32 %v3515_v10, %v5181_v0  ;;  %vm1843_vm4 = vweird.f32 %v3513_v7  ;;  %3520 = vpow2.f32 %v3267_v48 }
 0x2c8   :  { %1995 = vmatpush.msra.mxu2 %v1941_v23  ;;  %v1839_v9 = vsub.f32 1.0, %v1838_v55  ;;  %v3517_v35 = vpop.eup %3516  ;;  %vm1844_vm5 = vmor %vm1842_vm0, %vm1843_vm4  ;;  %vm1858_vm6 = vweird.f32 %v3515_v10  ;;  %v5232_v32 = vadd.f32 %v4933_v4, %v1574_v34  ;;  %vm1782_vm7 = vweird.f32 %v5185_v16 }
 0x2c9   :  { %v1920_v27 = vsel %vm1919_vm3, %v3509_v18, %v1916_v31  ;;  %v1778_v28 = vmul.f32 %v3517_v35, %v5185_v16  ;;  %v1854_v56 = vsub.f32 1.0, %v1853_v40  ;;  %vm1783_vm10 = vweird.f32 %v3517_v35  ;;  %vm1859_vm8 = vmor %vm1857_vm1, %vm1858_vm6 }
 0x2ca   :  { %v1840_v42 = vmul.f32 %v3513_v7, %v1839_v9  ;;  %v1925_v1 = vsel %vm5201_vm14, %v1924_v12, %v1920_v27  ;;  %v3268_v36 = vmul.f32 -1.442695, %v5232_v32  ;;  %v1864_v4 = vor.u32 1.1754944e-38, %v1863_v3  ;;  %vm1784_vm11 = vmor %vm1782_vm7, %vm1783_vm10 }
 0x2cb   :  { %v1942_v39 = vmul.f32 %v1925_v1, %v5120_v25  ;;  %v1779_v37 = vsub.f32 1.0, %v1778_v28  ;;  %v1855_v18 = vmul.f32 %v3515_v10, %v1854_v56  ;;  %vm1862_vm9 = vcmp.eq.f32.partialorder %v1861_v44, 8.507059e+37 }
 0x2cc   :  { %v1841_v33 = vadd.f32 %v3513_v7, %v1840_v42  ;;  %v3519_v25 = vpop.eup %3518  ;;  %v1789_v23 = vor.u32 1.1754944e-38, %v1788_v46  ;;  %3522 = vpow2.f32 %v3268_v36  ;;  %vm1787_vm12 = vcmp.eq.f32.partialorder %v1786_v61, 8.507059e+37 }
 0x2cd   :  { %2015 = vmatpush.msra.mxu3 %v1942_v39  ;;  %v1780_v20 = vmul.f32 %v3517_v35, %v1779_v37  ;;  %v1856_v2 = vadd.f32 %v3515_v10, %v1855_v18  ;;  %v1793_v12 = vmul.f32 %v3519_v25, %v5212_v43  ;;  %v3521_v59 = vpop.eup %3520  ;;  %v1803_v0 = vand.u32 2147483648, %v5212_v43 }
 0x2ce   :  { %v1845_v52 = vsel %vm1844_vm5, %v3513_v7, %v1841_v33  ;;  %v1673_v31 = vadd.f32 1.0, %v3521_v59  ;;  %vm1798_vm13 = vweird.f32 %v3519_v25  ;;  %vm1797_vm14 = vweird.f32 %v5212_v43 }
 0x2cf   :  { %v1850_v58 = vsel %vm5208_vm2, %v1849_v19, %v1845_v52  ;;  %v1781_v7 = vadd.f32 %v3517_v35, %v1780_v20  ;;  %v1860_v8 = vsel %vm1859_vm8, %v3515_v10, %v1856_v2  ;;  %v1794_v49 = vsub.f32 1.0, %v1793_v12  ;;  %vm1799_vm15 = vmor %vm1797_vm14, %vm1798_vm13 }
 0x2d0   :  { %v1937_v24 = vmul.f32 %v1850_v58, %v5132_v13  ;;  %v1865_v55 = vsel %vm1862_vm9, %v1864_v4, %v1860_v8  ;;  %v1801_v10 = vand.u32 2147483647, %v5212_v43  ;;  %3524 = vrcp.f32 %v1673_v31 }
 0x2d1   :  { %v1785_v16 = vsel %vm1784_vm11, %v3517_v35, %v1781_v7  ;;  %v1938_v13 = vmul.f32 %v1865_v55, %v5140_v6  ;;  %v1795_v19 = vmul.f32 %v3519_v25, %v1794_v49  ;;  %v1804_v40 = vor.u32 1.1754944e-38, %v1803_v0 }
 0x2d2   :  { %1996 = vmatpush.msra.mxu2 %v1937_v24  ;;  %v1790_v14 = vsel %vm1787_vm12, %v1789_v23, %v1785_v16  ;;  %v3523_v35 = vpop.eup %3522  ;;  %vm1802_vm0 = vcmp.eq.f32.partialorder %v1801_v10, 8.507059e+37  ;;  %v1728_v56 = vand.u32 2147483648, %v1673_v31  ;;  %v1726_v39 = vand.u32 2147483647, %v1673_v31  ;;  %v5253_v24 = vld [vmem:[%s6572_s4] sm:$0xf] }
 0x2d3   :  { %v1933_v9 = vmul.f32 %v1790_v14, %v5153_v15  ;;  %2016 = vmatpush.msra.mxu3 %v1938_v13  ;;  %v1796_v48 = vadd.f32 %v3519_v25, %v1795_v19  ;;  %v1674_v34 = vadd.f32 1.0, %v3523_v35  ;;  %vm1722_vm3 = vweird.f32 %v1673_v31  ;;  %v6719_v14 = vld [vmem:[#allocation12_spill] sm:$0xff] }
 0x2d4   :  { %v1729_v37 = vor.u32 1.1754944e-38, %v1728_v56  ;;  %vm1727_vm4 = vcmp.eq.f32.partialorder %v1726_v39, 8.507059e+37  ;;  %vm6716_vm8 = vcmask 261120   ;;  %v5261_v8 = vstv %s3262_s17 }
 0x2d5   :  { %1997 = vmatpush.msra.mxu2 %v1933_v9  ;;  %v1800_v6 = vsel %vm1799_vm15, %v3519_v25, %v1796_v48  ;;  %3526 = vrcp.f32 %v1674_v34  ;;  %v1743_v52 = vand.u32 2147483648, %v1674_v34  ;;  %v1741_v61 = vand.u32 2147483647, %v1674_v34  ;;  %vm6717_vm9 = vmmov %vm6716_vm8 }
 0x2d6   :  { %v1805_v27 = vsel %vm1802_vm0, %v1804_v40, %v1800_v6  ;;  %v3525_v15 = vpop.eup %3524  ;;  %vm1737_vm6 = vweird.f32 %v1674_v34  ;;  %v2023_v49 = vstv %s5263_s18  ;;  %vm6718_vm11 = vcmask 1043456  }
 0x2d7   :  { %v1934_v42 = vmul.f32 %v1805_v27, %v5160_v62  ;;  %v1718_v28 = vmul.f32 %v3525_v15, %v1673_v31  ;;  %vm1723_vm2 = vweird.f32 %v3525_v15  ;;  %v1744_v2 = vor.u32 1.1754944e-38, %v1743_v52  ;;  %vm6720_vm12 = vmmov %vm6718_vm11 }
 0x2d8   :  { %vm1724_vm1 = vmor %vm1722_vm3, %vm1723_vm2  ;;  %vm1742_vm7 = vcmp.eq.f32.partialorder %v1741_v61, 8.507059e+37  ;;  %v2024_v0 = vmul.f32 %v2023_v49, %v6719_v14  ;;  %v2047_v19 = vstv %s5269_s19  ;;  %v2050_v10 = vstv %s5273_s3 }
 0x2d9   :  { %2017 = vmatpush.msra.mxu3 %v1934_v42  ;;  %v1719_v1 = vsub.f32 1.0, %v1718_v28  ;;  %v2051_v35 = vmul.f32 %v2050_v10, %v6719_v14 }
 0x2db   :  { %v3527_v44 = vpop.eup %3526  ;;  %v1720_v3 = vmul.f32 %v3525_v15, %v1719_v1 }
 0x2dc   :  { %v1733_v43 = vmul.f32 %v3527_v44, %v1674_v34  ;;  %vm1738_vm5 = vweird.f32 %v3527_v44 }
 0x2dd   :  { %v1721_v33 = vadd.f32 %v3525_v15, %v1720_v3  ;;  %vm1739_vm10 = vmor %vm1737_vm6, %vm1738_vm5 }
 0x2de   :  { %v1734_v18 = vsub.f32 1.0, %v1733_v43 }
 0x2df   :  { %v1725_v46 = vsel %vm1724_vm1, %v3525_v15, %v1721_v33 }
 0x2e0   :  { %v1730_v62 = vsel %vm1727_vm4, %v1729_v37, %v1725_v46  ;;  %v1735_v20 = vmul.f32 %v3527_v44, %v1734_v18  ;;  %v5304_v46 = vpop.permute.xlu0 %2238 }
 0x2e1   :  { %v1929_v25 = vmul.f32 %v1730_v62, %v5197_v38 }
 0x2e2   :  { %v1736_v58 = vadd.f32 %v3527_v44, %v1735_v20 }
 0x2e3   :  { %1998 = vmatpush.msra.mxu2 %v1929_v25 }
 0x2e4   :  { %v1740_v36 = vsel %vm1739_vm10, %v3527_v44, %v1736_v58  ;;  %3283 = vmatmul.msk.f32.vlgmr.msra.gmra.mxu2 %vm6716_vm8, %v5253_v24 }
 0x2e5   :  { %v1745_v4 = vsel %vm1742_vm7, %v1744_v2, %v1740_v36 }
 0x2e6   :  { %v1930_v7 = vmul.f32 %v1745_v4, %v5232_v32 }
 0x2e8   :  { %2018 = vmatpush.msra.mxu3 %v1930_v7 }
 0x2e9   :  { %3284 = vmatmul.msk.f32.vlgmr.msra.gmra.mxu3 %vm6717_vm9, %v5253_v24 }
 0x32b   :  { %v1960_v23 = vpop.f32.mrf.mxu0 }
 0x32c   :  { %v1961_v55 = vadd.f32 %v1960_v23, %v6693_v60 }
 0x32e   :  { %v2027_v32 = vmul.f32 %v5261_v8, %v1961_v55 }
 0x338   :  { %v1980_v38 = vpop.f32.mrf.mxu1 }
 0x339   :  { %v1981_v12 = vadd.f32 %v1980_v38, %v6693_v60 }
 0x33b   :  { %v2028_v59 = vmul.f32 %v5261_v8, %v1981_v12 }
 0x33d   :  { %v2035_v16 = vrot.slane %v2028_v59, 4 }
 0x33f   :  { %v2037_v13 = vsel %vm6718_vm11, %v2027_v32, %v2035_v16 }
 0x340   :  { %v2041_v31 = vsub.f32 %v2024_v0, %v2037_v13 }
 0x342   :  { %v3285_v9 = vclamps-f32 %v2041_v31, 1.0 }
 0x344   :  { %v2048_v48 = vmul.f32 %v3285_v9, %v2047_v19 }
 0x346   :  { %v5282_v40 = vadd.f32 %v2051_v35, %v2048_v48  ;;  %v2025_v48 = vmul.f32 %v2023_v49, %v4946_v11 }
 0x348   :  { %v2061_v6 = vperm.slane %v5282_v40, 0  ;;  %v2089_v34 = vperm.slane %v5282_v40, 1  ;;  %v2133_v27 = vperm.slane %v5282_v40, 2  ;;  %v2177_v42 = vperm.slane %v5282_v40, 3 }
 0x349   :  { %v2062_v62 = vperm.slane %v5282_v40, 4  ;;  %v2090_v20 = vperm.slane %v5282_v40, 5  ;;  %v2134_v61 = vperm.slane %v5282_v40, 6  ;;  %v2178_v25 = vperm.slane %v5282_v40, 7 }
 0x34a   :  { %v5288_v15 = vperm.slane %v2061_v6, 0  ;;  %v5290_v28 = vperm.slane %v2089_v34, 1  ;;  %v5292_v1 = vperm.slane %v2133_v27, 2  ;;  %v5298_v3 = vperm.slane %v2177_v42, 3 }
 0x34b   :  { %v5314_v2 = vperm.slane %v2062_v62, 0  ;;  %v5316_v36 = vperm.slane %v2090_v20, 1  ;;  %v5318_v7 = vperm.slane %v2134_v61, 2  ;;  %v5324_v23 = vperm.slane %v2178_v25, 3 }
 0x34c   :  { %v2085_v56 = vmul.f32 %v5288_v15, %v6653_v21  ;;  %v2113_v44 = vmul.f32 %v5290_v28, %v6654_v54  ;;  %v2157_v43 = vmul.f32 %v5292_v1, %v6655_v29  ;;  %v2201_v37 = vmul.f32 %v5298_v3, %v6656_v57 }
 0x34d   :  { %v2086_v38 = vmul.f32 %v5314_v2, %v6653_v21  ;;  %v2114_v12 = vmul.f32 %v5316_v36, %v6654_v54  ;;  %v2158_v32 = vmul.f32 %v5318_v7, %v6655_v29  ;;  %v2202_v0 = vmul.f32 %v5324_v23, %v6656_v57 }
 0x34e   :  { %v2129_v39 = vadd.f32 %v2113_v44, %v2085_v56  ;;  %v2081_v31 = vmul.f32 %v5288_v15, %v6657_v17  ;;  %v2109_v9 = vmul.f32 %v5290_v28, %v6658_v45  ;;  %v2082_v6 = vmul.f32 %v5314_v2, %v6657_v17 }
 0x34f   :  { %v2130_v16 = vadd.f32 %v2114_v12, %v2086_v38  ;;  %v2110_v34 = vmul.f32 %v5316_v36, %v6658_v45  ;;  %v2197_v20 = vmul.f32 %v5298_v3, %v6660_v53  ;;  %v2154_v25 = vmul.f32 %v5318_v7, %v6659_v5  ;;  %v5361_v12 = vpop.permute.xlu1 %2233 }
 0x350   :  { %v2173_v33 = vadd.f32 %v2157_v43, %v2129_v39  ;;  %v2125_v44 = vadd.f32 %v2109_v9, %v2081_v31  ;;  %v2153_v39 = vmul.f32 %v5292_v1, %v6659_v5  ;;  %v2078_v9 = vmul.f32 %v5314_v2, %v6661_v22 }
 0x351   :  { %v2174_v14 = vadd.f32 %v2158_v32, %v2130_v16  ;;  %v2126_v49 = vadd.f32 %v2110_v34, %v2082_v6  ;;  %v2149_v32 = vmul.f32 %v5292_v1, %v3969_v63 }
 0x352   :  { %v2217_v18 = vadd.f32 %v2201_v37, %v2173_v33  ;;  %v2077_v37 = vmul.f32 %v5288_v15, %v6661_v22  ;;  %v2169_v62 = vadd.f32 %v2153_v39, %v2125_v44 }
 0x353   :  { %v2218_v56 = vadd.f32 %v2202_v0, %v2174_v14  ;;  %v2193_v14 = vmul.f32 %v5298_v3, %v4025_v26 }
 0x354   :  { %v5307_v52 = vadd.f32 %v5304_v46, %v2217_v18  ;;  %v2213_v38 = vadd.f32 %v2197_v20, %v2169_v62  ;;  %v2194_v62 = vmul.f32 %v5324_v23, %v4025_v26  ;;  %v2073_v20 = vmul.f32 %v5288_v15, %v6663_v47 }
 0x355   :  { %v5350_v18 = vadd.f32 %v5304_v46, %v2218_v56 }
 0x356   :  { %v3303_v58 = vmul.f32 -1.442695, %v5307_v52 }
 0x358   :  { %3528 = vpow2.f32 %v3303_v58 }
 0x35e   :  { %v3529_v27 = vpop.eup %3528 }
 0x35f   :  { %v5345_v33 = vadd.f32 1.0, %v3529_v27 }
 0x361   :  { %3530 = vrcp.f32 %v5345_v33  ;;  %v2510_v6 = vand.u32 2147483647, %v5345_v33  ;;  %v2512_v34 = vand.u32 2147483648, %v5345_v33  ;;  %vm2506_vm14 = vweird.f32 %v5345_v33 }
 0x363   :  { %vm2511_vm0 = vcmp.eq.f32.partialorder %v2510_v6, 8.507059e+37  ;;  %v5428_v6 = vpop.permute.xlu0 %2223 }
 0x367   :  { %v2000_v4 = vpop.f32.mrf.mxu2 }
 0x368   :  { %v2001_v59 = vadd.f32 %v2000_v4, %v6693_v60  ;;  %v3304_v4 = vmul.f32 -1.442695, %v5350_v18 }
 0x36a   :  { %v2029_v42 = vmul.f32 %v5261_v8, %v2001_v59  ;;  %v2170_v59 = vadd.f32 %v2154_v25, %v2126_v49  ;;  %3532 = vpow2.f32 %v3304_v4  ;;  %v5384_v49 = vpop.permute.xlu2 %2228 }
 0x36c   :  { %v2020_v55 = vpop.f32.mrf.mxu3 }
 0x36d   :  { %v2021_v13 = vadd.f32 %v2020_v55, %v6693_v60  ;;  %v2198_v55 = vmul.f32 %v5324_v23, %v6660_v53 }
 0x36f   :  { %v2030_v35 = vmul.f32 %v5261_v8, %v2021_v13  ;;  %v2105_v8 = vmul.f32 %v5290_v28, %v6662_v51  ;;  %v5368_v13 = vadd.f32 %v5361_v12, %v2213_v38  ;;  %v2214_v0 = vadd.f32 %v2198_v55, %v2170_v59 }
 0x370   :  { %v2074_v55 = vmul.f32 %v5314_v2, %v6663_v47  ;;  %v2189_v2 = vmul.f32 %v5298_v3, %v6686_v30 }
 0x371   :  { %v2036_v43 = vrot.slane %v2030_v35, 4  ;;  %v2121_v16 = vadd.f32 %v2105_v8, %v2077_v37  ;;  %v3299_v27 = vmul.f32 -1.442695, %v5368_v13  ;;  %v5380_v56 = vadd.f32 %v5361_v12, %v2214_v0 }
 0x373   :  { %v2038_v61 = vsel %vm6720_vm12, %v2029_v42, %v2036_v43  ;;  %v2165_v31 = vadd.f32 %v2149_v32, %v2121_v16  ;;  %v3531_v42 = vpop.eup %3530  ;;  %v2150_v43 = vmul.f32 %v5318_v7, %v3969_v63  ;;  %3534 = vpow2.f32 %v3299_v27 }
 0x374   :  { %v2042_v58 = vsub.f32 %v2025_v48, %v2038_v61  ;;  %v2106_v48 = vmul.f32 %v5316_v36, %v6662_v51  ;;  %v2502_v37 = vmul.f32 %v3531_v42, %v5345_v33  ;;  %v3300_v8 = vmul.f32 -1.442695, %v5380_v56  ;;  %v3533_v4 = vpop.eup %3532 }
 0x375   :  { %v2209_v44 = vadd.f32 %v2193_v14, %v2165_v31  ;;  %vm2507_vm13 = vweird.f32 %v3531_v42  ;;  %v5401_v16 = vadd.f32 1.0, %v3533_v4  ;;  %v2145_v31 = vmul.f32 %v5292_v1, %v6683_v50 }
 0x376   :  { %v3286_v35 = vclamps-f32 %v2042_v58, 1.0  ;;  %v2122_v39 = vadd.f32 %v2106_v48, %v2078_v9  ;;  %v2101_v58 = vmul.f32 %v5290_v28, %v6681_v41  ;;  %v2503_v59 = vsub.f32 1.0, %v2502_v37  ;;  %vm2508_vm15 = vmor %vm2506_vm14, %vm2507_vm13 }
 0x377   :  { %v5393_v61 = vadd.f32 %v5384_v49, %v2209_v44  ;;  %3536 = vpow2.f32 %v3300_v8  ;;  %v2102_v28 = vmul.f32 %v5316_v36, %v6681_v41  ;;  %v2513_v36 = vor.u32 1.1754944e-38, %v2512_v34 }
 0x378   :  { %v2166_v25 = vadd.f32 %v2150_v43, %v2122_v39  ;;  %v2049_v38 = vmul.f32 %v3286_v35, %v2047_v19  ;;  %v2504_v14 = vmul.f32 %v3531_v42, %v2503_v59  ;;  %v2117_v0 = vadd.f32 %v2101_v58, %v2073_v20 }
 0x379   :  { %v3295_v15 = vmul.f32 -1.442695, %v5393_v61  ;;  %v2052_v19 = vmul.f32 %v2050_v10, %v4946_v11  ;;  %3538 = vrcp.f32 %v5401_v16  ;;  %v3535_v9 = vpop.eup %3534  ;;  %v2118_v11 = vadd.f32 %v2102_v28, %v2074_v55 }
 0x37a   :  { %v2210_v32 = vadd.f32 %v2194_v62, %v2166_v25  ;;  %v2505_v48 = vadd.f32 %v3531_v42, %v2504_v14  ;;  %v2161_v1 = vadd.f32 %v2145_v31, %v2117_v0  ;;  %v5419_v27 = vadd.f32 1.0, %v3535_v9 }
 0x37b   :  { %3540 = vpow2.f32 %v3295_v15  ;;  %v5421_v10 = vadd.f32 %v2052_v19, %v2049_v38  ;;  %v2525_v37 = vand.u32 2147483647, %v5401_v16  ;;  %v2146_v62 = vmul.f32 %v5318_v7, %v6683_v50 }
 0x37c   :  { %v5416_v35 = vadd.f32 %v5384_v49, %v2210_v32  ;;  %v2509_v33 = vsel %vm2508_vm15, %v3531_v42, %v2505_v48  ;;  %v2205_v3 = vadd.f32 %v2189_v2, %v2161_v1  ;;  %3542 = vrcp.f32 %v5419_v27 }
 0x37d   :  { %v3537_v39 = vpop.eup %3536  ;;  %v2514_v43 = vsel %vm2511_vm0, %v2513_v36, %v2509_v33  ;;  %v2527_v20 = vand.u32 2147483648, %v5401_v16  ;;  %v2162_v58 = vadd.f32 %v2146_v62, %v2118_v11  ;;  %v2190_v4 = vmul.f32 %v5324_v23, %v6686_v30 }
 0x37e   :  { %v3296_v44 = vmul.f32 -1.442695, %v5416_v35  ;;  %v2573_v34 = vmul.f32 %v2514_v43, %v5307_v52  ;;  %v5432_v8 = vadd.f32 1.0, %v3537_v39  ;;  %v5435_v25 = vadd.f32 %v5428_v6, %v2205_v3 }
 0x37f   :  { %v3539_v42 = vpop.eup %3538  ;;  %v2450_v59 = vand.u32 2147483647, %v5419_v27  ;;  %v2452_v52 = vand.u32 2147483648, %v5419_v27  ;;  %vm2521_vm2 = vweird.f32 %v5401_v16  ;;  %vm5444_vm3 = vcmp.eq.f32.partialorder %v2525_v37, 8.507059e+37 }
 0x380   :  { %3544 = vpow2.f32 %v3296_v44  ;;  %2589 = vmatpush.msrb.mxu0 %v2573_v34  ;;  %v2517_v7 = vmul.f32 %v3539_v42, %v5401_v16  ;;  %v2063_v23 = vperm.slane %v5421_v10, 0  ;;  %v2528_v14 = vor.u32 1.1754944e-38, %v2527_v20 }
 0x381   :  { %v3541_v38 = vpop.eup %3540  ;;  %3546 = vrcp.f32 %v5432_v8  ;;  %v3291_v0 = vmul.f32 -1.442695, %v5435_v25  ;;  %v2206_v31 = vadd.f32 %v2190_v4, %v2162_v58  ;;  %vm2446_vm1 = vweird.f32 %v5419_v27 }
 0x382   :  { %v5448_v15 = vadd.f32 1.0, %v3541_v38  ;;  %v2518_v32 = vsub.f32 1.0, %v2517_v7  ;;  %v3543_v28 = vpop.eup %3542  ;;  %v2465_v19 = vand.u32 2147483647, %v5432_v8  ;;  %v2467_v2 = vand.u32 2147483648, %v5432_v8 }
 0x383   :  { %vm2522_vm4 = vweird.f32 %v3539_v42  ;;  %v2442_v1 = vmul.f32 %v3543_v28, %v5419_v27  ;;  %vm5457_vm5 = vcmp.eq.f32.partialorder %v2450_v59, 8.507059e+37  ;;  %v2453_v11 = vor.u32 1.1754944e-38, %v2452_v52 }
 0x384   :  { %3548 = vrcp.f32 %v5448_v15  ;;  %v2519_v48 = vmul.f32 %v3539_v42, %v2518_v32  ;;  %v5464_v44 = vadd.f32 %v5428_v6, %v2206_v31  ;;  %v5466_v3 = vperm.slane %v2063_v23, 0  ;;  %vm2523_vm10 = vmor %vm2521_vm2, %vm2522_vm4 }
 0x385   :  { %3550 = vpow2.f32 %v3291_v0  ;;  %v2443_v37 = vsub.f32 1.0, %v2442_v1  ;;  %vm2461_vm6 = vweird.f32 %v5432_v8  ;;  %v2390_v62 = vand.u32 2147483647, %v5448_v15 }
 0x386   :  { %v3545_v9 = vpop.eup %3544  ;;  %v2520_v43 = vadd.f32 %v3539_v42, %v2519_v48  ;;  %vm5473_vm7 = vcmp.eq.f32.partialorder %v2465_v19, 8.507059e+37  ;;  %v2468_v58 = vor.u32 1.1754944e-38, %v2467_v2  ;;  %v2392_v4 = vand.u32 2147483648, %v5448_v15 }
 0x387   :  { %v5461_v33 = vadd.f32 1.0, %v3545_v9  ;;  %v3547_v39 = vpop.eup %3546  ;;  %v2444_v7 = vmul.f32 %v3543_v28, %v2443_v37  ;;  %vm2447_vm8 = vweird.f32 %v3543_v28  ;;  %vm2386_vm9 = vweird.f32 %v5448_v15 }
 0x388   :  { %v2457_v34 = vmul.f32 %v3547_v39, %v5432_v8  ;;  %v2524_v38 = vsel %vm2523_vm10, %v3539_v42, %v2520_v43  ;;  %v3292_v23 = vmul.f32 -1.442695, %v5464_v44  ;;  %v2087_v32 = vmul.f32 %v5466_v3, %v6653_v21  ;;  %vm2448_vm13 = vmor %vm2446_vm1, %vm2447_vm8 }
 0x389   :  { %3552 = vrcp.f32 %v5461_v33  ;;  %v2529_v16 = vsel %vm5444_vm3, %v2528_v14, %v2524_v38  ;;  %v2445_v31 = vadd.f32 %v3543_v28, %v2444_v7  ;;  %vm2462_vm11 = vweird.f32 %v3547_v39 }
 0x38a   :  { %v3549_v59 = vpop.eup %3548  ;;  %v2458_v52 = vsub.f32 1.0, %v2457_v34  ;;  %v2574_v0 = vmul.f32 %v2529_v16, %v5350_v18  ;;  %vm5487_vm12 = vcmp.eq.f32.partialorder %v2390_v62, 8.507059e+37  ;;  %v2393_v14 = vor.u32 1.1754944e-38, %v2392_v4  ;;  %vm2463_vm15 = vmor %vm2461_vm6, %vm2462_vm11 }
 0x38b   :  { %v2382_v42 = vmul.f32 %v3549_v59, %v5448_v15  ;;  %v3551_v2 = vpop.eup %3550  ;;  %v2405_v9 = vand.u32 2147483647, %v5461_v33  ;;  %3554 = vpow2.f32 %v3292_v23  ;;  %v2449_v48 = vsel %vm2448_vm13, %v3543_v28, %v2445_v31 }
 0x38c   :  { %v2459_v55 = vmul.f32 %v3547_v39, %v2458_v52  ;;  %2609 = vmatpush.msrb.mxu1 %v2574_v0  ;;  %vm2401_vm14 = vweird.f32 %v5461_v33  ;;  %v2407_v1 = vand.u32 2147483648, %v5461_v33  ;;  %v5496_v43 = vadd.f32 1.0, %v3551_v2 }
 0x38d   :  { %v2383_v18 = vsub.f32 1.0, %v2382_v42  ;;  %v2454_v62 = vsel %vm5457_vm5, %v2453_v11, %v2449_v48  ;;  %v2091_v34 = vperm.slane %v5421_v10, 1  ;;  %v2135_v4 = vperm.slane %v5421_v10, 2 }
 0x38e   :  { %v2460_v27 = vadd.f32 %v3547_v39, %v2459_v55  ;;  %v2569_v38 = vmul.f32 %v2454_v62, %v5368_v13  ;;  %vm2387_vm0 = vweird.f32 %v3549_v59  ;;  %vm5507_vm2 = vcmp.eq.f32.partialorder %v2405_v9, 8.507059e+37 }
 0x38f   :  { %v3553_v37 = vpop.eup %3552  ;;  %v2384_v28 = vmul.f32 %v3549_v59, %v2383_v18  ;;  %3556 = vrcp.f32 %v5496_v43  ;;  %v2179_v36 = vperm.slane %v5421_v10, 3  ;;  %vm2388_vm1 = vmor %vm2386_vm9, %vm2387_vm0  ;;  %v5519_v31 = vperm.slane %v2091_v34, 1 }
 0x390   :  { %v2397_v7 = vmul.f32 %v3553_v37, %v5461_v33  ;;  %v2464_v16 = vsel %vm2463_vm15, %v3547_v39, %v2460_v27  ;;  %2590 = vmatpush.msrb.mxu0 %v2569_v38  ;;  %vm2402_vm3 = vweird.f32 %v3553_v37  ;;  %v2332_v39 = vand.u32 2147483648, %v5496_v43 }
 0x391   :  { %v2469_v13 = vsel %vm5473_vm7, %v2468_v58, %v2464_v16  ;;  %v2385_v11 = vadd.f32 %v3549_v59, %v2384_v28  ;;  %v3555_v23 = vpop.eup %3554  ;;  %v5521_v42 = vperm.slane %v2135_v4, 2  ;;  %v2330_v20 = vand.u32 2147483647, %v5496_v43  ;;  %vm2403_vm5 = vmor %vm2401_vm14, %vm2402_vm3 }
 0x392   :  { %v2398_v8 = vsub.f32 1.0, %v2397_v7  ;;  %v2570_v0 = vmul.f32 %v2469_v13, %v5380_v56  ;;  %v5524_v58 = vadd.f32 1.0, %v3555_v23  ;;  %v2408_v56 = vor.u32 1.1754944e-38, %v2407_v1 }
 0x393   :  { %v2389_v2 = vsel %vm2388_vm1, %v3549_v59, %v2385_v11  ;;  %v2115_v15 = vmul.f32 %v5519_v31, %v6654_v54  ;;  %v5530_v48 = vperm.slane %v2179_v36, 3  ;;  %vm2326_vm4 = vweird.f32 %v5496_v43 }
 0x394   :  { %v2399_v55 = vmul.f32 %v3553_v37, %v2398_v8  ;;  %2610 = vmatpush.msrb.mxu1 %v2570_v0  ;;  %v2394_v9 = vsel %vm5487_vm12, %v2393_v14, %v2389_v2  ;;  %3558 = vrcp.f32 %v5524_v58  ;;  %v2333_v19 = vor.u32 1.1754944e-38, %v2332_v39 }
 0x395   :  { %v2565_v18 = vmul.f32 %v2394_v9, %v5393_v61  ;;  %v3557_v59 = vpop.eup %3556  ;;  %v2345_v14 = vand.u32 2147483647, %v5524_v58  ;;  %v2131_v1 = vadd.f32 %v2115_v15, %v2087_v32  ;;  %v2159_v27 = vmul.f32 %v5521_v42, %v6655_v29 }
 0x396   :  { %v2400_v62 = vadd.f32 %v3553_v37, %v2399_v55  ;;  %v2322_v61 = vmul.f32 %v3557_v59, %v5496_v43  ;;  %vm5542_vm6 = vcmp.eq.f32.partialorder %v2330_v20, 8.507059e+37  ;;  %v2347_v38 = vand.u32 2147483648, %v5524_v58 }
 0x397   :  { %2591 = vmatpush.msrb.mxu0 %v2565_v18  ;;  %v2064_v33 = vperm.slane %v5421_v10, 4  ;;  %vm2327_vm10 = vweird.f32 %v3557_v59  ;;  %v2175_v32 = vadd.f32 %v2159_v27, %v2131_v1  ;;  %v2203_v7 = vmul.f32 %v5530_v48, %v6656_v57 }
 0x398   :  { %v2404_v34 = vsel %vm2403_vm5, %v3553_v37, %v2400_v62  ;;  %v2323_v16 = vsub.f32 1.0, %v2322_v61  ;;  %v2092_v13 = vperm.slane %v5421_v10, 5  ;;  %vm2341_vm7 = vweird.f32 %v5524_v58  ;;  %vm2328_vm11 = vmor %vm2326_vm4, %vm2327_vm10 }
 0x399   :  { %v2409_v28 = vsel %vm5507_vm2, %v2408_v56, %v2404_v34  ;;  %v5553_v36 = vperm.slane %v2064_v33, 0  ;;  %v2219_v11 = vadd.f32 %v2203_v7, %v2175_v32  ;;  %v2136_v8 = vperm.slane %v5421_v10, 6 }
 0x39a   :  { %v2566_v37 = vmul.f32 %v2409_v28, %v5416_v35  ;;  %v2180_v52 = vperm.slane %v5421_v10, 7  ;;  %v2083_v23 = vmul.f32 %v5466_v3, %v6657_v17  ;;  %v3559_v0 = vpop.eup %3558  ;;  %v2324_v39 = vmul.f32 %v3557_v59, %v2323_v16 }
 0x39b   :  { %v2088_v35 = vmul.f32 %v5553_v36, %v6653_v21  ;;  %v5563_v2 = vperm.slane %v2092_v13, 1  ;;  %v2111_v55 = vmul.f32 %v5519_v31, %v6658_v45  ;;  %v2337_v20 = vmul.f32 %v3559_v0, %v5524_v58 }
 0x39c   :  { %2611 = vmatpush.msrb.mxu1 %v2566_v37  ;;  %vm2342_vm8 = vweird.f32 %v3559_v0  ;;  %vm5568_vm9 = vcmp.eq.f32.partialorder %v2345_v14, 8.507059e+37  ;;  %v5573_v56 = vadd.f32 %v5304_v46, %v2219_v11  ;;  %v5575_v15 = vperm.slane %v2136_v8, 2 }
 0x39d   :  { %v2325_v18 = vadd.f32 %v3557_v59, %v2324_v39  ;;  %v2116_v21 = vmul.f32 %v5563_v2, %v6654_v54  ;;  %v5579_v62 = vperm.slane %v2180_v52, 3  ;;  %v2127_v1 = vadd.f32 %v2111_v55, %v2083_v23  ;;  %vm2343_vm12 = vmor %vm2341_vm7, %vm2342_vm8 }
 0x39e   :  { %v2338_v14 = vsub.f32 1.0, %v2337_v20  ;;  %v3305_v27 = vmul.f32 -1.442695, %v5573_v56  ;;  %v2160_v34 = vmul.f32 %v5575_v15, %v6655_v29  ;;  %v2155_v61 = vmul.f32 %v5521_v42, %v6659_v5 }
 0x39f   :  { %v2329_v33 = vsel %vm2328_vm11, %v3557_v59, %v2325_v18  ;;  %v2132_v28 = vadd.f32 %v2116_v21, %v2088_v35  ;;  %v2204_v54 = vmul.f32 %v5579_v62, %v6656_v57  ;;  %v2199_v32 = vmul.f32 %v5530_v48, %v6660_v53 }
 0x3a0   :  { %v2334_v43 = vsel %vm5542_vm6, %v2333_v19, %v2329_v33  ;;  %v2339_v7 = vmul.f32 %v3559_v0, %v2338_v14  ;;  %3560 = vpow2.f32 %v3305_v27  ;;  %v2171_v37 = vadd.f32 %v2155_v61, %v2127_v1 }
 0x3a1   :  { %v2561_v16 = vmul.f32 %v2334_v43, %v5435_v25  ;;  %v2176_v29 = vadd.f32 %v2160_v34, %v2132_v28  ;;  %v2084_v13 = vmul.f32 %v5553_v36, %v6657_v17  ;;  %v2112_v59 = vmul.f32 %v5563_v2, %v6658_v45 }
 0x3a2   :  { %v2340_v11 = vadd.f32 %v3559_v0, %v2339_v7  ;;  %v2348_v57 = vor.u32 1.1754944e-38, %v2347_v38  ;;  %v2215_v8 = vadd.f32 %v2199_v32, %v2171_v37  ;;  %v2156_v52 = vmul.f32 %v5575_v15, %v6659_v5 }
 0x3a3   :  { %2592 = vmatpush.msrb.mxu0 %v2561_v16  ;;  %v2220_v19 = vadd.f32 %v2204_v54, %v2176_v29  ;;  %v2128_v25 = vadd.f32 %v2112_v59, %v2084_v13  ;;  %v2079_v4 = vmul.f32 %v5466_v3, %v6661_v22  ;;  %v2107_v17 = vmul.f32 %v5519_v31, %v6662_v51 }
 0x3a4   :  { %v2344_v45 = vsel %vm2343_vm12, %v3559_v0, %v2340_v11  ;;  %vm6735_vm13 = vcmask 261120   ;;  %v5612_v38 = vadd.f32 %v5361_v12, %v2215_v8  ;;  %v2200_v5 = vmul.f32 %v5579_v62, %v6660_v53 }
 0x3a5   :  { %3307 = vmatmul.msk.f32.vlgmr.msrb.gmra.mxu0 %vm6735_vm13, %v5253_v24  ;;  %v2151_v58 = vmul.f32 %v5521_v42, %v3969_v63  ;;  %v2349_v23 = vsel %vm5568_vm9, %v2348_v57, %v2344_v45  ;;  %v5621_v39 = vadd.f32 %v5304_v46, %v2220_v19  ;;  %v2172_v35 = vadd.f32 %v2156_v52, %v2128_v25  ;;  %vm6736_vm14 = vmmov %vm6735_vm13  ;;  %v5750_v45 = vld [vmem:[%s6574_s6 + $0x70] sm:$0xff] }
 0x3a6   :  { %v2123_v0 = vadd.f32 %v2107_v17, %v2079_v4  ;;  %v3561_v55 = vpop.eup %3560  ;;  %v2562_v20 = vmul.f32 %v2349_v23, %v5464_v44  ;;  %v3301_v18 = vmul.f32 -1.442695, %v5612_v38  ;;  %v2080_v21 = vmul.f32 %v5553_v36, %v6661_v22 }
 0x3a7   :  { %v2108_v53 = vmul.f32 %v5563_v2, %v6662_v51  ;;  %v2319_v1 = vadd.f32 1.0, %v3561_v55  ;;  %v3306_v9 = vmul.f32 -1.442695, %v5621_v39  ;;  %v2216_v14 = vadd.f32 %v2200_v5, %v2172_v35 }
 0x3a8   :  { %v2167_v27 = vadd.f32 %v2151_v58, %v2123_v0  ;;  %2612 = vmatpush.msrb.mxu1 %v2562_v20  ;;  %3562 = vpow2.f32 %v3301_v18  ;;  %v2195_v46 = vmul.f32 %v5530_v48, %v4025_v26  ;;  %v2152_v44 = vmul.f32 %v5575_v15, %v3969_v63 }
 0x3a9   :  { %v2124_v34 = vadd.f32 %v2108_v53, %v2080_v21  ;;  %3308 = vmatmul.msk.f32.vlgmr.msrb.gmra.mxu1 %vm6736_vm14, %v5253_v24  ;;  %3564 = vrcp.f32 %v2319_v1  ;;  %v2196_v22 = vmul.f32 %v5579_v62, %v4025_v26  ;;  %v5639_v51 = vadd.f32 %v5361_v12, %v2216_v14 }
 0x3aa   :  { %3566 = vpow2.f32 %v3306_v9  ;;  %v2211_v61 = vadd.f32 %v2195_v46, %v2167_v27  ;;  %v2075_v28 = vmul.f32 %v5466_v3, %v6663_v47  ;;  %v2103_v54 = vmul.f32 %v5519_v31, %v6681_v41 }
 0x3ab   :  { %v2168_v33 = vadd.f32 %v2152_v44, %v2124_v34  ;;  %v3302_v63 = vmul.f32 -1.442695, %v5639_v51  ;;  %v2147_v26 = vmul.f32 %v5521_v42, %v6683_v50  ;;  %v2540_v59 = vand.u32 2147483647, %v2319_v1 }
 0x3ac   :  { %v5647_v24 = vadd.f32 %v5384_v49, %v2211_v61  ;;  %v2119_v43 = vadd.f32 %v2103_v54, %v2075_v28  ;;  %v2542_v57 = vand.u32 2147483648, %v2319_v1  ;;  %v2191_v42 = vmul.f32 %v5530_v48, %v6686_v30 }
 0x3ad   :  { %v2212_v32 = vadd.f32 %v2196_v22, %v2168_v33  ;;  %3568 = vpow2.f32 %v3302_v63  ;;  %v2076_v52 = vmul.f32 %v5553_v36, %v6663_v47  ;;  %v2104_v19 = vmul.f32 %v5563_v2, %v6681_v41 }
 0x3ae   :  { %v3563_v12 = vpop.eup %3562  ;;  %v3297_v7 = vmul.f32 -1.442695, %v5647_v24  ;;  %v2163_v31 = vadd.f32 %v2147_v26, %v2119_v43  ;;  %vm2536_vm0 = vweird.f32 %v2319_v1  ;;  %vm5668_vm2 = vcmp.eq.f32.partialorder %v2540_v59, 8.507059e+37 }
 0x3af   :  { %v5653_v37 = vadd.f32 %v5384_v49, %v2212_v32  ;;  %v3565_v3 = vpop.eup %3564  ;;  %v5655_v16 = vadd.f32 1.0, %v3563_v12  ;;  %v2543_v23 = vor.u32 1.1754944e-38, %v2542_v57  ;;  %v2120_v47 = vadd.f32 %v2104_v19, %v2076_v52 }
 0x3b0   :  { %v3567_v29 = vpop.eup %3566  ;;  %v2532_v13 = vmul.f32 %v3565_v3, %v2319_v1  ;;  %3570 = vpow2.f32 %v3297_v7  ;;  %v2207_v25 = vadd.f32 %v2191_v42, %v2163_v31  ;;  %vm2537_vm15 = vweird.f32 %v3565_v3 }
 0x3b1   :  { %v3298_v11 = vmul.f32 -1.442695, %v5653_v37  ;;  %v5658_v8 = vadd.f32 1.0, %v3567_v29  ;;  %3572 = vrcp.f32 %v5655_v16  ;;  %v2148_v41 = vmul.f32 %v5575_v15, %v6683_v50  ;;  %vm2538_vm3 = vmor %vm2536_vm0, %vm2537_vm15 }
 0x3b2   :  { %v2533_v49 = vsub.f32 1.0, %v2532_v13  ;;  %vm2476_vm1 = vweird.f32 %v5655_v16  ;;  %v5679_v2 = vadd.f32 %v5428_v6, %v2207_v25  ;;  %v2192_v35 = vmul.f32 %v5579_v62, %v6686_v30 }
 0x3b3   :  { %3574 = vpow2.f32 %v3298_v11  ;;  %v3569_v4 = vpop.eup %3568  ;;  %v2480_v18 = vand.u32 2147483647, %v5655_v16  ;;  %v2555_v53 = vand.u32 2147483647, %v5658_v8  ;;  %v2482_v1 = vand.u32 2147483648, %v5655_v16 }
 0x3b4   :  { %3576 = vrcp.f32 %v5658_v8  ;;  %v2534_v17 = vmul.f32 %v3565_v3, %v2533_v49  ;;  %v5672_v48 = vadd.f32 1.0, %v3569_v4  ;;  %vm2551_vm4 = vweird.f32 %v5658_v8 }
 0x3b5   :  { %v2557_v27 = vand.u32 2147483648, %v5658_v8  ;;  %v3293_v46 = vmul.f32 -1.442695, %v5679_v2  ;;  %v2164_v34 = vadd.f32 %v2148_v41, %v2120_v47  ;;  %vm5700_vm6 = vcmp.eq.f32.partialorder %v2555_v53, 8.507059e+37  ;;  %v5758_v41 = vld [vmem:[%s6574_s6 + $0xf0] sm:$0xff] }
 0x3b6   :  { %v3571_v5 = vpop.eup %3570  ;;  %v2535_v58 = vadd.f32 %v3565_v3, %v2534_v17  ;;  %3578 = vrcp.f32 %v5672_v48  ;;  %vm5704_vm10 = vcmp.eq.f32.partialorder %v2480_v18, 8.507059e+37  ;;  %v2483_v28 = vor.u32 1.1754944e-38, %v2482_v1 }
 0x3b7   :  { %v3573_v36 = vpop.eup %3572  ;;  %v5685_v21 = vadd.f32 1.0, %v3571_v5  ;;  %v2495_v54 = vand.u32 2147483647, %v5672_v48  ;;  %v2558_v26 = vor.u32 1.1754944e-38, %v2557_v27  ;;  %v2497_v12 = vand.u32 2147483648, %v5672_v48  ;;  %v5800_v27 = vld [vmem:[%s6574_s6 + $0xe0] sm:$0xff] }
 0x3b8   :  { %v2539_v55 = vsel %vm2538_vm3, %v3565_v3, %v2535_v58  ;;  %v2472_v20 = vmul.f32 %v3573_v36, %v5655_v16  ;;  %vm2477_vm5 = vweird.f32 %v3573_v36  ;;  %v2208_v7 = vadd.f32 %v2192_v35, %v2164_v34 }
 0x3b9   :  { %v3575_v0 = vpop.eup %3574  ;;  %v2544_v15 = vsel %vm5668_vm2, %v2543_v23, %v2539_v55  ;;  %3580 = vrcp.f32 %v5685_v21  ;;  %vm2478_vm8 = vmor %vm2476_vm1, %vm2477_vm5  ;;  %vm2491_vm9 = vweird.f32 %v5672_v48  ;;  %vm5720_vm13 = vcmp.eq.f32.partialorder %v2495_v54, 8.507059e+37  ;;  %v5770_v55 = vld [vmem:[%s6574_s6 + $0x68] sm:$0xff] }
 0x3ba   :  { %v3577_v50 = vpop.eup %3576  ;;  %v5691_v9 = vadd.f32 1.0, %v3575_v0  ;;  %v2575_v30 = vmul.f32 %v2544_v15, %v5573_v56  ;;  %v2473_v14 = vsub.f32 1.0, %v2472_v20  ;;  %v5725_v11 = vadd.f32 %v5428_v6, %v2208_v7  ;;  %v5740_v6 = vld [vmem:[%s6574_s6 + $0x78] sm:$0xff]  ;;  %v5826_v56 = vld [vmem:[%s6574_s6 + $0x50] sm:$0xff]  ;;  %v5856_v7 = vld [vmem:[%s6574_s6 + $0x40] sm:$0xff] }
 0x3bb   :  { %v2547_v62 = vmul.f32 %v3577_v50, %v5658_v8  ;;  %vm2552_vm7 = vweird.f32 %v3577_v50  ;;  %v2498_v25 = vor.u32 1.1754944e-38, %v2497_v12  ;;  %v2420_v4 = vand.u32 2147483647, %v5685_v21  ;;  %2731 = vmatpush.msra.mxu0 %v5740_v6  ;;  %v5848_v12 = vld [vmem:[%s6574_s6 + $0xc8] sm:$0xff] }
 0x3bc   :  { %2629 = vmatpush.msrb.mxu2 %v2575_v30  ;;  %v2474_v22 = vmul.f32 %v3573_v36, %v2473_v14  ;;  %3582 = vrcp.f32 %v5691_v9  ;;  %v3579_v61 = vpop.eup %3578  ;;  %vm2553_vm11 = vmor %vm2551_vm4, %vm2552_vm7  ;;  %v3294_v47 = vmul.f32 -1.442695, %v5725_v11  ;;  %v2437_v0 = vand.u32 2147483648, %v5691_v9  ;;  %v5790_v30 = vld [vmem:[%s6574_s6 + $0x60] sm:$0xff] }
 0x3bd   :  { %v2548_v44 = vsub.f32 1.0, %v2547_v62  ;;  %v2487_v43 = vmul.f32 %v3579_v61, %v5672_v48  ;;  %3584 = vpow2.f32 %v3293_v46  ;;  %vm2492_vm12 = vweird.f32 %v3579_v61  ;;  %2732 = vmatpush.msra.mxu0 %v5750_v45 }
 0x3be   :  { %v2475_v32 = vadd.f32 %v3573_v36, %v2474_v22  ;;  %vm2493_vm14 = vmor %vm2491_vm9, %vm2492_vm12  ;;  %3586 = vpow2.f32 %v3294_v47  ;;  %v2435_v1 = vand.u32 2147483647, %v5691_v9  ;;  %vm2416_vm2 = vweird.f32 %v5685_v21 }
 0x3bf   :  { %v2549_v63 = vmul.f32 %v3577_v50, %v2548_v44  ;;  %v2488_v29 = vsub.f32 1.0, %v2487_v43  ;;  %v5714_v13 = vpop.eup %3580  ;;  %2733 = vmatpush.msra.mxu0 %v5770_v55  ;;  %vm2431_vm1 = vweird.f32 %v5691_v9  ;;  %vm2421_vm4 = vcmp.eq.f32.partialorder %v2420_v4, 8.507059e+37 }
 0x3c0   :  { %v2479_v31 = vsel %vm2478_vm8, %v3573_v36, %v2475_v32  ;;  %v2412_v8 = vmul.f32 %v5714_v13, %v5685_v21  ;;  %vm2417_vm15 = vweird.f32 %v5714_v13  ;;  %v2438_v44 = vor.u32 1.1754944e-38, %v2437_v0  ;;  %v5922_v0 = vld [vmem:[%s6574_s6 + $0x18] sm:$0xff] }
 0x3c1   :  { %v2550_v3 = vadd.f32 %v3577_v50, %v2549_v63  ;;  %v2484_v59 = vsel %vm5704_vm10, %v2483_v28, %v2479_v31  ;;  %v2489_v52 = vmul.f32 %v3579_v61, %v2488_v29  ;;  %vm2418_vm3 = vmor %vm2416_vm2, %vm2417_vm15  ;;  %2734 = vmatpush.msra.mxu0 %v5790_v30  ;;  %v5833_v63 = vld [vmem:[%s6574_s6 + $0xd0] sm:$0xff]  ;;  %v5868_v29 = vld [vmem:[%s6574_s6 + $0x38] sm:$0xff]  ;;  %vm6747_vm2 = vcmask 1043456  }
 0x3c2   :  { %v5727_v57 = vpop.eup %3582  ;;  %v2571_v49 = vmul.f32 %v2484_v59, %v5612_v38  ;;  %v5745_v38 = vld [vmem:[%s6574_s6 + $0xf8] sm:$0xff]  ;;  %v2413_v23 = vsub.f32 1.0, %v2412_v8 }
 0x3c3   :  { %v2554_v42 = vsel %vm2553_vm11, %v3577_v50, %v2550_v3  ;;  %v2427_v17 = vmul.f32 %v5727_v57, %v5691_v9  ;;  %v2490_v58 = vadd.f32 %v3579_v61, %v2489_v52  ;;  %v3585_v36 = vpop.eup %3584  ;;  %2751 = vmatpush.msra.mxu1 %v5745_v38  ;;  %v5779_v50 = vld [vmem:[%s6574_s6 + $0xe8] sm:$0xff]  ;;  %vm2432_vm0 = vweird.f32 %v5727_v57  ;;  %v5819_v9 = vld [vmem:[%s6574_s6 + $0xd8] sm:$0xff]  ;;  %v5862_v3 = vld [vmem:[%s6574_s6 + $0xc0] sm:$0xff] }
 0x3c4   :  { %v2559_v19 = vsel %vm5700_vm6, %v2558_v26, %v2554_v42  ;;  %2630 = vmatpush.msrb.mxu2 %v2571_v49  ;;  %v2414_v18 = vmul.f32 %v5714_v13, %v2413_v23  ;;  %v5773_v48 = vadd.f32 1.0, %v3585_v36  ;;  %vm2433_vm5 = vmor %vm2431_vm1, %vm2432_vm0  ;;  %vm2436_vm6 = vcmp.eq.f32.partialorder %v2435_v1, 8.507059e+37  ;;  %v3587_v33 = vpop.eup %3586  ;;  %v5842_v26 = vld [vmem:[%s6574_s6 + $0x48] sm:$0xff]  ;;  %v5875_v59 = vld [vmem:[%s6574_s6 + $0xb8] sm:$0xff] }
 0x3c5   :  { %v2576_v5 = vmul.f32 %v2559_v19, %v5621_v39  ;;  %v2422_v39 = vand.u32 2147483648, %v5685_v21  ;;  %v2428_v35 = vsub.f32 1.0, %v2427_v17  ;;  %v2494_v20 = vsel %vm2493_vm14, %v3579_v61, %v2490_v58  ;;  %2752 = vmatpush.msra.mxu1 %v5758_v41  ;;  %v5882_v42 = vld [vmem:[%s6574_s6 + $0x30] sm:$0xff]  ;;  %v5895_v19 = vld [vmem:[%s6574_s6 + $0x28] sm:$0xff]  ;;  %v5908_v58 = vld [vmem:[%s6574_s6 + $0x20] sm:$0xff] }
 0x3c6   :  { %v2499_v15 = vsel %vm5720_vm13, %v2498_v25, %v2494_v20  ;;  %v2415_v14 = vadd.f32 %v5714_v13, %v2414_v18  ;;  %3588 = vrcp.f32 %v5773_v48  ;;  %v5836_v43 = vadd.f32 1.0, %v3587_v33  ;;  %v5888_v49 = vld [vmem:[%s6574_s6 + $0xb0] sm:$0xff]  ;;  %v5902_v17 = vld [vmem:[%s6574_s6 + $0xa8] sm:$0xff]  ;;  %v5914_v36 = vld [vmem:[%s6574_s6 + $0xa0] sm:$0xff] }
 0x3c7   :  { %2649 = vmatpush.msrb.mxu3 %v2576_v5  ;;  %v2429_v53 = vmul.f32 %v5727_v57, %v2428_v35  ;;  %v2572_v62 = vmul.f32 %v2499_v15, %v5639_v51  ;;  %v2423_v46 = vor.u32 1.1754944e-38, %v2422_v39  ;;  %2753 = vmatpush.msra.mxu1 %v5779_v50  ;;  %v5810_v51 = vld [vmem:[%s6574_s6 + $0x58] sm:$0xff]  ;;  %vm2356_vm7 = vweird.f32 %v5773_v48  ;;  %v5946_v1 = vld [vmem:[%s6574_s6 + $0x90] sm:$0xff]  ;;  %v2827_v33 = vld [vmem:[%s6574_s6 + $0x148] sm:$0xff] }
 0x3c8   :  { %v2419_v21 = vsel %vm2418_vm3, %v5714_v13, %v2415_v14  ;;  %2735 = vmatpush.msra.mxu0 %v5810_v51  ;;  %3590 = vrcp.f32 %v5836_v43  ;;  %v2362_v13 = vand.u32 2147483648, %v5773_v48  ;;  %v2377_v35 = vand.u32 2147483648, %v5836_v43  ;;  %v2695_v14 = vld [vmem:[%s6574_s6 + $0x8] sm:$0xff]  ;;  %vm6748_vm3 = vmmov %vm6747_vm2 }
 0x3c9   :  { %v2430_v34 = vadd.f32 %v5727_v57, %v2429_v53  ;;  %2650 = vmatpush.msrb.mxu3 %v2572_v62  ;;  %v2424_v22 = vsel %vm2421_vm4, %v2423_v46, %v2419_v21  ;;  %2754 = vmatpush.msra.mxu1 %v5800_v27  ;;  %v2375_v18 = vand.u32 2147483647, %v5836_v43  ;;  %vm2371_vm12 = vweird.f32 %v5836_v43  ;;  %v3594_v53 = vld [vmem:[%s6572_s4] sm:$0xf] }
 0x3ca   :  { %v2567_v28 = vmul.f32 %v2424_v22, %v5647_v24  ;;  %2736 = vmatpush.msra.mxu0 %v5826_v56  ;;  %v2363_v25 = vor.u32 1.1754944e-38, %v2362_v13  ;;  %vm6745_vm13 = vcmask 261120   ;;  %v2378_v62 = vor.u32 1.1754944e-38, %v2377_v35  ;;  %v2710_v22 = vld [vmem:[%s6574_s6 + $0x80] sm:$0xff]  ;;  %v2837_v13 = vld [vmem:[%s6574_s6 + $0x198] sm:$0xff] }
 0x3cb   :  { %v2434_v61 = vsel %vm2433_vm5, %v5727_v57, %v2430_v34  ;;  %2755 = vmatpush.msra.mxu1 %v5819_v9  ;;  %v2360_v57 = vand.u32 2147483647, %v5773_v48  ;;  %vm2376_vm15 = vcmp.eq.f32.partialorder %v2375_v18, 8.507059e+37  ;;  %v2711_v34 = vld [vmem:[%s6574_s6 + $0x88] sm:$0xff]  ;;  %vm6746_vm0 = vmmov %vm6745_vm13  ;;  %v2681_v35 = vstv %s6084_s10 }
 0x3cc   :  { %v2439_v54 = vsel %vm2436_vm6, %v2438_v44, %v2434_v61  ;;  %v3589_v24 = vpop.eup %3588  ;;  %2631 = vmatpush.msrb.mxu2 %v2567_v28  ;;  %2737 = vmatpush.msra.mxu0 %v5842_v26  ;;  %v2849_v61 = vld [vmem:[%s6574_s6 + $0x1f8] sm:$0xff]  ;;  %v2843_v28 = vld [vmem:[%s6574_s6 + $0x1c8] sm:$0xff]  ;;  %vm3187_vm1 = vcmask 1040384  }
 0x3cd   :  { %v2568_v32 = vmul.f32 %v2439_v54, %v5653_v37  ;;  %v2352_v37 = vmul.f32 %v3589_v24, %v5773_v48  ;;  %2756 = vmatpush.msra.mxu1 %v5833_v63  ;;  %vm2357_vm10 = vweird.f32 %v3589_v24  ;;  %vm2361_vm9 = vcmp.eq.f32.partialorder %v2360_v57, 8.507059e+37  ;;  %v5929_v48 = vld [vmem:[%s6574_s6 + $0x98] sm:$0xff]  ;;  %v2826_v54 = vld [vmem:[%s6574_s6 + $0x140] sm:$0xff]  ;;  %v2820_v57 = vld [vmem:[%s6574_s6 + $0x110] sm:$0xff] }
 0x3ce   :  { %2738 = vmatpush.msra.mxu0 %v5856_v7  ;;  %v3591_v52 = vpop.eup %3590  ;;  %vm2358_vm8 = vmor %vm2356_vm7, %vm2357_vm10 }
 0x3cf   :  { %2651 = vmatpush.msrb.mxu3 %v2568_v32  ;;  %v2353_v31 = vsub.f32 1.0, %v2352_v37  ;;  %2757 = vmatpush.msra.mxu1 %v5848_v12  ;;  %v2367_v4 = vmul.f32 %v3591_v52, %v5836_v43  ;;  %vm2372_vm11 = vweird.f32 %v3591_v52  ;;  %v2825_v32 = vld [vmem:[%s6574_s6 + $0x138] sm:$0xff]  ;;  %v2839_v37 = vld [vmem:[%s6574_s6 + $0x1a8] sm:$0xff] }
 0x3d0   :  { %2739 = vmatpush.msra.mxu0 %v5868_v29  ;;  %vm2373_vm14 = vmor %vm2371_vm12, %vm2372_vm11  ;;  %v2841_v43 = vld [vmem:[%s6574_s6 + $0x1b8] sm:$0xff] }
 0x3d1   :  { %v2354_v16 = vmul.f32 %v3589_v24, %v2353_v31  ;;  %2758 = vmatpush.msra.mxu1 %v5862_v3  ;;  %v2368_v47 = vsub.f32 1.0, %v2367_v4 }
 0x3d2   :  { %2740 = vmatpush.msra.mxu0 %v5882_v42 }
 0x3d3   :  { %v2355_v8 = vadd.f32 %v3589_v24, %v2354_v16  ;;  %2759 = vmatpush.msra.mxu1 %v5875_v59  ;;  %v2369_v20 = vmul.f32 %v3591_v52, %v2368_v47 }
 0x3d4   :  { %2741 = vmatpush.msra.mxu0 %v5895_v19 }
 0x3d5   :  { %v2359_v5 = vsel %vm2358_vm8, %v3589_v24, %v2355_v8  ;;  %2760 = vmatpush.msra.mxu1 %v5888_v49  ;;  %v2370_v15 = vadd.f32 %v3591_v52, %v2369_v20  ;;  %v2840_v24 = vld [vmem:[%s6574_s6 + $0x1b0] sm:$0xff]  ;;  %v2819_v8 = vld [vmem:[%s6574_s6 + $0x108] sm:$0xff] }
 0x3d6   :  { %v2364_v23 = vsel %vm2361_vm9, %v2363_v25, %v2359_v5  ;;  %2742 = vmatpush.msra.mxu0 %v5908_v58  ;;  %v2657_v25 = vstv %s6059_s21  ;;  %v2834_v5 = vld [vmem:[%s6574_s6 + $0x180] sm:$0xff] }
 0x3d7   :  { %v2563_v39 = vmul.f32 %v2364_v23, %v5679_v2  ;;  %2761 = vmatpush.msra.mxu1 %v5902_v17  ;;  %v5935_v2 = vld [vmem:[%s6574_s6 + $0x10] sm:$0xff]  ;;  %v2374_v46 = vsel %vm2373_vm14, %v3591_v52, %v2370_v15  ;;  %v2658_v47 = vmul.f32 %v2657_v25, %v5282_v40 }
 0x3d8   :  { %2743 = vmatpush.msra.mxu0 %v5922_v0  ;;  %v2379_v21 = vsel %vm2376_vm15, %v2378_v62, %v2374_v46  ;;  %v6125_v46 = vld [vmem:[%s6574_s6 + $0x2f8] sm:$0xff] }
 0x3d9   :  { %2632 = vmatpush.msrb.mxu2 %v2563_v39  ;;  %2762 = vmatpush.msra.mxu1 %v5914_v36  ;;  %v2564_v44 = vmul.f32 %v2379_v21, %v5725_v11  ;;  %v2832_v11 = vld [vmem:[%s6574_s6 + $0x170] sm:$0xff]  ;;  %v6142_v21 = vld [vmem:[%s6574_s6 + $0x268] sm:$0xff] }
 0x3da   :  { %3309 = vmatmul.msk.f32.vlgmr.msrb.gmra.mxu2 %vm6745_vm13, %v3594_v53  ;;  %2744 = vmatpush.msra.mxu0 %v5935_v2 }
 0x3db   :  { %2763 = vmatpush.msra.mxu1 %v5929_v48  ;;  %2777 = vmatpush.msra.mxu2 %v5740_v6  ;;  %v2694_v6 = vld [vmem:[%s6574_s6] sm:$0xff] }
 0x3dc   :  { %2745 = vmatpush.msra.mxu0 %v2695_v14  ;;  %2652 = vmatpush.msrb.mxu3 %v2564_v44 }
 0x3dd   :  { %2764 = vmatpush.msra.mxu1 %v5946_v1  ;;  %2778 = vmatpush.msra.mxu2 %v5750_v45  ;;  %v2833_v45 = vld [vmem:[%s6574_s6 + $0x178] sm:$0xff] }
 0x3de   :  { %2746 = vmatpush.msra.mxu0 %v2694_v6  ;;  %3310 = vmatmul.msk.f32.vlgmr.msrb.gmra.mxu3 %vm6746_vm0, %v3594_v53 }
 0x3df   :  { %2765 = vmatpush.msra.mxu1 %v2711_v34  ;;  %2779 = vmatpush.msra.mxu2 %v5770_v55  ;;  %v2848_v55 = vld [vmem:[%s6574_s6 + $0x1f0] sm:$0xff] }
 0x3e0   :  { %2797 = vmatpush.msra.mxu3 %v5745_v38  ;;  %2854 = vmatpush.msrb.mxu0 %v2833_v45  ;;  %v2831_v38 = vld [vmem:[%s6574_s6 + $0x168] sm:$0xff] }
 0x3e1   :  { %2766 = vmatpush.msra.mxu1 %v2710_v22  ;;  %2780 = vmatpush.msra.mxu2 %v5790_v30  ;;  %v2847_v30 = vld [vmem:[%s6574_s6 + $0x1e8] sm:$0xff] }
 0x3e2   :  { %2798 = vmatpush.msra.mxu3 %v5758_v41  ;;  %2855 = vmatpush.msrb.mxu0 %v2832_v11  ;;  %v2830_v41 = vld [vmem:[%s6574_s6 + $0x160] sm:$0xff] }
 0x3e3   :  { %2874 = vmatpush.msrb.mxu1 %v2849_v61  ;;  %2781 = vmatpush.msra.mxu2 %v5810_v51  ;;  %v2846_v51 = vld [vmem:[%s6574_s6 + $0x1e0] sm:$0xff] }
 0x3e4   :  { %2799 = vmatpush.msra.mxu3 %v5779_v50  ;;  %2856 = vmatpush.msrb.mxu0 %v2831_v38  ;;  %v2829_v50 = vld [vmem:[%s6574_s6 + $0x158] sm:$0xff] }
 0x3e5   :  { %2875 = vmatpush.msrb.mxu1 %v2848_v55  ;;  %2782 = vmatpush.msra.mxu2 %v5826_v56  ;;  %v2845_v56 = vld [vmem:[%s6574_s6 + $0x1d8] sm:$0xff] }
 0x3e6   :  { %2800 = vmatpush.msra.mxu3 %v5800_v27  ;;  %2857 = vmatpush.msrb.mxu0 %v2830_v41  ;;  %v2828_v27 = vld [vmem:[%s6574_s6 + $0x150] sm:$0xff] }
 0x3e7   :  { %2876 = vmatpush.msrb.mxu1 %v2847_v30  ;;  %2783 = vmatpush.msra.mxu2 %v5842_v26  ;;  %v2824_v26 = vld [vmem:[%s6574_s6 + $0x130] sm:$0xff] }
 0x3e8   :  { %2801 = vmatpush.msra.mxu3 %v5819_v9  ;;  %2858 = vmatpush.msrb.mxu0 %v2829_v50  ;;  %v2844_v9 = vld [vmem:[%s6574_s6 + $0x1d0] sm:$0xff] }
 0x3e9   :  { %2877 = vmatpush.msrb.mxu1 %v2846_v51  ;;  %2784 = vmatpush.msra.mxu2 %v5856_v7  ;;  %v2822_v7 = vld [vmem:[%s6574_s6 + $0x120] sm:$0xff] }
 0x3ea   :  { %2802 = vmatpush.msra.mxu3 %v5833_v63  ;;  %2859 = vmatpush.msrb.mxu0 %v2828_v27  ;;  %v2842_v63 = vld [vmem:[%s6574_s6 + $0x1c0] sm:$0xff] }
 0x3eb   :  { %2878 = vmatpush.msrb.mxu1 %v2845_v56  ;;  %2785 = vmatpush.msra.mxu2 %v5868_v29  ;;  %v2821_v29 = vld [vmem:[%s6574_s6 + $0x118] sm:$0xff] }
 0x3ec   :  { %2803 = vmatpush.msra.mxu3 %v5848_v12  ;;  %2860 = vmatpush.msrb.mxu0 %v2827_v33  ;;  %v2823_v12 = vld [vmem:[%s6574_s6 + $0x128] sm:$0xff] }
 0x3ed   :  { %2786 = vmatpush.msra.mxu2 %v5882_v42  ;;  %2879 = vmatpush.msrb.mxu1 %v2844_v9  ;;  %v2836_v42 = vld [vmem:[%s6574_s6 + $0x190] sm:$0xff] }
 0x3ee   :  { %2804 = vmatpush.msra.mxu3 %v5862_v3  ;;  %2861 = vmatpush.msrb.mxu0 %v2826_v54  ;;  %v2838_v3 = vld [vmem:[%s6574_s6 + $0x1a0] sm:$0xff] }
 0x3ef   :  { %2787 = vmatpush.msra.mxu2 %v5895_v19  ;;  %2880 = vmatpush.msrb.mxu1 %v2843_v28  ;;  %v2835_v19 = vld [vmem:[%s6574_s6 + $0x188] sm:$0xff] }
 0x3f0   :  { %2805 = vmatpush.msra.mxu3 %v5875_v59  ;;  %2862 = vmatpush.msrb.mxu0 %v2825_v32  ;;  %v6073_v59 = vstv %s3288_s5  ;;  %s3195_s5 = sshll.u32 %s3640_s13, 4  ;;  %s3196_s5 = int_to_ptr.vmem [resolvable:$true] %s3195_s5 }
 0x3f1   :  { %2788 = vmatpush.msra.mxu2 %v5908_v58  ;;  %2881 = vmatpush.msrb.mxu1 %v2842_v63 }
 0x3f2   :  { %2806 = vmatpush.msra.mxu3 %v5888_v49  ;;  %2863 = vmatpush.msrb.mxu0 %v2824_v26 }
 0x3f3   :  { %2789 = vmatpush.msra.mxu2 %v5922_v0  ;;  %2882 = vmatpush.msrb.mxu1 %v2841_v43  ;;  %v2684_v0 = vstv %s6075_s1 }
 0x3f4   :  { %2807 = vmatpush.msra.mxu3 %v5902_v17  ;;  %2864 = vmatpush.msrb.mxu0 %v2823_v12  ;;  %v2818_v17 = vld [vmem:[%s6574_s6 + $0x100] sm:$0xff] }
 0x3f5   :  { %2790 = vmatpush.msra.mxu2 %v5935_v2  ;;  %2883 = vmatpush.msrb.mxu1 %v2840_v24 }
 0x3f6   :  { %2808 = vmatpush.msra.mxu3 %v5914_v36  ;;  %2865 = vmatpush.msrb.mxu0 %v2822_v7 }
 0x3f7   :  { %2791 = vmatpush.msra.mxu2 %v2695_v14  ;;  %2884 = vmatpush.msrb.mxu1 %v2839_v37  ;;  %v6120_v14 = vld [vmem:[%s6574_s6 + $0x278] sm:$0xff] }
 0x3f8   :  { %2809 = vmatpush.msra.mxu3 %v5929_v48  ;;  %2866 = vmatpush.msrb.mxu0 %v2821_v29  ;;  %v2685_v48 = vmul.f32 %v2684_v0, %v5282_v40  ;;  %v6132_v40 = vld [vmem:[%s6574_s6 + $0x270] sm:$0xff] }
 0x3f9   :  { %2792 = vmatpush.msra.mxu2 %v2694_v6  ;;  %2885 = vmatpush.msrb.mxu1 %v2838_v3 }
 0x3fa   :  { %2810 = vmatpush.msra.mxu3 %v5946_v1  ;;  %2867 = vmatpush.msrb.mxu0 %v2820_v57 }
 0x3fb   :  { %2899 = vmatpush.msrb.mxu2 %v2833_v45  ;;  %2886 = vmatpush.msrb.mxu1 %v2837_v13  ;;  %v6156_v45 = vld [vmem:[%s6574_s6 + $0x260] sm:$0xff] }
 0x3fc   :  { %2811 = vmatpush.msra.mxu3 %v2711_v34  ;;  %2868 = vmatpush.msrb.mxu0 %v2819_v8  ;;  %v6137_v34 = vld [vmem:[%s6574_s6 + $0x2f0] sm:$0xff] }
 0x3fd   :  { %2900 = vmatpush.msrb.mxu2 %v2832_v11  ;;  %2887 = vmatpush.msrb.mxu1 %v2836_v42  ;;  %v6168_v11 = vld [vmem:[%s6574_s6 + $0x258] sm:$0xff] }
 0x3fe   :  { %2812 = vmatpush.msra.mxu3 %v2710_v22  ;;  %2869 = vmatpush.msrb.mxu0 %v2818_v17  ;;  %v6151_v22 = vld [vmem:[%s6574_s6 + $0x2e8] sm:$0xff] }
 0x3ff   :  { %2901 = vmatpush.msrb.mxu2 %v2831_v38  ;;  %2888 = vmatpush.msrb.mxu1 %v2835_v19  ;;  %v6180_v38 = vld [vmem:[%s6574_s6 + $0x250] sm:$0xff] }
 0x400   :  { %2919 = vmatpush.msrb.mxu3 %v2849_v61  ;;  %v6161_v61 = vld [vmem:[%s6574_s6 + $0x2e0] sm:$0xff] }
 0x401   :  { %2902 = vmatpush.msrb.mxu2 %v2830_v41  ;;  %2889 = vmatpush.msrb.mxu1 %v2834_v5  ;;  %v6192_v41 = vld [vmem:[%s6574_s6 + $0x248] sm:$0xff] }
 0x402   :  { %2920 = vmatpush.msrb.mxu3 %v2848_v55  ;;  %v6173_v55 = vld [vmem:[%s6574_s6 + $0x2d8] sm:$0xff] }
 0x403   :  { %2903 = vmatpush.msrb.mxu2 %v2829_v50  ;;  %v6204_v50 = vld [vmem:[%s6574_s6 + $0x240] sm:$0xff] }
 0x404   :  { %2921 = vmatpush.msrb.mxu3 %v2847_v30  ;;  %v6185_v30 = vld [vmem:[%s6574_s6 + $0x2d0] sm:$0xff] }
 0x405   :  { %2904 = vmatpush.msrb.mxu2 %v2828_v27 }
 0x406   :  { %2922 = vmatpush.msrb.mxu3 %v2846_v51  ;;  %v6197_v51 = vld [vmem:[%s6574_s6 + $0x2c8] sm:$0xff] }
 0x407   :  { %2905 = vmatpush.msrb.mxu2 %v2827_v33  ;;  %v6221_v33 = vld [vmem:[%s6574_s6 + $0x2b8] sm:$0xff] }
 0x408   :  { %2923 = vmatpush.msrb.mxu3 %v2845_v56  ;;  %v6209_v56 = vld [vmem:[%s6574_s6 + $0x2c0] sm:$0xff] }
 0x409   :  { %2906 = vmatpush.msrb.mxu2 %v2826_v54  ;;  %v6228_v54 = vld [vmem:[%s6574_s6 + $0x230] sm:$0xff] }
 0x40a   :  { %2924 = vmatpush.msrb.mxu3 %v2844_v9  ;;  %v6216_v9 = vld [vmem:[%s6574_s6 + $0x238] sm:$0xff] }
 0x40b   :  { %2907 = vmatpush.msrb.mxu2 %v2825_v32 }
 0x40c   :  { %2925 = vmatpush.msrb.mxu3 %v2843_v28 }
 0x40d   :  { %2908 = vmatpush.msrb.mxu2 %v2824_v26  ;;  %v6242_v26 = vld [vmem:[%s6574_s6 + $0x228] sm:$0xff] }
 0x40e   :  { %2926 = vmatpush.msrb.mxu3 %v2842_v63  ;;  %v6233_v63 = vld [vmem:[%s6574_s6 + $0x2b0] sm:$0xff] }
 0x40f   :  { %2909 = vmatpush.msrb.mxu2 %v2823_v12 }
 0x410   :  { %2927 = vmatpush.msrb.mxu3 %v2841_v43 }
 0x411   :  { %2910 = vmatpush.msrb.mxu2 %v2822_v7 }
 0x412   :  { %2928 = vmatpush.msrb.mxu3 %v2840_v24  ;;  %v6247_v24 = vld [vmem:[%s6574_s6 + $0x2a8] sm:$0xff] }
 0x413   :  { %2911 = vmatpush.msrb.mxu2 %v2821_v29  ;;  %v6271_v29 = vld [vmem:[%s6574_s6 + $0x218] sm:$0xff] }
 0x414   :  { %2929 = vmatpush.msrb.mxu3 %v2839_v37  ;;  %v6260_v37 = vld [vmem:[%s6574_s6 + $0x2a0] sm:$0xff] }
 0x415   :  { %2912 = vmatpush.msrb.mxu2 %v2820_v57  ;;  %v6284_v57 = vld [vmem:[%s6574_s6 + $0x210] sm:$0xff] }
 0x416   :  { %2930 = vmatpush.msrb.mxu3 %v2838_v3 }
 0x417   :  { %2913 = vmatpush.msrb.mxu2 %v2819_v8  ;;  %v6301_v8 = vld [vmem:[%s6574_s6 + $0x288] sm:$0xff] }
 0x418   :  { %2931 = vmatpush.msrb.mxu3 %v2837_v13  ;;  %v6276_v13 = vld [vmem:[%s6574_s6 + $0x298] sm:$0xff] }
 0x419   :  { %2914 = vmatpush.msrb.mxu2 %v2818_v17  ;;  %v6318_v17 = vld [vmem:[%s6574_s6 + $0x280] sm:$0xff] }
 0x41a   :  { %2932 = vmatpush.msrb.mxu3 %v2836_v42  ;;  %v6289_v42 = vld [vmem:[%s6574_s6 + $0x290] sm:$0xff] }
 0x41c   :  { %2933 = vmatpush.msrb.mxu3 %v2835_v19 }
 0x41e   :  { %2934 = vmatpush.msrb.mxu3 %v2834_v5 }
 0x422   :  { %v2594_v31 = vpop.f32.mrf.mxu0 }
 0x423   :  { %v2595_v49 = vadd.f32 %v2594_v31, %v6693_v60  ;;  %v2659_v31 = vmul.f32 %v2657_v25, %v5421_v10  ;;  %v2686_v25 = vmul.f32 %v2684_v0, %v5421_v10  ;;  %v6327_v10 = vld [vmem:[%s6574_s6 + $0x378] sm:$0xff] }
 0x425   :  { %v2661_v58 = vmul.f32 %v6073_v59, %v2595_v49 }
 0x426   :  { %v2614_v16 = vpop.f32.mrf.mxu1 }
 0x427   :  { %v2615_v52 = vadd.f32 %v2614_v16, %v6693_v60 }
 0x429   :  { %v2662_v4 = vmul.f32 %v6073_v59, %v2615_v52  ;;  %v6296_v52 = vld [vmem:[%s6574_s6 + $0x208] sm:$0xff] }
 0x42b   :  { %v2669_v23 = vrot.slane %v2662_v4, 4  ;;  %v6313_v4 = vld [vmem:[%s6574_s6 + $0x200] sm:$0xff] }
 0x42d   :  { %v2671_v36 = vsel %vm6747_vm2, %v2661_v58, %v2669_v23 }
 0x42e   :  { %v2675_v39 = vsub.f32 %v2658_v47, %v2671_v36  ;;  %v6332_v47 = vld [vmem:[%s6574_s6 + $0x3f8] sm:$0xff] }
 0x430   :  { %v3311_v20 = vclamps-f32 %v2675_v39, 1.0  ;;  %v6339_v39 = vld [vmem:[%s6574_s6 + $0x370] sm:$0xff] }
 0x432   :  { %v2682_v18 = vmul.f32 %v3311_v20, %v2681_v35  ;;  %v6353_v20 = vld [vmem:[%s6574_s6 + $0x368] sm:$0xff] }
 0x434   :  { %v2687_v2 = vadd.f32 %v2685_v48, %v2682_v18  ;;  %v6358_v18 = vld [vmem:[%s6574_s6 + $0x3e8] sm:$0xff] }
 0x436   :  { %v2689_v15 = vmul.f32 0.5, %v2687_v2 }
 0x438   :  { %v6113_v53 = vadd.f32 0.5, %v2689_v15  ;;  %v6369_v15 = vld [vmem:[%s6574_s6 + $0x360] sm:$0xff] }
 0x43a   :  { %v2727_v1 = vperm.slane %v6113_v53, 0  ;;  %v2728_v62 = vperm.slane %v6113_v53, 4  ;;  %v2850_v6 = vperm.slane %v6113_v53, 1  ;;  %v2851_v44 = vperm.slane %v6113_v53, 5 }
 0x43b   :  { %v2972_v58 = vperm.slane %v6113_v53, 2  ;;  %v2973_v23 = vperm.slane %v6113_v53, 6 }
 0x43c   :  { %2747 = vmatmul.f32.vlgmr.msra.gmra.mxu0 %v2727_v1  ;;  %2767 = vmatmul.f32.vlgmr.msra.gmra.mxu1 %v2728_v62  ;;  %v6374_v1 = vld [vmem:[%s6574_s6 + $0x3e0] sm:$0xff]  ;;  %v6381_v62 = vld [vmem:[%s6574_s6 + $0x358] sm:$0xff] }
 0x43d   :  { %2976 = vmatpush.msra.mxu0 %v6120_v14  ;;  %2996 = vmatpush.msra.mxu1 %v6125_v46 }
 0x43f   :  { %2977 = vmatpush.msra.mxu0 %v6132_v40  ;;  %2997 = vmatpush.msra.mxu1 %v6137_v34 }
 0x441   :  { %2978 = vmatpush.msra.mxu0 %v6142_v21  ;;  %2998 = vmatpush.msra.mxu1 %v6151_v22 }
 0x443   :  { %2979 = vmatpush.msra.mxu0 %v6156_v45  ;;  %2999 = vmatpush.msra.mxu1 %v6161_v61 }
 0x444   :  { %2870 = vmatmul.f32.vlgmr.msrb.gmra.mxu0 %v2850_v6  ;;  %2890 = vmatmul.f32.vlgmr.msrb.gmra.mxu1 %v2851_v44  ;;  %v6386_v6 = vld [vmem:[%s6574_s6 + $0x3d8] sm:$0xff]  ;;  %v6415_v44 = vld [vmem:[%s6574_s6 + $0x348] sm:$0xff] }
 0x445   :  { %2980 = vmatpush.msra.mxu0 %v6168_v11  ;;  %3000 = vmatpush.msra.mxu1 %v6173_v55 }
 0x447   :  { %2981 = vmatpush.msra.mxu0 %v6180_v38  ;;  %3001 = vmatpush.msra.mxu1 %v6185_v30 }
 0x449   :  { %2982 = vmatpush.msra.mxu0 %v6192_v41  ;;  %3002 = vmatpush.msra.mxu1 %v6197_v51 }
 0x44b   :  { %2983 = vmatpush.msra.mxu0 %v6204_v50  ;;  %3003 = vmatpush.msra.mxu1 %v6209_v56 }
 0x44d   :  { %2984 = vmatpush.msra.mxu0 %v6216_v9  ;;  %3004 = vmatpush.msra.mxu1 %v6221_v33 }
 0x44f   :  { %2985 = vmatpush.msra.mxu0 %v6228_v54  ;;  %3005 = vmatpush.msra.mxu1 %v6233_v63 }
 0x451   :  { %2986 = vmatpush.msra.mxu0 %v6242_v26  ;;  %3006 = vmatpush.msra.mxu1 %v6247_v24 }
 0x453   :  { %3007 = vmatpush.msra.mxu1 %v6260_v37 }
 0x455   :  { %3008 = vmatpush.msra.mxu1 %v6276_v13 }
 0x457   :  { %3009 = vmatpush.msra.mxu1 %v6289_v42 }
 0x459   :  { %3010 = vmatpush.msra.mxu1 %v6301_v8 }
 0x45b   :  { %3011 = vmatpush.msra.mxu1 %v6318_v17 }
 0x45c   :  { %3012 = vmatmul.f32.vlgmr.msra.gmra.mxu1 %v2973_v23 }
 0x45d   :  { %v2634_v27 = vpop.f32.mrf.mxu2  ;;  %3118 = vmatpush.msrb.mxu1 %v6332_v47 }
 0x45e   :  { %v2635_v32 = vadd.f32 %v2634_v27, %v6693_v60  ;;  %v3081_v27 = vld [vmem:[%s6574_s6 + $0x398] sm:$0xff] }
 0x460   :  { %v2663_v7 = vmul.f32 %v6073_v59, %v2635_v32  ;;  %v3078_v32 = vld [vmem:[%s6574_s6 + $0x380] sm:$0xff] }
 0x461   :  { %v2654_v28 = vpop.f32.mrf.mxu3 }
 0x462   :  { %v2655_v43 = vadd.f32 %v2654_v28, %v6693_v60  ;;  %v6255_v60 = vld [vmem:[%s6574_s6 + $0x220] sm:$0xff]  ;;  %v3063_v28 = vld [vmem:[%s6574_s6 + $0x308] sm:$0xff] }
 0x463   :  { %2987 = vmatpush.msra.mxu0 %v6255_v60 }
 0x464   :  { %v2664_v12 = vmul.f32 %v6073_v59, %v2655_v43  ;;  %v3094_v43 = vperm.slane %v6113_v53, 3 }
 0x465   :  { %2988 = vmatpush.msra.mxu0 %v6271_v29 }
 0x466   :  { %v2670_v3 = vrot.slane %v2664_v12, 4 }
 0x467   :  { %2989 = vmatpush.msra.mxu0 %v6284_v57 }
 0x468   :  { %v2672_v59 = vsel %vm6748_vm3, %v2663_v7, %v2670_v3 }
 0x469   :  { %v2676_v16 = vsub.f32 %v2659_v31, %v2672_v59  ;;  %2990 = vmatpush.msra.mxu0 %v6296_v52 }
 0x46b   :  { %v3312_v49 = vclamps-f32 %v2676_v16, 1.0  ;;  %2991 = vmatpush.msra.mxu0 %v6313_v4 }
 0x46c   :  { %2992 = vmatmul.f32.vlgmr.msra.gmra.mxu0 %v2972_v58 }
 0x46d   :  { %v2683_v19 = vmul.f32 %v3312_v49, %v2681_v35  ;;  %v6344_v35 = vld [vmem:[%s6574_s6 + $0x3f0] sm:$0xff]  ;;  %3098 = vmatpush.msrb.mxu0 %v6327_v10 }
 0x46e   :  { %3119 = vmatpush.msrb.mxu1 %v6344_v35 }
 0x46f   :  { %v2688_v5 = vadd.f32 %v2686_v25, %v2683_v19  ;;  %3099 = vmatpush.msrb.mxu0 %v6339_v39 }
 0x470   :  { %3120 = vmatpush.msrb.mxu1 %v6358_v18 }
 0x471   :  { %v2690_v36 = vmul.f32 0.5, %v2688_v5  ;;  %3100 = vmatpush.msrb.mxu0 %v6353_v20 }
 0x472   :  { %3121 = vmatpush.msrb.mxu1 %v6374_v1 }
 0x473   :  { %v6348_v0 = vadd.f32 0.5, %v2690_v36  ;;  %3101 = vmatpush.msrb.mxu0 %v6369_v15 }
 0x474   :  { %3122 = vmatpush.msrb.mxu1 %v6386_v6 }
 0x475   :  { %v2773_v48 = vperm.slane %v6348_v0, 0  ;;  %v2774_v2 = vperm.slane %v6348_v0, 4  ;;  %3102 = vmatpush.msrb.mxu0 %v6381_v62  ;;  %v3018_v12 = vperm.slane %v6348_v0, 6 }
 0x477   :  { %2793 = vmatmul.f32.vlgmr.msra.gmra.mxu2 %v2773_v48  ;;  %2813 = vmatmul.f32.vlgmr.msra.gmra.mxu3 %v2774_v2 }
 0x478   :  { %3021 = vmatpush.msra.mxu2 %v6120_v14  ;;  %3041 = vmatpush.msra.mxu3 %v6125_v46  ;;  %v6395_v14 = vld [vmem:[%s6574_s6 + $0x350] sm:$0xff] }
 0x479   :  { %v6400_v46 = vld [vmem:[%s6574_s6 + $0x3d0] sm:$0xff]  ;;  %3103 = vmatpush.msrb.mxu0 %v6395_v14 }
 0x47a   :  { %3022 = vmatpush.msra.mxu2 %v6132_v40  ;;  %3042 = vmatpush.msra.mxu3 %v6137_v34  ;;  %v2895_v40 = vperm.slane %v6348_v0, 1  ;;  %v2896_v34 = vperm.slane %v6348_v0, 5 }
 0x47b   :  { %3123 = vmatpush.msrb.mxu1 %v6400_v46  ;;  %3104 = vmatpush.msrb.mxu0 %v6415_v44 }
 0x47c   :  { %3023 = vmatpush.msra.mxu2 %v6142_v21  ;;  %3043 = vmatpush.msra.mxu3 %v6151_v22  ;;  %v6420_v21 = vld [vmem:[%s6574_s6 + $0x3c8] sm:$0xff]  ;;  %v6427_v22 = vld [vmem:[%s6574_s6 + $0x340] sm:$0xff] }
 0x47d   :  { %3124 = vmatpush.msrb.mxu1 %v6420_v21  ;;  %3105 = vmatpush.msrb.mxu0 %v6427_v22 }
 0x47e   :  { %3024 = vmatpush.msra.mxu2 %v6156_v45  ;;  %3044 = vmatpush.msra.mxu3 %v6161_v61  ;;  %v6432_v45 = vld [vmem:[%s6574_s6 + $0x3c0] sm:$0xff]  ;;  %v6441_v61 = vld [vmem:[%s6574_s6 + $0x338] sm:$0xff] }
 0x47f   :  { %2915 = vmatmul.f32.vlgmr.msrb.gmra.mxu2 %v2895_v40  ;;  %2935 = vmatmul.f32.vlgmr.msrb.gmra.mxu3 %v2896_v34 }
 0x480   :  { %3025 = vmatpush.msra.mxu2 %v6168_v11  ;;  %3045 = vmatpush.msra.mxu3 %v6173_v55  ;;  %v6446_v11 = vld [vmem:[%s6574_s6 + $0x3b8] sm:$0xff]  ;;  %v6455_v55 = vld [vmem:[%s6574_s6 + $0x330] sm:$0xff] }
 0x481   :  { %3125 = vmatpush.msrb.mxu1 %v6432_v45  ;;  %3106 = vmatpush.msrb.mxu0 %v6441_v61 }
 0x482   :  { %3026 = vmatpush.msra.mxu2 %v6180_v38  ;;  %3046 = vmatpush.msra.mxu3 %v6185_v30  ;;  %v6460_v38 = vld [vmem:[%s6574_s6 + $0x3b0] sm:$0xff]  ;;  %v6469_v30 = vld [vmem:[%s6574_s6 + $0x328] sm:$0xff] }
 0x483   :  { %3126 = vmatpush.msrb.mxu1 %v6446_v11  ;;  %3107 = vmatpush.msrb.mxu0 %v6455_v55 }
 0x484   :  { %3027 = vmatpush.msra.mxu2 %v6192_v41  ;;  %3047 = vmatpush.msra.mxu3 %v6197_v51  ;;  %v6474_v41 = vld [vmem:[%s6574_s6 + $0x3a8] sm:$0xff]  ;;  %v6483_v51 = vld [vmem:[%s6574_s6 + $0x320] sm:$0xff] }
 0x485   :  { %3127 = vmatpush.msrb.mxu1 %v6460_v38  ;;  %3108 = vmatpush.msrb.mxu0 %v6469_v30 }
 0x486   :  { %3028 = vmatpush.msra.mxu2 %v6204_v50  ;;  %3048 = vmatpush.msra.mxu3 %v6209_v56  ;;  %v6488_v50 = vld [vmem:[%s6574_s6 + $0x3a0] sm:$0xff]  ;;  %v3065_v56 = vld [vmem:[%s6574_s6 + $0x318] sm:$0xff] }
 0x487   :  { %3128 = vmatpush.msrb.mxu1 %v6474_v41  ;;  %3109 = vmatpush.msrb.mxu0 %v6483_v51 }
 0x488   :  { %3029 = vmatpush.msra.mxu2 %v6216_v9  ;;  %3049 = vmatpush.msra.mxu3 %v6221_v33  ;;  %v3064_v9 = vld [vmem:[%s6574_s6 + $0x310] sm:$0xff] }
 0x489   :  { %3129 = vmatpush.msrb.mxu1 %v6488_v50  ;;  %v3080_v33 = vld [vmem:[%s6574_s6 + $0x390] sm:$0xff]  ;;  %3110 = vmatpush.msrb.mxu0 %v3065_v56 }
 0x48a   :  { %3030 = vmatpush.msra.mxu2 %v6228_v54  ;;  %3050 = vmatpush.msra.mxu3 %v6233_v63  ;;  %v3079_v54 = vld [vmem:[%s6574_s6 + $0x388] sm:$0xff]  ;;  %v3062_v63 = vld [vmem:[%s6574_s6 + $0x300] sm:$0xff] }
 0x48b   :  { %3130 = vmatpush.msrb.mxu1 %v3081_v27  ;;  %3111 = vmatpush.msrb.mxu0 %v3064_v9 }
 0x48c   :  { %3031 = vmatpush.msra.mxu2 %v6242_v26  ;;  %3051 = vmatpush.msra.mxu3 %v6247_v24  ;;  %v3095_v26 = vperm.slane %v6113_v53, 7  ;;  %v3017_v24 = vperm.slane %v6348_v0, 2  ;;  %v3139_v53 = vperm.slane %v6348_v0, 3 }
 0x48d   :  { %3131 = vmatpush.msrb.mxu1 %v3080_v33  ;;  %3112 = vmatpush.msrb.mxu0 %v3063_v28 }
 0x48e   :  { %3032 = vmatpush.msra.mxu2 %v6255_v60  ;;  %3052 = vmatpush.msra.mxu3 %v6260_v37  ;;  %v3140_v60 = vperm.slane %v6348_v0, 7 }
 0x48f   :  { %3132 = vmatpush.msrb.mxu1 %v3079_v54  ;;  %3113 = vmatpush.msrb.mxu0 %v3062_v63 }
 0x490   :  { %3033 = vmatpush.msra.mxu2 %v6271_v29  ;;  %3053 = vmatpush.msra.mxu3 %v6276_v13 }
 0x491   :  { %3133 = vmatpush.msrb.mxu1 %v3078_v32  ;;  %3114 = vmatmul.f32.vlgmr.msrb.gmra.mxu0 %v3094_v43 }
 0x492   :  { %3034 = vmatpush.msra.mxu2 %v6284_v57  ;;  %3054 = vmatpush.msra.mxu3 %v6289_v42 }
 0x493   :  { %3134 = vmatmul.f32.vlgmr.msrb.gmra.mxu1 %v3095_v26 }
 0x494   :  { %3035 = vmatpush.msra.mxu2 %v6296_v52  ;;  %3055 = vmatpush.msra.mxu3 %v6301_v8 }
 0x496   :  { %3036 = vmatpush.msra.mxu2 %v6313_v4  ;;  %3056 = vmatpush.msra.mxu3 %v6318_v17  ;;  %v2693_v4 = vld [vmem:[%s6575_s7] sm:$0x1] }
 0x497   :  { %3037 = vmatmul.f32.vlgmr.msra.gmra.mxu2 %v3017_v24  ;;  %3057 = vmatmul.f32.vlgmr.msra.gmra.mxu3 %v3018_v12 }
 0x498   :  { %3143 = vmatpush.msrb.mxu2 %v6327_v10  ;;  %3163 = vmatpush.msrb.mxu3 %v6332_v47 }
 0x49a   :  { %3144 = vmatpush.msrb.mxu2 %v6339_v39  ;;  %3164 = vmatpush.msrb.mxu3 %v6344_v35 }
 0x49c   :  { %3145 = vmatpush.msrb.mxu2 %v6353_v20  ;;  %3165 = vmatpush.msrb.mxu3 %v6358_v18 }
 0x49e   :  { %3146 = vmatpush.msrb.mxu2 %v6369_v15  ;;  %3166 = vmatpush.msrb.mxu3 %v6374_v1 }
 0x4a0   :  { %3147 = vmatpush.msrb.mxu2 %v6381_v62  ;;  %3167 = vmatpush.msrb.mxu3 %v6386_v6 }
 0x4a2   :  { %3148 = vmatpush.msrb.mxu2 %v6395_v14  ;;  %3168 = vmatpush.msrb.mxu3 %v6400_v46 }
 0x4a4   :  { %3149 = vmatpush.msrb.mxu2 %v6415_v44  ;;  %3169 = vmatpush.msrb.mxu3 %v6420_v21 }
 0x4a6   :  { %3150 = vmatpush.msrb.mxu2 %v6427_v22  ;;  %3170 = vmatpush.msrb.mxu3 %v6432_v45 }
 0x4a8   :  { %3151 = vmatpush.msrb.mxu2 %v6441_v61  ;;  %3171 = vmatpush.msrb.mxu3 %v6446_v11 }
 0x4aa   :  { %3152 = vmatpush.msrb.mxu2 %v6455_v55  ;;  %3172 = vmatpush.msrb.mxu3 %v6460_v38 }
 0x4ac   :  { %3153 = vmatpush.msrb.mxu2 %v6469_v30  ;;  %3173 = vmatpush.msrb.mxu3 %v6474_v41 }
 0x4ae   :  { %3154 = vmatpush.msrb.mxu2 %v6483_v51  ;;  %3174 = vmatpush.msrb.mxu3 %v6488_v50 }
 0x4b0   :  { %3155 = vmatpush.msrb.mxu2 %v3065_v56  ;;  %3175 = vmatpush.msrb.mxu3 %v3081_v27 }
 0x4b2   :  { %3156 = vmatpush.msrb.mxu2 %v3064_v9  ;;  %3176 = vmatpush.msrb.mxu3 %v3080_v33 }
 0x4b4   :  { %3157 = vmatpush.msrb.mxu2 %v3063_v28  ;;  %3177 = vmatpush.msrb.mxu3 %v3079_v54 }
 0x4b6   :  { %3158 = vmatpush.msrb.mxu2 %v3062_v63  ;;  %3178 = vmatpush.msrb.mxu3 %v3078_v32 }
 0x4b7   :  { %3159 = vmatmul.f32.vlgmr.msrb.gmra.mxu2 %v3139_v53  ;;  %3179 = vmatmul.f32.vlgmr.msrb.gmra.mxu3 %v3140_v60 }
 0x4b9   :  { %v2748_v37 = vpop.f32.mrf.mxu0  ;;  %v2768_v7 = vpop.f32.mrf.mxu1 }
 0x4ba   :  { %v2769_v19 = vadd.f32 %v2768_v7, %v2748_v37 }
 0x4bc   :  { %v2771_v47 = vadd.f32 %v2769_v19, %v2693_v4 }
 0x4c1   :  { %v2871_v29 = vpop.f32.mrf.mxu0  ;;  %v2891_v13 = vpop.f32.mrf.mxu1 }
 0x4c2   :  { %v2892_v17 = vadd.f32 %v2891_v13, %v2871_v29 }
 0x4c4   :  { %v2894_v20 = vadd.f32 %v2892_v17, %v2771_v47 }
 0x4d9   :  { %v3013_v42 = vpop.f32.mrf.mxu1 }
 0x4e9   :  { %v2993_v57 = vpop.f32.mrf.mxu0 }
 0x4ea   :  { %v3014_v36 = vadd.f32 %v3013_v42, %v2993_v57 }
 0x4ec   :  { %v3016_v15 = vadd.f32 %v3014_v36, %v2894_v20 }
 0x4fa   :  { %v2794_v3 = vpop.f32.mrf.mxu2  ;;  %v2814_v31 = vpop.f32.mrf.mxu3 }
 0x4fb   :  { %v2815_v8 = vadd.f32 %v2814_v31, %v2794_v3 }
 0x4fd   :  { %v2817_v5 = vadd.f32 %v2815_v8, %v2693_v4 }
 0x502   :  { %v2916_v59 = vpop.f32.mrf.mxu2  ;;  %v2936_v16 = vpop.f32.mrf.mxu3 }
 0x503   :  { %v2937_v25 = vadd.f32 %v2936_v16, %v2916_v59 }
 0x505   :  { %v2939_v39 = vadd.f32 %v2937_v25, %v2817_v5 }
 0x50e   :  { %v3115_v23 = vpop.f32.mrf.mxu0 }
 0x510   :  { %v3135_v10 = vpop.f32.mrf.mxu1 }
 0x511   :  { %v3136_v48 = vadd.f32 %v3135_v10, %v3115_v23 }
 0x513   :  { %v3138_v62 = vadd.f32 %v3136_v48, %v3016_v15 }
 0x51a   :  { %v3038_v49 = vpop.f32.mrf.mxu2  ;;  %v3058_v52 = vpop.f32.mrf.mxu3 }
 0x51b   :  { %v3059_v58 = vadd.f32 %v3058_v52, %v3038_v49 }
 0x51d   :  { %v3061_v18 = vadd.f32 %v3059_v58, %v2939_v39 }
 0x53a   :  { %v3160_v35 = vpop.f32.mrf.mxu2  ;;  %v3180_v0 = vpop.f32.mrf.mxu3 }
 0x53b   :  { %v3181_v2 = vadd.f32 %v3180_v0, %v3160_v35 }
 0x53d   :  { %v3183_v1 = vadd.f32 %v3181_v2, %v3061_v18 }
 0x53f   :  { %v3185_v6 = vperm.slane %v3183_v1, 0 }
 0x541   :  { %v3188_v14 = vsel %vm3187_vm1, %v3138_v62, %v3185_v6 }
 0x542   :  { %3189 = vst [vmem:[#allocation5] sm:$0x3] %v3188_v14 }
 0x543   :  { %3200 = dma.vmem_to_hbm [thread:$0]  %s3196_s5, 32, %s3198_s15, [#allocation3]  }
 0x544   :  { %3633 = dma.done.wait [#allocation3], 32  }
 0x545   :  { %3634 = vsyncadd [#allocation3], 4294967264 }
 0x546   :  { %3205 = vsyncpa [#allocation3], 1 }
 0x547   :  { %3206 = vsyncpa [#allocation4], 1 }

</bundles_post_ra>
